<compile_context>
chip_gen: v5e
topology: v5e:2x2
jax: 0.10.0
libtpu: 0.0.40
codegen_flags: <defaults>
</compile_context>

<pallas_src>
import jax
import jax.numpy as jnp
from jax.experimental import pallas as pl
from jax.experimental.pallas import tpu as pltpu


def _round_up(x, m):
    return (x + m - 1) // m * m


def _pick_tb(batch, vmem_bytes_per_image, budget_bytes=2 << 20):
    """Images per grid step: fit ~budget VMEM, keep >=2 grid steps (v7x 2 TCs)."""
    tb = max(1, budget_bytes // max(vmem_bytes_per_image, 1))
    if batch >= 2:
        tb = min(tb, (batch + 1) // 2)
    return int(max(1, min(tb, batch)))


# ----------------------------- Pallas kernels ------------------------------

def _conv_relu_pool_kernel(a_ref, w_ref, b_ref, o_ref):
    """Fused 5x5 conv (dy-accumulated matmuls) + bias + ReLU + 2x2 maxpool.

    a_ref: [TB, Hp, Wm, 5*Cin] bf16  (dx-expanded, x pre-ordered [even | odd])
    w_ref: [5, 5*Cin, Cout]    bf16  (dy, (dx,cin), cout)
    b_ref: [1, Cout]           f32
    o_ref: [TB, H/2, Wm/2, Cout] bf16 (pooled, ReLU'd; cols >= W/2 are junk)
    """
    TB, Hp, Wm, K5 = a_ref.shape
    H = Hp - 4
    Cout = w_ref.shape[-1]
    M = TB * H * Wm

    # Accumulate the 5 dy taps: each is a single MXU matmul over K = 5*Cin.
    acc = jnp.dot(a_ref[:, 0:H, :, :].reshape(M, K5), w_ref[0],
                  preferred_element_type=jnp.float32)
    for dy in range(1, 5):
        lhs = a_ref[:, dy:dy + H, :, :].reshape(M, K5)   # leading-dim slice, no-op reshape
        acc = acc + jnp.dot(lhs, w_ref[dy], preferred_element_type=jnp.float32)

    acc = jnp.maximum(acc + b_ref[...], 0.0)             # bias + ReLU (pre-pool, as in torch)

    # 2x2 max-pool with layout-safe ops only.
    r = acc.reshape(TB, H // 2, 2, Wm, Cout)             # split y -> (y_half, y_parity)
    ymax = jnp.maximum(r[:, :, 0], r[:, :, 1])           # [TB, H/2, Wm, Cout]
    half = Wm // 2                                       # columns are [even x | odd x]
    pooled = jnp.maximum(ymax[:, :, :half, :], ymax[:, :, half:, :])
    o_ref[...] = pooled.astype(o_ref.dtype)


def _fc_kernel(x_ref, w_ref, b_ref, o_ref):
    acc = jnp.dot(x_ref[...], w_ref[...], preferred_element_type=jnp.float32)
    o_ref[...] = (acc + b_ref[...]).astype(o_ref.dtype)


# ------------------------------ Pallas wrappers ----------------------------

def conv5x5_relu_pool(x_nhwc, w, b, *, out_dtype=jnp.bfloat16):
    """Conv2d(k=5, s=1, p=2) + ReLU + MaxPool2d(2) on NHWC input.

    x: [B, H, W, Cin], w: [5, 5, Cin, Cout] (HWIO), b: [Cout]
    -> [B, H/2, W/2, Cout] (out_dtype).
    """
    B, H, W, Cin = x_nhwc.shape
    KH, KW, Cin2, Cout = w.shape
    assert (KH, KW) == (5, 5) and Cin2 == Cin
    assert H % 2 == 0 and W % 2 == 0, "MaxPool2d(2) path assumes even H, W"
    Hh, Wh = H // 2, W // 2
    Hp = H + 4
    Wm = _round_up(W, 16)            # width padded to the bf16 sublane tile -> safe flatten
    K5 = 5 * Cin

    # --- XLA glue: pad, 5x dx-expansion (NOT 25x), even/odd column split ----
    xb = x_nhwc.astype(jnp.bfloat16)
    xp = jnp.pad(xb, ((0, 0), (2, 2), (2, Wm + 2 - W), (0, 0)))       # [B, Hp, Wm+4, Cin]
    a = jnp.concatenate([xp[:, :, dx:dx + Wm, :] for dx in range(5)],
                        axis=-1)                                       # [B, Hp, Wm, 5*Cin]
    a = jnp.concatenate([a[:, :, 0::2, :], a[:, :, 1::2, :]], axis=2)  # x -> [even | odd]

    # --- grid over whole images ---------------------------------------------
    per_img_vmem = 2 * Hp * Wm * _round_up(K5, 128) * 2               # dbl-buffered, lane-padded
    TB = _pick_tb(B, per_img_vmem)
    G = pl.cdiv(B, TB)
    Bp = G * TB
    if Bp != B:
        a = jnp.pad(a, ((0, Bp - B), (0, 0), (0, 0), (0, 0)))

    w3 = w.reshape(KH, KW * Cin, Cout).astype(jnp.bfloat16)           # [dy, (dx,cin), cout]
    bias = b.reshape(1, Cout).astype(jnp.float32)

    out = pl.pallas_call(
        _conv_relu_pool_kernel,
        out_shape=jax.ShapeDtypeStruct((Bp, Hh, Wm // 2, Cout), out_dtype),
        grid_spec=pltpu.PrefetchScalarGridSpec(
            num_scalar_prefetch=0,
            grid=(G,),
            in_specs=[
                pl.BlockSpec((TB, Hp, Wm, K5), lambda i: (i, 0, 0, 0)),
                pl.BlockSpec((KH, KW * Cin, Cout), lambda i: (0, 0, 0)),
                pl.BlockSpec((1, Cout), lambda i: (0, 0)),
            ],
            out_specs=pl.BlockSpec((TB, Hh, Wm // 2, Cout), lambda i: (i, 0, 0, 0)),
        ),
        compiler_params=pltpu.CompilerParams(
            dimension_semantics=("parallel",)),
    )(a, w3, bias)
    return out[:B, :, :Wh, :]                                          # drop batch/width padding


def pallas_linear(x, w, b):
    """o = x @ w + b.  Tiny FC: single block, M padded to 8, bf16 operands."""
    M, K = x.shape
    K2, N = w.shape
    assert K == K2
    Mp = _round_up(max(M, 8), 8)
    xpad = jnp.pad(x.astype(jnp.bfloat16), ((0, Mp - M), (0, 0)))
    out = pl.pallas_call(
        _fc_kernel,
        out_shape=jax.ShapeDtypeStruct((Mp, N), jnp.float32),
        in_specs=[pl.BlockSpec((Mp, K), lambda: (0, 0)),
                  pl.BlockSpec((K, N), lambda: (0, 0)),
                  pl.BlockSpec((1, N), lambda: (0, 0))],
        out_specs=pl.BlockSpec((Mp, N), lambda: (0, 0)),
    )(xpad, w.astype(jnp.bfloat16), b.reshape(1, N).astype(jnp.float32))
    return out[:M]


# ------------------------------- Model pieces ------------------------------

def init_params(key):
    k1, k2, k3, k4, k5, k6 = jax.random.split(key, 6)
    return {
        # conv weights stored HWIO [5,5,Cin,Cout] (torch [Cout,Cin,5,5].transpose(2,3,1,0))
        "conv1_w": 0.1 * jax.random.normal(k1, (5, 5, 3, 16), jnp.float32),
        "conv1_b": 0.1 * jax.random.normal(k2, (16,), jnp.float32),
        "conv2_w": 0.1 * jax.random.normal(k3, (5, 5, 16, 32), jnp.float32),
        "conv2_b": 0.1 * jax.random.normal(k4, (32,), jnp.float32),
        # fc weight stored [7,7,32,2] in NHWC (y, x, c) order
        # (torch W[2,1568].reshape(2,32,7,7).transpose(2,3,1,0)).
        "fc_w": 0.1 * jax.random.normal(k5, (7, 7, 32, 2), jnp.float32),
        "fc_b": 0.1 * jax.random.normal(k6, (2,), jnp.float32),
    }


@jax.jit
def cnn_forward(params, x_nchw):
    B = x_nchw.shape[0]
    x = jnp.transpose(x_nchw, (0, 2, 3, 1))                          # NCHW -> NHWC
    x = conv5x5_relu_pool(x, params["conv1_w"], params["conv1_b"])   # [B,14,14,16] bf16
    x = conv5x5_relu_pool(x, params["conv2_w"], params["conv2_b"])   # [B, 7, 7,32] bf16
    x = x.reshape(B, 7 * 7 * 32)                                     # NHWC (y,x,c) flatten
    return pallas_linear(x, params["fc_w"].reshape(7 * 7 * 32, 2), params["fc_b"])


# Pure-JAX f32 reference (sanity check for the Pallas path).
def cnn_forward_ref(params, x_nchw):
    x = jnp.transpose(x_nchw, (0, 2, 3, 1)).astype(jnp.float32)
    for wname, bname in (("conv1_w", "conv1_b"), ("conv2_w", "conv2_b")):
        x = jax.lax.conv_general_dilated(
            x, params[wname], window_strides=(1, 1), padding=((2, 2), (2, 2)),
            dimension_numbers=("NHWC", "HWIO", "NHWC"))
        x = jnp.maximum(x + params[bname], 0.0)
        x = jax.lax.reduce_window(
            x, -jnp.inf, jax.lax.max, (1, 2, 2, 1), (1, 2, 2, 1), "VALID")
    x = x.reshape(x.shape[0], -1)
    return x @ params["fc_w"].reshape(-1, 2) + params["fc_b"]


if __name__ == "__main__":
    key = jax.random.PRNGKey(0)
    pkey, xkey = jax.random.split(key)
    params = init_params(pkey)
    x = jax.random.normal(xkey, (2, 3, 28, 28), jnp.float32)   # NCHW like PyTorch

    out = cnn_forward(params, x)
    out = jax.block_until_ready(out)
    assert out.shape == (2, 2), out.shape

    ref = cnn_forward_ref(params, x)
    # bf16 MXU operands / bf16 inter-layer activations with f32 accumulation
    # -> small numeric drift vs the f32 reference.
    assert jnp.allclose(out, ref, rtol=4e-2, atol=4e-2), (out, ref)

    print("KERNEL_OK")
</pallas_src>

<mosaic_0001>
module attributes {stable_mosaic.version = 11 : i64} {
  func.func @_conv_relu_pool_kernel(%arg0: i32, %arg1: memref<1x32x32x15xbf16, #tpu.memory_space<vmem>>, %arg2: memref<5x15x16xbf16, #tpu.memory_space<vmem>>, %arg3: memref<1x16xf32, #tpu.memory_space<vmem>>, %arg4: memref<1x14x16x16xbf16, #tpu.memory_space<vmem>>) attributes {dimension_semantics = [#tpu.dimension_semantics<parallel>], iteration_bounds = array<i64: 2>, scalar_prefetch = 0 : i64, scratch_operands = 0 : i64, tpu.core_type = #tpu.core_type<tc>, window_params = [{transform_indices = @transform_0, window_bounds = array<i64: 1, 32, 32, 15>}, {pipeline_mode = #tpu.pipeline_mode<synchronous>, transform_indices = @transform_1, window_bounds = array<i64: 5, 15, 16>}, {pipeline_mode = #tpu.pipeline_mode<synchronous>, transform_indices = @transform_2, window_bounds = array<i64: 1, 16>}, {transform_indices = @transform_3, window_bounds = array<i64: 1, 14, 16, 16>}]} {
    %c0 = arith.constant 0 : index
    %c0_0 = arith.constant 0 : index
    %c0_1 = arith.constant 0 : index
    %c0_2 = arith.constant 0 : index
    %0 = vector.load %arg1[%c0, %c0_0, %c0_1, %c0_2] : memref<1x32x32x15xbf16, #tpu.memory_space<vmem>>, vector<1x28x32x15xbf16>
    %1 = vector.shape_cast %0 : vector<1x28x32x15xbf16> to vector<896x15xbf16>
    %c0_3 = arith.constant 0 : index
    %c0_4 = arith.constant 0 : index
    %c0_5 = arith.constant 0 : index
    %2 = vector.load %arg2[%c0_3, %c0_4, %c0_5] : memref<5x15x16xbf16, #tpu.memory_space<vmem>>, vector<1x15x16xbf16>
    %3 = vector.shape_cast %2 : vector<1x15x16xbf16> to vector<15x16xbf16>
    %cst = arith.constant dense<0.000000e+00> : vector<896x16xf32>
    %4 = tpu.matmul %1, %3, %cst {dimension_numbers = #tpu.dot_dimension_numbers<[1], [0], [0], [1], [0, 0, 1, 1], [], []>} : vector<896x15xbf16>, vector<15x16xbf16>, vector<896x16xf32> -> vector<896x16xf32>
    %c0_6 = arith.constant 0 : index
    %c1 = arith.constant 1 : index
    %c0_7 = arith.constant 0 : index
    %c0_8 = arith.constant 0 : index
    %5 = vector.load %arg1[%c0_6, %c1, %c0_7, %c0_8] : memref<1x32x32x15xbf16, #tpu.memory_space<vmem>>, vector<1x28x32x15xbf16>
    %6 = vector.shape_cast %5 : vector<1x28x32x15xbf16> to vector<896x15xbf16>
    %c1_9 = arith.constant 1 : index
    %c0_10 = arith.constant 0 : index
    %c0_11 = arith.constant 0 : index
    %7 = vector.load %arg2[%c1_9, %c0_10, %c0_11] : memref<5x15x16xbf16, #tpu.memory_space<vmem>>, vector<1x15x16xbf16>
    %8 = vector.shape_cast %7 : vector<1x15x16xbf16> to vector<15x16xbf16>
    %cst_12 = arith.constant dense<0.000000e+00> : vector<896x16xf32>
    %9 = tpu.matmul %6, %8, %cst_12 {dimension_numbers = #tpu.dot_dimension_numbers<[1], [0], [0], [1], [0, 0, 1, 1], [], []>} : vector<896x15xbf16>, vector<15x16xbf16>, vector<896x16xf32> -> vector<896x16xf32>
    %10 = arith.addf %4, %9 : vector<896x16xf32>
    %c0_13 = arith.constant 0 : index
    %c2 = arith.constant 2 : index
    %c0_14 = arith.constant 0 : index
    %c0_15 = arith.constant 0 : index
    %11 = vector.load %arg1[%c0_13, %c2, %c0_14, %c0_15] : memref<1x32x32x15xbf16, #tpu.memory_space<vmem>>, vector<1x28x32x15xbf16>
    %12 = vector.shape_cast %11 : vector<1x28x32x15xbf16> to vector<896x15xbf16>
    %c2_16 = arith.constant 2 : index
    %c0_17 = arith.constant 0 : index
    %c0_18 = arith.constant 0 : index
    %13 = vector.load %arg2[%c2_16, %c0_17, %c0_18] : memref<5x15x16xbf16, #tpu.memory_space<vmem>>, vector<1x15x16xbf16>
    %14 = vector.shape_cast %13 : vector<1x15x16xbf16> to vector<15x16xbf16>
    %cst_19 = arith.constant dense<0.000000e+00> : vector<896x16xf32>
    %15 = tpu.matmul %12, %14, %cst_19 {dimension_numbers = #tpu.dot_dimension_numbers<[1], [0], [0], [1], [0, 0, 1, 1], [], []>} : vector<896x15xbf16>, vector<15x16xbf16>, vector<896x16xf32> -> vector<896x16xf32>
    %16 = arith.addf %10, %15 : vector<896x16xf32>
    %c0_20 = arith.constant 0 : index
    %c3 = arith.constant 3 : index
    %c0_21 = arith.constant 0 : index
    %c0_22 = arith.constant 0 : index
    %17 = vector.load %arg1[%c0_20, %c3, %c0_21, %c0_22] : memref<1x32x32x15xbf16, #tpu.memory_space<vmem>>, vector<1x28x32x15xbf16>
    %18 = vector.shape_cast %17 : vector<1x28x32x15xbf16> to vector<896x15xbf16>
    %c3_23 = arith.constant 3 : index
    %c0_24 = arith.constant 0 : index
    %c0_25 = arith.constant 0 : index
    %19 = vector.load %arg2[%c3_23, %c0_24, %c0_25] : memref<5x15x16xbf16, #tpu.memory_space<vmem>>, vector<1x15x16xbf16>
    %20 = vector.shape_cast %19 : vector<1x15x16xbf16> to vector<15x16xbf16>
    %cst_26 = arith.constant dense<0.000000e+00> : vector<896x16xf32>
    %21 = tpu.matmul %18, %20, %cst_26 {dimension_numbers = #tpu.dot_dimension_numbers<[1], [0], [0], [1], [0, 0, 1, 1], [], []>} : vector<896x15xbf16>, vector<15x16xbf16>, vector<896x16xf32> -> vector<896x16xf32>
    %22 = arith.addf %16, %21 : vector<896x16xf32>
    %c0_27 = arith.constant 0 : index
    %c4 = arith.constant 4 : index
    %c0_28 = arith.constant 0 : index
    %c0_29 = arith.constant 0 : index
    %23 = vector.load %arg1[%c0_27, %c4, %c0_28, %c0_29] : memref<1x32x32x15xbf16, #tpu.memory_space<vmem>>, vector<1x28x32x15xbf16>
    %24 = vector.shape_cast %23 : vector<1x28x32x15xbf16> to vector<896x15xbf16>
    %c4_30 = arith.constant 4 : index
    %c0_31 = arith.constant 0 : index
    %c0_32 = arith.constant 0 : index
    %25 = vector.load %arg2[%c4_30, %c0_31, %c0_32] : memref<5x15x16xbf16, #tpu.memory_space<vmem>>, vector<1x15x16xbf16>
    %26 = vector.shape_cast %25 : vector<1x15x16xbf16> to vector<15x16xbf16>
    %cst_33 = arith.constant dense<0.000000e+00> : vector<896x16xf32>
    %27 = tpu.matmul %24, %26, %cst_33 {dimension_numbers = #tpu.dot_dimension_numbers<[1], [0], [0], [1], [0, 0, 1, 1], [], []>} : vector<896x15xbf16>, vector<15x16xbf16>, vector<896x16xf32> -> vector<896x16xf32>
    %28 = arith.addf %22, %27 : vector<896x16xf32>
    %c0_34 = arith.constant 0 : index
    %c0_35 = arith.constant 0 : index
    %29 = vector.load %arg3[%c0_34, %c0_35] : memref<1x16xf32, #tpu.memory_space<vmem>>, vector<1x16xf32>
    %30 = vector.broadcast %29 : vector<1x16xf32> to vector<896x16xf32>
    %31 = arith.addf %28, %30 : vector<896x16xf32>
    %cst_36 = arith.constant 0.000000e+00 : f32
    %32 = vector.broadcast %cst_36 : f32 to vector<896x16xf32>
    %33 = arith.maximumf %31, %32 : vector<896x16xf32>
    %34 = vector.shape_cast %33 : vector<896x16xf32> to vector<1x14x2x32x16xf32>
    %35 = vector.extract_strided_slice %34 {offsets = [0, 0, 0, 0, 0], sizes = [1, 14, 1, 32, 16], strides = [1, 1, 1, 1, 1]} : vector<1x14x2x32x16xf32> to vector<1x14x1x32x16xf32>
    %36 = vector.shape_cast %35 : vector<1x14x1x32x16xf32> to vector<1x14x32x16xf32>
    %37 = vector.extract_strided_slice %34 {offsets = [0, 0, 1, 0, 0], sizes = [1, 14, 1, 32, 16], strides = [1, 1, 1, 1, 1]} : vector<1x14x2x32x16xf32> to vector<1x14x1x32x16xf32>
    %38 = vector.shape_cast %37 : vector<1x14x1x32x16xf32> to vector<1x14x32x16xf32>
    %39 = arith.maximumf %36, %38 : vector<1x14x32x16xf32>
    %40 = vector.extract_strided_slice %39 {offsets = [0, 0, 0, 0], sizes = [1, 14, 16, 16], strides = [1, 1, 1, 1]} : vector<1x14x32x16xf32> to vector<1x14x16x16xf32>
    %41 = vector.extract_strided_slice %39 {offsets = [0, 0, 16, 0], sizes = [1, 14, 16, 16], strides = [1, 1, 1, 1]} : vector<1x14x32x16xf32> to vector<1x14x16x16xf32>
    %42 = arith.maximumf %40, %41 : vector<1x14x16x16xf32>
    %43 = arith.truncf %42 : vector<1x14x16x16xf32> to vector<1x14x16x16xbf16>
    %c0_37 = arith.constant 0 : index
    %c0_38 = arith.constant 0 : index
    %c0_39 = arith.constant 0 : index
    %c0_40 = arith.constant 0 : index
    %44 = vector.load %arg4[%c0_37, %c0_38, %c0_39, %c0_40] : memref<1x14x16x16xbf16, #tpu.memory_space<vmem>>, vector<1x14x16x16xbf16>
    tpu.vector_store %arg4[%c0_37, %c0_38, %c0_39, %c0_40], %43 {strides = array<i32>} : memref<1x14x16x16xbf16, #tpu.memory_space<vmem>>, vector<1x14x16x16xbf16>,
    return
  }
  func.func @transform_0(%arg0: i32) -> (i32, i32, i32, i32) {
    %c0_i32 = arith.constant 0 : i32
    %c0_i32_0 = arith.constant 0 : i32
    %c0_i32_1 = arith.constant 0 : i32
    %c0_i32_2 = arith.constant 0 : i32
    return %arg0, %c0_i32, %c0_i32_0, %c0_i32_1 : i32, i32, i32, i32
  }
  func.func @transform_1(%arg0: i32) -> (i32, i32, i32) {
    %c0_i32 = arith.constant 0 : i32
    %c0_i32_0 = arith.constant 0 : i32
    %c0_i32_1 = arith.constant 0 : i32
    %c0_i32_2 = arith.constant 0 : i32
    return %c0_i32, %c0_i32_0, %c0_i32_1 : i32, i32, i32
  }
  func.func @transform_2(%arg0: i32) -> (i32, i32) {
    %c0_i32 = arith.constant 0 : i32
    %c0_i32_0 = arith.constant 0 : i32
    %c0_i32_1 = arith.constant 0 : i32
    return %c0_i32, %c0_i32_0 : i32, i32
  }
  func.func @transform_3(%arg0: i32) -> (i32, i32, i32, i32) {
    %c0_i32 = arith.constant 0 : i32
    %c0_i32_0 = arith.constant 0 : i32
    %c0_i32_1 = arith.constant 0 : i32
    %c0_i32_2 = arith.constant 0 : i32
    return %arg0, %c0_i32, %c0_i32_0, %c0_i32_1 : i32, i32, i32, i32
  }
}

module attributes {stable_mosaic.version = 11 : i64} {
  func.func @_conv_relu_pool_kernel(%arg0: i32, %arg1: memref<1x18x16x80xbf16, #tpu.memory_space<vmem>>, %arg2: memref<5x80x32xbf16, #tpu.memory_space<vmem>>, %arg3: memref<1x32xf32, #tpu.memory_space<vmem>>, %arg4: memref<1x7x8x32xbf16, #tpu.memory_space<vmem>>) attributes {dimension_semantics = [#tpu.dimension_semantics<parallel>], iteration_bounds = array<i64: 2>, scalar_prefetch = 0 : i64, scratch_operands = 0 : i64, tpu.core_type = #tpu.core_type<tc>, window_params = [{transform_indices = @transform_0, window_bounds = array<i64: 1, 18, 16, 80>}, {pipeline_mode = #tpu.pipeline_mode<synchronous>, transform_indices = @transform_1, window_bounds = array<i64: 5, 80, 32>}, {pipeline_mode = #tpu.pipeline_mode<synchronous>, transform_indices = @transform_2, window_bounds = array<i64: 1, 32>}, {transform_indices = @transform_3, window_bounds = array<i64: 1, 7, 8, 32>}]} {
    %c0 = arith.constant 0 : index
    %c0_0 = arith.constant 0 : index
    %c0_1 = arith.constant 0 : index
    %c0_2 = arith.constant 0 : index
    %0 = vector.load %arg1[%c0, %c0_0, %c0_1, %c0_2] : memref<1x18x16x80xbf16, #tpu.memory_space<vmem>>, vector<1x14x16x80xbf16>
    %1 = vector.shape_cast %0 : vector<1x14x16x80xbf16> to vector<224x80xbf16>
    %c0_3 = arith.constant 0 : index
    %c0_4 = arith.constant 0 : index
    %c0_5 = arith.constant 0 : index
    %2 = vector.load %arg2[%c0_3, %c0_4, %c0_5] : memref<5x80x32xbf16, #tpu.memory_space<vmem>>, vector<1x80x32xbf16>
    %3 = vector.shape_cast %2 : vector<1x80x32xbf16> to vector<80x32xbf16>
    %cst = arith.constant dense<0.000000e+00> : vector<224x32xf32>
    %4 = tpu.matmul %1, %3, %cst {dimension_numbers = #tpu.dot_dimension_numbers<[1], [0], [0], [1], [0, 0, 1, 1], [], []>} : vector<224x80xbf16>, vector<80x32xbf16>, vector<224x32xf32> -> vector<224x32xf32>
    %c0_6 = arith.constant 0 : index
    %c1 = arith.constant 1 : index
    %c0_7 = arith.constant 0 : index
    %c0_8 = arith.constant 0 : index
    %5 = vector.load %arg1[%c0_6, %c1, %c0_7, %c0_8] : memref<1x18x16x80xbf16, #tpu.memory_space<vmem>>, vector<1x14x16x80xbf16>
    %6 = vector.shape_cast %5 : vector<1x14x16x80xbf16> to vector<224x80xbf16>
    %c1_9 = arith.constant 1 : index
    %c0_10 = arith.constant 0 : index
    %c0_11 = arith.constant 0 : index
    %7 = vector.load %arg2[%c1_9, %c0_10, %c0_11] : memref<5x80x32xbf16, #tpu.memory_space<vmem>>, vector<1x80x32xbf16>
    %8 = vector.shape_cast %7 : vector<1x80x32xbf16> to vector<80x32xbf16>
    %cst_12 = arith.constant dense<0.000000e+00> : vector<224x32xf32>
    %9 = tpu.matmul %6, %8, %cst_12 {dimension_numbers = #tpu.dot_dimension_numbers<[1], [0], [0], [1], [0, 0, 1, 1], [], []>} : vector<224x80xbf16>, vector<80x32xbf16>, vector<224x32xf32> -> vector<224x32xf32>
    %10 = arith.addf %4, %9 : vector<224x32xf32>
    %c0_13 = arith.constant 0 : index
    %c2 = arith.constant 2 : index
    %c0_14 = arith.constant 0 : index
    %c0_15 = arith.constant 0 : index
    %11 = vector.load %arg1[%c0_13, %c2, %c0_14, %c0_15] : memref<1x18x16x80xbf16, #tpu.memory_space<vmem>>, vector<1x14x16x80xbf16>
    %12 = vector.shape_cast %11 : vector<1x14x16x80xbf16> to vector<224x80xbf16>
    %c2_16 = arith.constant 2 : index
    %c0_17 = arith.constant 0 : index
    %c0_18 = arith.constant 0 : index
    %13 = vector.load %arg2[%c2_16, %c0_17, %c0_18] : memref<5x80x32xbf16, #tpu.memory_space<vmem>>, vector<1x80x32xbf16>
    %14 = vector.shape_cast %13 : vector<1x80x32xbf16> to vector<80x32xbf16>
    %cst_19 = arith.constant dense<0.000000e+00> : vector<224x32xf32>
    %15 = tpu.matmul %12, %14, %cst_19 {dimension_numbers = #tpu.dot_dimension_numbers<[1], [0], [0], [1], [0, 0, 1, 1], [], []>} : vector<224x80xbf16>, vector<80x32xbf16>, vector<224x32xf32> -> vector<224x32xf32>
    %16 = arith.addf %10, %15 : vector<224x32xf32>
    %c0_20 = arith.constant 0 : index
    %c3 = arith.constant 3 : index
    %c0_21 = arith.constant 0 : index
    %c0_22 = arith.constant 0 : index
    %17 = vector.load %arg1[%c0_20, %c3, %c0_21, %c0_22] : memref<1x18x16x80xbf16, #tpu.memory_space<vmem>>, vector<1x14x16x80xbf16>
    %18 = vector.shape_cast %17 : vector<1x14x16x80xbf16> to vector<224x80xbf16>
    %c3_23 = arith.constant 3 : index
    %c0_24 = arith.constant 0 : index
    %c0_25 = arith.constant 0 : index
    %19 = vector.load %arg2[%c3_23, %c0_24, %c0_25] : memref<5x80x32xbf16, #tpu.memory_space<vmem>>, vector<1x80x32xbf16>
    %20 = vector.shape_cast %19 : vector<1x80x32xbf16> to vector<80x32xbf16>
    %cst_26 = arith.constant dense<0.000000e+00> : vector<224x32xf32>
    %21 = tpu.matmul %18, %20, %cst_26 {dimension_numbers = #tpu.dot_dimension_numbers<[1], [0], [0], [1], [0, 0, 1, 1], [], []>} : vector<224x80xbf16>, vector<80x32xbf16>, vector<224x32xf32> -> vector<224x32xf32>
    %22 = arith.addf %16, %21 : vector<224x32xf32>
    %c0_27 = arith.constant 0 : index
    %c4 = arith.constant 4 : index
    %c0_28 = arith.constant 0 : index
    %c0_29 = arith.constant 0 : index
    %23 = vector.load %arg1[%c0_27, %c4, %c0_28, %c0_29] : memref<1x18x16x80xbf16, #tpu.memory_space<vmem>>, vector<1x14x16x80xbf16>
    %24 = vector.shape_cast %23 : vector<1x14x16x80xbf16> to vector<224x80xbf16>
    %c4_30 = arith.constant 4 : index
    %c0_31 = arith.constant 0 : index
    %c0_32 = arith.constant 0 : index
    %25 = vector.load %arg2[%c4_30, %c0_31, %c0_32] : memref<5x80x32xbf16, #tpu.memory_space<vmem>>, vector<1x80x32xbf16>
    %26 = vector.shape_cast %25 : vector<1x80x32xbf16> to vector<80x32xbf16>
    %cst_33 = arith.constant dense<0.000000e+00> : vector<224x32xf32>
    %27 = tpu.matmul %24, %26, %cst_33 {dimension_numbers = #tpu.dot_dimension_numbers<[1], [0], [0], [1], [0, 0, 1, 1], [], []>} : vector<224x80xbf16>, vector<80x32xbf16>, vector<224x32xf32> -> vector<224x32xf32>
    %28 = arith.addf %22, %27 : vector<224x32xf32>
    %c0_34 = arith.constant 0 : index
    %c0_35 = arith.constant 0 : index
    %29 = vector.load %arg3[%c0_34, %c0_35] : memref<1x32xf32, #tpu.memory_space<vmem>>, vector<1x32xf32>
    %30 = vector.broadcast %29 : vector<1x32xf32> to vector<224x32xf32>
    %31 = arith.addf %28, %30 : vector<224x32xf32>
    %cst_36 = arith.constant 0.000000e+00 : f32
    %32 = vector.broadcast %cst_36 : f32 to vector<224x32xf32>
    %33 = arith.maximumf %31, %32 : vector<224x32xf32>
    %34 = vector.shape_cast %33 : vector<224x32xf32> to vector<1x7x2x16x32xf32>
    %35 = vector.extract_strided_slice %34 {offsets = [0, 0, 0, 0, 0], sizes = [1, 7, 1, 16, 32], strides = [1, 1, 1, 1, 1]} : vector<1x7x2x16x32xf32> to vector<1x7x1x16x32xf32>
    %36 = vector.shape_cast %35 : vector<1x7x1x16x32xf32> to vector<1x7x16x32xf32>
    %37 = vector.extract_strided_slice %34 {offsets = [0, 0, 1, 0, 0], sizes = [1, 7, 1, 16, 32], strides = [1, 1, 1, 1, 1]} : vector<1x7x2x16x32xf32> to vector<1x7x1x16x32xf32>
    %38 = vector.shape_cast %37 : vector<1x7x1x16x32xf32> to vector<1x7x16x32xf32>
    %39 = arith.maximumf %36, %38 : vector<1x7x16x32xf32>
    %40 = vector.extract_strided_slice %39 {offsets = [0, 0, 0, 0], sizes = [1, 7, 8, 32], strides = [1, 1, 1, 1]} : vector<1x7x16x32xf32> to vector<1x7x8x32xf32>
    %41 = vector.extract_strided_slice %39 {offsets = [0, 0, 8, 0], sizes = [1, 7, 8, 32], strides = [1, 1, 1, 1]} : vector<1x7x16x32xf32> to vector<1x7x8x32xf32>
    %42 = arith.maximumf %40, %41 : vector<1x7x8x32xf32>
    %43 = arith.truncf %42 : vector<1x7x8x32xf32> to vector<1x7x8x32xbf16>
    %c0_37 = arith.constant 0 : index
    %c0_38 = arith.constant 0 : index
    %c0_39 = arith.constant 0 : index
    %c0_40 = arith.constant 0 : index
    %44 = vector.load %arg4[%c0_37, %c0_38, %c0_39, %c0_40] : memref<1x7x8x32xbf16, #tpu.memory_space<vmem>>, vector<1x7x8x32xbf16>
    tpu.vector_store %arg4[%c0_37, %c0_38, %c0_39, %c0_40], %43 {strides = array<i32>} : memref<1x7x8x32xbf16, #tpu.memory_space<vmem>>, vector<1x7x8x32xbf16>,
    return
  }
  func.func @transform_0(%arg0: i32) -> (i32, i32, i32, i32) {
    %c0_i32 = arith.constant 0 : i32
    %c0_i32_0 = arith.constant 0 : i32
    %c0_i32_1 = arith.constant 0 : i32
    %c0_i32_2 = arith.constant 0 : i32
    return %arg0, %c0_i32, %c0_i32_0, %c0_i32_1 : i32, i32, i32, i32
  }
  func.func @transform_1(%arg0: i32) -> (i32, i32, i32) {
    %c0_i32 = arith.constant 0 : i32
    %c0_i32_0 = arith.constant 0 : i32
    %c0_i32_1 = arith.constant 0 : i32
    %c0_i32_2 = arith.constant 0 : i32
    return %c0_i32, %c0_i32_0, %c0_i32_1 : i32, i32, i32
  }
  func.func @transform_2(%arg0: i32) -> (i32, i32) {
    %c0_i32 = arith.constant 0 : i32
    %c0_i32_0 = arith.constant 0 : i32
    %c0_i32_1 = arith.constant 0 : i32
    return %c0_i32, %c0_i32_0 : i32, i32
  }
  func.func @transform_3(%arg0: i32) -> (i32, i32, i32, i32) {
    %c0_i32 = arith.constant 0 : i32
    %c0_i32_0 = arith.constant 0 : i32
    %c0_i32_1 = arith.constant 0 : i32
    %c0_i32_2 = arith.constant 0 : i32
    return %arg0, %c0_i32, %c0_i32_0, %c0_i32_1 : i32, i32, i32, i32
  }
}

module attributes {stable_mosaic.version = 11 : i64} {
  func.func @_fc_kernel(%arg0: memref<8x1568xbf16, #tpu.memory_space<vmem>>, %arg1: memref<1568x2xbf16, #tpu.memory_space<vmem>>, %arg2: memref<1x2xf32, #tpu.memory_space<vmem>>, %arg3: memref<8x2xf32, #tpu.memory_space<vmem>>) attributes {dimension_semantics = [], scalar_prefetch = 0 : i64, scratch_operands = 0 : i64, tpu.core_type = #tpu.core_type<tc>} {
    %c0 = arith.constant 0 : index
    %c0_0 = arith.constant 0 : index
    %0 = vector.load %arg0[%c0, %c0_0] : memref<8x1568xbf16, #tpu.memory_space<vmem>>, vector<8x1568xbf16>
    %c0_1 = arith.constant 0 : index
    %c0_2 = arith.constant 0 : index
    %1 = vector.load %arg1[%c0_1, %c0_2] : memref<1568x2xbf16, #tpu.memory_space<vmem>>, vector<1568x2xbf16>
    %cst = arith.constant dense<0.000000e+00> : vector<8x2xf32>
    %2 = tpu.matmul %0, %1, %cst {dimension_numbers = #tpu.dot_dimension_numbers<[1], [0], [0], [1], [0, 0, 1, 1], [], []>} : vector<8x1568xbf16>, vector<1568x2xbf16>, vector<8x2xf32> -> vector<8x2xf32>
    %c0_3 = arith.constant 0 : index
    %c0_4 = arith.constant 0 : index
    %3 = vector.load %arg2[%c0_3, %c0_4] : memref<1x2xf32, #tpu.memory_space<vmem>>, vector<1x2xf32>
    %4 = vector.broadcast %3 : vector<1x2xf32> to vector<8x2xf32>
    %5 = arith.addf %2, %4 : vector<8x2xf32>
    %c0_5 = arith.constant 0 : index
    %c0_6 = arith.constant 0 : index
    %6 = vector.load %arg3[%c0_5, %c0_6] : memref<8x2xf32, #tpu.memory_space<vmem>>, vector<8x2xf32>
    tpu.vector_store %arg3[%c0_5, %c0_6], %5 {strides = array<i32>} : memref<8x2xf32, #tpu.memory_space<vmem>>, vector<8x2xf32>,
    return
  }
}

</mosaic_0001>

<bundles_post_ra>
// kernel: cnn_forward.3
= control target key start
LH: loop header
LB: loop body
LE: loop exit
PB: predicated region body
PF: predicated region fallthrough
CT: control target
= control target key end

     0   :  { %s7457_s12 = smov 0   ;;  %s8753_s0 = inlined_call_operand.vmem [shape: bf16[2,32,32,15], index: 0, kind: input, shape index: {}]   ;;  %s8754_s1 = inlined_call_operand.vmem [shape: bf16[5,15,16], index: 1, kind: input, shape index: {}]   ;;  %s8755_s2 = inlined_call_operand.vmem [shape: f32[1,16], index: 2, kind: input, shape index: {}]   ;;  %s8756_s3 = inlined_call_operand.vmem [shape: bf16[2,14,16,16], index: 3, kind: output, shape index: {}]  }
   0x1 LB: > { %s5240_s13 = sadd.s32 4294967295, %s7434_s12   ;;  %p5244_p0 = scmp.ge.s32.totalorder %s7434_s12, 1  ;;  %s7434_s12 = sphi %s7457_s12, %s13_s12  }
   0x2   : > { %p137_p1 = scmp.lt.s32.totalorder %s7434_s12, 3 }
   0x4   : > { %p138_p2 = pnand %p5244_p0, %p137_p1 }
   0x6   : > { %141 = sbr.rel (%p138_p2) target bundleno = 1280 (0x500), region = 32 }
   0xb   : > { %v7240_v0 = vld [vmem:[%s8754_s1 + $0x8] sm:$0xff]  ;;  %vm856_vm0 = vcmask 1046528   ;;  %vm857_vm1 = vcmask 1047552   ;;  %p161_p3 = scmp.lt.s32.totalorder %s5240_s13, 1  ;;  %v7436_v1 = vmov 65535   ;;  %v7297_v3 = vld [vmem:[%s8754_s1 + $0x10] sm:$0xff] }
   0xc   : > { %v858_v2 = vsel %vm856_vm0, 4294967295, %v7436_v1  ;;  %v7354_v4 = vld [vmem:[%s8754_s1 + $0x18] sm:$0xff]  ;;  %v7183_v6 = vld [vmem:[%s8754_s1] sm:$0xff]  ;;  %vm687_vm2 = vcmask 121856   ;;  %vm5156_vm3 = vcmask 125952  }
   0xd   : > { %v859_v5 = vsel %vm857_vm1, %v858_v2, 0  ;;  %s8932_s13 = smov (!%p161_p3, %s5240_s13), 1  ;;  %v7411_v7 = vld [vmem:[%s8754_s1 + $0x20] sm:$0xff] }
   0xe   : > { %v861_v8 = vand.u32 %v7240_v0, %v859_v5  ;;  %v2467_v9 = vand.u32 %v7297_v3, %v859_v5  ;;  %v3440_v10 = vand.u32 %v7354_v4, %v859_v5  ;;  %s7126_s24 = sshll.u32 %s8932_s13, 9  ;;  %v1606_v14 = vand.u32 %v7183_v6, %v859_v5  ;;  %s7415_s30 = smul.u32 112, %s8932_s13 }
   0xf   : > { %s7486_s27 = scalar_lea.vmem %s8753_s0, %s7126_s24  ;;  %v4413_v15 = vand.u32 %v7411_v7, %v859_v5 }
  0x10   : > { %7412 = vmatpush.bf16.msra.mxu1 %v861_v8  ;;  %7413 = vmatpush.bf16.msra.mxu2 %v861_v8  ;;  %v7198_v11 = vld [vmem:[%s7486_s27 + $0x80] sm:$0xff]  ;;  %v7212_v12 = vld [vmem:[%s7486_s27 + $0xf0] sm:$0xff]  ;;  %v7199_v17 = vld [vmem:[%s7486_s27 + $0x88] sm:$0xff]  ;;  %s7966_s6 = scalar_lea.vmem %s8756_s3, %s7415_s30 }
  0x11   : > { %7414 = vmatpush.bf16.msra.mxu3 %v861_v8  ;;  %870 = vmatpush.bf16.msra.mxu0 %v861_v8  ;;  %v7226_v13 = vld [vmem:[%s7486_s27 + $0x160] sm:$0xff]  ;;  %v7184_v16 = vld [vmem:[%s7486_s27 + $0x10] sm:$0xff]  ;;  %v7213_v18 = vld [vmem:[%s7486_s27 + $0xf8] sm:$0xff] }
  0x12   : > { %v7227_v19 = vld [vmem:[%s7486_s27 + $0x168] sm:$0xff]  ;;  %v7185_v20 = vld [vmem:[%s7486_s27 + $0x18] sm:$0xff]  ;;  %v7200_v21 = vld [vmem:[%s7486_s27 + $0x90] sm:$0xff] }
  0x13   : > { %5604 = vmatmul.msk.bf16.vlgmr.msra.gmra.mxu1 %vm687_vm2, %v7198_v11  ;;  %5618 = vmatmul.msk.bf16.vlgmr.msra.gmra.mxu2 %vm687_vm2, %v7212_v12  ;;  %v7214_v22 = vld [vmem:[%s7486_s27 + $0x100] sm:$0xff]  ;;  %v7228_v23 = vld [vmem:[%s7486_s27 + $0x170] sm:$0xff]  ;;  %v7201_v25 = vld [vmem:[%s7486_s27 + $0x98] sm:$0xff] }
  0x14   : > { %2476 = vmatpush.bf16.msrb.mxu2 %v2467_v9  ;;  %5632 = vmatmul.msk.bf16.vlgmr.msra.gmra.mxu3 %vm687_vm2, %v7226_v13  ;;  %v7186_v24 = vld [vmem:[%s7486_s27 + $0x20] sm:$0xff]  ;;  %v7215_v26 = vld [vmem:[%s7486_s27 + $0x108] sm:$0xff]  ;;  %v7229_v27 = vld [vmem:[%s7486_s27 + $0x178] sm:$0xff] }
  0x15   : > { %3449 = vmatpush.bf16.msrb.mxu3 %v3440_v10  ;;  %5590 = vmatmul.msk.bf16.vlgmr.msra.gmra.mxu0 %vm687_vm2, %v7184_v16  ;;  %v7187_v28 = vld [vmem:[%s7486_s27 + $0x28] sm:$0xff]  ;;  %v7202_v29 = vld [vmem:[%s7486_s27 + $0xa0] sm:$0xff]  ;;  %v7216_v30 = vld [vmem:[%s7486_s27 + $0x110] sm:$0xff] }
  0x16   : > { %1615 = vmatpush.bf16.msrb.mxu1 %v1606_v14  ;;  %4422 = vmatpush.bf16.msrb.mxu0 %v4413_v15  ;;  %v7230_v31 = vld [vmem:[%s7486_s27 + $0x180] sm:$0xff]  ;;  %v7188_v32 = vld [vmem:[%s7486_s27 + $0x30] sm:$0xff]  ;;  %v7203_v33 = vld [vmem:[%s7486_s27 + $0xa8] sm:$0xff] }
  0x17   : > { %v7217_v34 = vld [vmem:[%s7486_s27 + $0x118] sm:$0xff]  ;;  %v7231_v35 = vld [vmem:[%s7486_s27 + $0x188] sm:$0xff]  ;;  %v7204_v37 = vld [vmem:[%s7486_s27 + $0xb0] sm:$0xff] }
  0x18   : > { %v7189_v36 = vld [vmem:[%s7486_s27 + $0x38] sm:$0xff]  ;;  %v7218_v38 = vld [vmem:[%s7486_s27 + $0x120] sm:$0xff]  ;;  %v7232_v39 = vld [vmem:[%s7486_s27 + $0x190] sm:$0xff] }
  0x19   : > { %v7190_v40 = vld [vmem:[%s7486_s27 + $0x40] sm:$0xff]  ;;  %v7205_v41 = vld [vmem:[%s7486_s27 + $0xb8] sm:$0xff]  ;;  %v7219_v42 = vld [vmem:[%s7486_s27 + $0x128] sm:$0xff] }
  0x1a   : > { %v7233_v43 = vld [vmem:[%s7486_s27 + $0x198] sm:$0xff]  ;;  %v7191_v44 = vld [vmem:[%s7486_s27 + $0x48] sm:$0xff]  ;;  %v7206_v45 = vld [vmem:[%s7486_s27 + $0xc0] sm:$0xff] }
  0x1b   : > { %v7220_v46 = vld [vmem:[%s7486_s27 + $0x130] sm:$0xff]  ;;  %v7234_v48 = vld [vmem:[%s7486_s27 + $0x1a0] sm:$0xff]  ;;  %v7207_v57 = vld [vmem:[%s7486_s27 + $0xc8] sm:$0xff] }
  0x1c   : > { %v7192_v49 = vld [vmem:[%s7486_s27 + $0x50] sm:$0xff]  ;;  %v7221_v58 = vld [vmem:[%s7486_s27 + $0x138] sm:$0xff]  ;;  %v7235_v60 = vld [vmem:[%s7486_s27 + $0x1a8] sm:$0xff] }
  0x1d   : > { %v7193_v61 = vld [vmem:[%s7486_s27 + $0x58] sm:$0xff]  ;;  %v7208_v5 = vld [vmem:[%s7486_s27 + $0xd0] sm:$0xff]  ;;  %v7222_v6 = vld [vmem:[%s7486_s27 + $0x140] sm:$0xff] }
  0x1e   : > { %v7236_v8 = vld [vmem:[%s7486_s27 + $0x1b0] sm:$0xff]  ;;  %v7194_v9 = vld [vmem:[%s7486_s27 + $0x60] sm:$0xff] }
  0x23   : > { %5605 = vmatmul.msk.bf16.gmra.mxu1 %vm687_vm2, %v7199_v17  ;;  %5619 = vmatmul.msk.bf16.gmra.mxu2 %vm687_vm2, %v7213_v18  ;;  %v7209_v17 = vld [vmem:[%s7486_s27 + $0xd8] sm:$0xff]  ;;  %v7223_v18 = vld [vmem:[%s7486_s27 + $0x148] sm:$0xff] }
  0x24   : > { %5633 = vmatmul.msk.bf16.gmra.mxu3 %vm687_vm2, %v7227_v19 }
  0x25   : > { %5591 = vmatmul.msk.bf16.gmra.mxu0 %vm687_vm2, %v7185_v20  ;;  %v7237_v20 = vld [vmem:[%s7486_s27 + $0x1b8] sm:$0xff] }
  0x33   : > { %5606 = vmatmul.msk.bf16.gmra.mxu1 %vm687_vm2, %v7200_v21  ;;  %5620 = vmatmul.msk.bf16.gmra.mxu2 %vm687_vm2, %v7214_v22  ;;  %v7195_v21 = vld [vmem:[%s7486_s27 + $0x68] sm:$0xff] }
  0x34   : > { %5634 = vmatmul.msk.bf16.gmra.mxu3 %vm687_vm2, %v7228_v23 }
  0x35   : > { %5592 = vmatmul.msk.bf16.gmra.mxu0 %vm687_vm2, %v7186_v24 }
  0x43   : > { %5607 = vmatmul.msk.bf16.gmra.mxu1 %vm687_vm2, %v7201_v25  ;;  %5621 = vmatmul.msk.bf16.gmra.mxu2 %vm687_vm2, %v7215_v26 }
  0x44   : > { %5635 = vmatmul.msk.bf16.gmra.mxu3 %vm687_vm2, %v7229_v27 }
  0x45   : > { %5593 = vmatmul.msk.bf16.gmra.mxu0 %vm687_vm2, %v7187_v28 }
  0x53   : > { %5608 = vmatmul.msk.bf16.gmra.mxu1 %vm687_vm2, %v7202_v29  ;;  %5622 = vmatmul.msk.bf16.gmra.mxu2 %vm687_vm2, %v7216_v30  ;;  %v7210_v29 = vld [vmem:[%s7486_s27 + $0xe0] sm:$0xff]  ;;  %v7224_v30 = vld [vmem:[%s7486_s27 + $0x150] sm:$0xff] }
  0x54   : > { %5636 = vmatmul.msk.bf16.gmra.mxu3 %vm687_vm2, %v7230_v31 }
  0x55   : > { %5594 = vmatmul.msk.bf16.gmra.mxu0 %vm687_vm2, %v7188_v32  ;;  %v7238_v32 = vld [vmem:[%s7486_s27 + $0x1c0] sm:$0xff] }
  0x63   : > { %5609 = vmatmul.msk.bf16.gmra.mxu1 %vm687_vm2, %v7203_v33  ;;  %5623 = vmatmul.msk.bf16.gmra.mxu2 %vm687_vm2, %v7217_v34  ;;  %v7196_v33 = vld [vmem:[%s7486_s27 + $0x70] sm:$0xff] }
  0x64   : > { %5637 = vmatmul.msk.bf16.gmra.mxu3 %vm687_vm2, %v7231_v35 }
  0x65   : > { %5595 = vmatmul.msk.bf16.gmra.mxu0 %vm687_vm2, %v7189_v36 }
  0x73   : > { %5610 = vmatmul.msk.bf16.gmra.mxu1 %vm687_vm2, %v7204_v37  ;;  %5624 = vmatmul.msk.bf16.gmra.mxu2 %vm687_vm2, %v7218_v38 }
  0x74   : > { %5638 = vmatmul.msk.bf16.gmra.mxu3 %vm687_vm2, %v7232_v39 }
  0x75   : > { %5596 = vmatmul.msk.bf16.gmra.mxu0 %vm687_vm2, %v7190_v40 }
  0x83   : > { %5611 = vmatmul.msk.bf16.gmra.mxu1 %vm687_vm2, %v7205_v41  ;;  %5625 = vmatmul.msk.bf16.gmra.mxu2 %vm687_vm2, %v7219_v42  ;;  %v7211_v41 = vld [vmem:[%s7486_s27 + $0xe8] sm:$0xff]  ;;  %v7225_v42 = vld [vmem:[%s7486_s27 + $0x158] sm:$0xff] }
  0x84   : > { %5639 = vmatmul.msk.bf16.gmra.mxu3 %vm687_vm2, %v7233_v43 }
  0x85   : > { %5597 = vmatmul.msk.bf16.gmra.mxu0 %vm687_vm2, %v7191_v44  ;;  %v7239_v44 = vld [vmem:[%s7486_s27 + $0x1c8] sm:$0xff] }
  0x90   : > { %v7554_v47 = vpop.f32.mrf.mxu1 }
  0x92   : > { %v7558_v50 = vpop.f32.mrf.mxu0 }
  0x93   : > { %5612 = vmatmul.msk.bf16.gmra.mxu1 %vm687_vm2, %v7206_v45  ;;  %5626 = vmatmul.msk.bf16.gmra.mxu2 %vm687_vm2, %v7220_v46  ;;  %v7197_v45 = vld [vmem:[%s7486_s27 + $0x78] sm:$0xff] }
  0x94   : > { %5640 = vmatmul.msk.bf16.gmra.mxu3 %vm687_vm2, %v7234_v48 }
  0x95   : > { %5598 = vmatmul.msk.bf16.gmra.mxu0 %vm687_vm2, %v7192_v49 }
  0x96   : > { %v7564_v51 = vpop.f32.mrf.mxu2 }
  0x97   : > { %8757 = vst [vmem:[#allocation2_spill] sm:$0xff] %v7564_v51  ;;  %v7566_v52 = vpop.f32.mrf.mxu3 }
  0x98   : > { %8758 = vst [vmem:[#allocation3_spill] sm:$0xff] %v7566_v52  ;;  %v7568_v53 = vpop.f32.mrf.mxu1 }
  0x99   : > { %8759 = vst [vmem:[#allocation4_spill] sm:$0xff] %v7568_v53 }
  0x9a   : > { %v7570_v54 = vpop.f32.mrf.mxu0 }
  0x9e   : > { %v7572_v55 = vpop.f32.mrf.mxu2 }
  0x9f   : > { %8760 = vst [vmem:[#allocation5_spill] sm:$0xff] %v7572_v55  ;;  %v7574_v56 = vpop.f32.mrf.mxu3 }
  0xa0   : > { %8761 = vst [vmem:[#allocation6_spill] sm:$0xff] %v7574_v56  ;;  %v7578_v59 = vpop.f32.mrf.mxu1 }
  0xa1   : > { %8762 = vst [vmem:[#allocation7_spill] sm:$0xff] %v7578_v59  ;;  %v7309_v59 = vld [vmem:[%s7486_s27 + $0x88] sm:$0xff] }
  0xa2   : > { %v7582_v62 = vpop.f32.mrf.mxu0 }
  0xa3   : > { %5613 = vmatmul.msk.bf16.gmra.mxu1 %vm687_vm2, %v7207_v57  ;;  %5627 = vmatmul.msk.bf16.gmra.mxu2 %vm687_vm2, %v7221_v58 }
  0xa4   : > { %5641 = vmatmul.msk.bf16.gmra.mxu3 %vm687_vm2, %v7235_v60 }
  0xa5   : > { %5599 = vmatmul.msk.bf16.gmra.mxu0 %vm687_vm2, %v7193_v61 }
  0xa6   : > { %v7588_v63 = vpop.f32.mrf.mxu2 }
  0xa7   : > { %8763 = vst [vmem:[#allocation8_spill] sm:$0xff] %v7588_v63  ;;  %v7590_v0 = vpop.f32.mrf.mxu3 }
  0xa8   : > { %8764 = vst [vmem:[#allocation9_spill] sm:$0xff] %v7590_v0  ;;  %v7592_v1 = vpop.f32.mrf.mxu1 }
  0xa9   : > { %8765 = vst [vmem:[#allocation10_spill] sm:$0xff] %v7592_v1  ;;  %v7252_v1 = vld [vmem:[%s7486_s27 + $0x78] sm:$0xff] }
  0xaa   : > { %v7594_v2 = vpop.f32.mrf.mxu0 }
  0xae   : > { %v7596_v3 = vpop.f32.mrf.mxu2 }
  0xaf   : > { %8766 = vst [vmem:[#allocation11_spill] sm:$0xff] %v7596_v3  ;;  %v7598_v4 = vpop.f32.mrf.mxu3 }
  0xb0   : > { %8767 = vst [vmem:[#allocation12_spill] sm:$0xff] %v7598_v4  ;;  %v7602_v7 = vpop.f32.mrf.mxu1  ;;  %v7130_v4 = vld [vmem:[%s7486_s27 + $0x18] sm:$0xff] }
  0xb1   : > { %8768 = vst [vmem:[#allocation13_spill] sm:$0xff] %v7602_v7 }
  0xb2   : > { %v7606_v10 = vpop.f32.mrf.mxu0 }
  0xb3   : > { %5614 = vmatmul.msk.bf16.gmra.mxu1 %vm687_vm2, %v7208_v5  ;;  %5628 = vmatmul.msk.bf16.gmra.mxu2 %vm687_vm2, %v7222_v6  ;;  %v7127_v5 = vld [vmem:[%s7486_s27] sm:$0xff] }
  0xb4   : > { %5642 = vmatmul.msk.bf16.gmra.mxu3 %vm687_vm2, %v7236_v8  ;;  %v7241_v6 = vld [vmem:[%s7486_s27 + $0x20] sm:$0xff] }
  0xb5   : > { %5600 = vmatmul.msk.bf16.gmra.mxu0 %vm687_vm2, %v7194_v9  ;;  %v7298_v9 = vld [vmem:[%s7486_s27 + $0x30] sm:$0xff] }
  0xb6   : > { %v7612_v11 = vpop.f32.mrf.mxu2 }
  0xb7   : > { %8769 = vst [vmem:[#allocation14_spill] sm:$0xff] %v7612_v11  ;;  %v7614_v12 = vpop.f32.mrf.mxu3 }
  0xb8   : > { %8770 = vst [vmem:[#allocation15_spill] sm:$0xff] %v7614_v12  ;;  %v7616_v13 = vpop.f32.mrf.mxu1 }
  0xb9   : > { %8771 = vst [vmem:[#allocation16_spill] sm:$0xff] %v7616_v13 }
  0xba   : > { %v7618_v14 = vpop.f32.mrf.mxu0 }
  0xbe   : > { %v7620_v15 = vpop.f32.mrf.mxu2 }
  0xbf   : > { %8772 = vst [vmem:[#allocation17_spill] sm:$0xff] %v7620_v15  ;;  %v7622_v16 = vpop.f32.mrf.mxu3  ;;  %v7134_v15 = vld [vmem:[%s7486_s27 + $0x38] sm:$0xff] }
  0xc0   : > { %8773 = vst [vmem:[#allocation18_spill] sm:$0xff] %v7622_v16  ;;  %v7626_v19 = vpop.f32.mrf.mxu1 }
  0xc1   : > { %8774 = vst [vmem:[#allocation19_spill] sm:$0xff] %v7626_v19 }
  0xc2   : > { %v7630_v22 = vpop.f32.mrf.mxu0 }
  0xc3   : > { %5615 = vmatmul.msk.bf16.gmra.mxu1 %vm687_vm2, %v7209_v17  ;;  %5629 = vmatmul.msk.bf16.gmra.mxu2 %vm687_vm2, %v7223_v18  ;;  %v7355_v17 = vld [vmem:[%s7486_s27 + $0x40] sm:$0xff] }
  0xc4   : > { %5643 = vmatmul.msk.bf16.gmra.mxu3 %vm687_vm2, %v7237_v20 }
  0xc5   : > { %5601 = vmatmul.msk.bf16.gmra.mxu0 %vm687_vm2, %v7195_v21 }
  0xc6   : > { %v7636_v23 = vpop.f32.mrf.mxu2 }
  0xc7   : > { %8775 = vst [vmem:[#allocation20_spill] sm:$0xff] %v7636_v23  ;;  %v7638_v24 = vpop.f32.mrf.mxu3 }
  0xc8   : > { %8776 = vst [vmem:[#allocation21_spill] sm:$0xff] %v7638_v24  ;;  %v7640_v25 = vpop.f32.mrf.mxu1 }
  0xc9   : > { %8777 = vst [vmem:[#allocation22_spill] sm:$0xff] %v7640_v25 }
  0xca   : > { %v7642_v26 = vpop.f32.mrf.mxu0 }
  0xce   : > { %v7644_v27 = vpop.f32.mrf.mxu2 }
  0xcf   : > { %8778 = vst [vmem:[#allocation23_spill] sm:$0xff] %v7644_v27  ;;  %v7646_v28 = vpop.f32.mrf.mxu3  ;;  %v7133_v27 = vld [vmem:[%s7486_s27 + $0x30] sm:$0xff] }
  0xd0   : > { %8779 = vst [vmem:[#allocation24_spill] sm:$0xff] %v7646_v28  ;;  %v7650_v31 = vpop.f32.mrf.mxu1  ;;  %v7129_v28 = vld [vmem:[%s7486_s27 + $0x10] sm:$0xff] }
  0xd1   : > { %8780 = vst [vmem:[#allocation25_spill] sm:$0xff] %v7650_v31 }
  0xd2   : > { %v7654_v34 = vpop.f32.mrf.mxu0 }
  0xd3   : > { %5616 = vmatmul.msk.bf16.gmra.mxu1 %vm687_vm2, %v7210_v29  ;;  %5630 = vmatmul.msk.bf16.gmra.mxu2 %vm687_vm2, %v7224_v30 }
  0xd4   : > { %5644 = vmatmul.msk.bf16.gmra.mxu3 %vm687_vm2, %v7238_v32 }
  0xd5   : > { %5602 = vmatmul.msk.bf16.gmra.mxu0 %vm687_vm2, %v7196_v33 }
  0xd6   : > { %v7660_v35 = vpop.f32.mrf.mxu2 }
  0xd7   : > { %8781 = vst [vmem:[#allocation26_spill] sm:$0xff] %v7660_v35  ;;  %v7662_v36 = vpop.f32.mrf.mxu3 }
  0xd8   : > { %8782 = vst [vmem:[#allocation27_spill] sm:$0xff] %v7662_v36  ;;  %v7664_v37 = vpop.f32.mrf.mxu1 }
  0xd9   : > { %8783 = vst [vmem:[#allocation28_spill] sm:$0xff] %v7664_v37 }
  0xda   : > { %v7666_v38 = vpop.f32.mrf.mxu0 }
  0xde   : > { %v7668_v39 = vpop.f32.mrf.mxu2 }
  0xdf   : > { %8784 = vst [vmem:[#allocation29_spill] sm:$0xff] %v7668_v39  ;;  %v7670_v40 = vpop.f32.mrf.mxu3 }
  0xe0   : > { %8785 = vst [vmem:[#allocation30_spill] sm:$0xff] %v7670_v40  ;;  %v7674_v43 = vpop.f32.mrf.mxu1 }
  0xe1   : > { %8786 = vst [vmem:[#allocation31_spill] sm:$0xff] %v7674_v43 }
  0xe2   : > { %v7678_v46 = vpop.f32.mrf.mxu0 }
  0xe3   : > { %5617 = vmatmul.msk.bf16.gmra.mxu1 %vm687_vm2, %v7211_v41  ;;  %5631 = vmatmul.msk.bf16.gmra.mxu2 %vm687_vm2, %v7225_v42  ;;  %v7128_v41 = vld [vmem:[%s7486_s27 + $0x8] sm:$0xff] }
  0xe4   : > { %5645 = vmatmul.msk.bf16.gmra.mxu3 %vm687_vm2, %v7239_v44  ;;  %v7242_v42 = vld [vmem:[%s7486_s27 + $0x28] sm:$0xff] }
  0xe5   : > { %5603 = vmatmul.msk.bf16.gmra.mxu0 %vm687_vm2, %v7197_v45  ;;  %v7299_v45 = vld [vmem:[%s7486_s27 + $0x38] sm:$0xff] }
  0xe6   : > { %v7684_v48 = vpop.f32.mrf.mxu2 }
  0xe7   : > { %8787 = vst [vmem:[#allocation32_spill] sm:$0xff] %v7684_v48  ;;  %v7686_v49 = vpop.f32.mrf.mxu3 }
  0xe8   : > { %8788 = vst [vmem:[#allocation33_spill] sm:$0xff] %v7686_v49  ;;  %v7688_v57 = vpop.f32.mrf.mxu1 }
  0xe9   : > { %8789 = vst [vmem:[#allocation34_spill] sm:$0xff] %v7688_v57  ;;  %v7365_v57 = vld [vmem:[%s7486_s27 + $0x90] sm:$0xff] }
  0xea   : > { %v7690_v58 = vpop.f32.mrf.mxu0 }
  0xee   : > { %v7692_v60 = vpop.f32.mrf.mxu2 }
  0xef   : > { %8790 = vst [vmem:[#allocation35_spill] sm:$0xff] %v7692_v60  ;;  %v7694_v61 = vpop.f32.mrf.mxu3 }
  0xf0   : > { %8791 = vst [vmem:[#allocation36_spill] sm:$0xff] %v7694_v61  ;;  %v7698_v8 = vpop.f32.mrf.mxu1 }
  0xf1   : > { %8792 = vst [vmem:[#allocation37_spill] sm:$0xff] %v7698_v8 }
  0xf2   : > { %v7702_v18 = vpop.f32.mrf.mxu0 }
  0xf3   : > { %5874 = vmatmul.msk.bf16.vlgmr.msrb.gmra.mxu1 %vm687_vm2, %v7127_v5  ;;  %6272 = vmatmul.msk.bf16.vlgmr.msrb.gmra.mxu2 %vm687_vm2, %v7241_v6  ;;  %v7356_v5 = vld [vmem:[%s7486_s27 + $0x48] sm:$0xff] }
  0xf4   : > { %6670 = vmatmul.msk.bf16.vlgmr.msrb.gmra.mxu3 %vm687_vm2, %v7298_v9 }
  0xf5   : > { %7068 = vmatmul.msk.bf16.vlgmr.msrb.gmra.mxu0 %vm687_vm2, %v7355_v17 }
  0xf6   : > { %v7708_v20 = vpop.f32.mrf.mxu2 }
  0xf7   : > { %8793 = vst [vmem:[#allocation38_spill] sm:$0xff] %v7708_v20  ;;  %v7710_v21 = vpop.f32.mrf.mxu3 }
  0xf8   : > { %8794 = vst [vmem:[#allocation39_spill] sm:$0xff] %v7710_v21  ;;  %v7712_v29 = vpop.f32.mrf.mxu1 }
  0xf9   : > { %8795 = vst [vmem:[#allocation40_spill] sm:$0xff] %v7712_v29 }
  0xfa   : > { %v7714_v30 = vpop.f32.mrf.mxu0 }
  0xfe   : > { %v7716_v32 = vpop.f32.mrf.mxu2 }
  0xff   : > { %8796 = vst [vmem:[#allocation41_spill] sm:$0xff] %v7716_v32  ;;  %v7718_v33 = vpop.f32.mrf.mxu3  ;;  %v7132_v32 = vld [vmem:[%s7486_s27 + $0x28] sm:$0xff] }
 0x100   : > { %8797 = vst [vmem:[#allocation42_spill] sm:$0xff] %v7718_v33  ;;  %v7722_v44 = vpop.f32.mrf.mxu1 }
 0x101   : > { %8798 = vst [vmem:[#allocation43_spill] sm:$0xff] %v7722_v44  ;;  %v7251_v44 = vld [vmem:[%s7486_s27 + $0x70] sm:$0xff] }
 0x102   : > { %v7726_v6 = vpop.f32.mrf.mxu0 }
 0x103   : > { %5875 = vmatmul.msk.bf16.gmra.mxu1 %vm687_vm2, %v7128_v41  ;;  %6273 = vmatmul.msk.bf16.gmra.mxu2 %vm687_vm2, %v7242_v42  ;;  %v7243_v41 = vld [vmem:[%s7486_s27 + $0x30] sm:$0xff] }
 0x104   : > { %6671 = vmatmul.msk.bf16.gmra.mxu3 %vm687_vm2, %v7299_v45  ;;  %v7300_v45 = vld [vmem:[%s7486_s27 + $0x40] sm:$0xff] }
 0x105   : > { %7069 = vmatmul.msk.bf16.gmra.mxu0 %vm687_vm2, %v7356_v5  ;;  %v7357_v5 = vld [vmem:[%s7486_s27 + $0x50] sm:$0xff] }
 0x106   : > { %v7732_v9 = vpop.f32.mrf.mxu2 }
 0x107   : > { %8799 = vst [vmem:[#allocation44_spill] sm:$0xff] %v7732_v9  ;;  %v7734_v17 = vpop.f32.mrf.mxu3 }
 0x108   : > { %8800 = vst [vmem:[#allocation45_spill] sm:$0xff] %v7734_v17  ;;  %v7736_v33 = vpop.f32.mrf.mxu1 }
 0x109   : > { %8801 = vst [vmem:[#allocation46_spill] sm:$0xff] %v7736_v33 }
 0x10a   : > { %v7738_v21 = vpop.f32.mrf.mxu0 }
 0x10e   : > { %v7740_v61 = vpop.f32.mrf.mxu2 }
 0x10f   : > { %8802 = vst [vmem:[#allocation47_spill] sm:$0xff] %v7740_v61  ;;  %v7742_v49 = vpop.f32.mrf.mxu3  ;;  %v7131_v61 = vld [vmem:[%s7486_s27 + $0x20] sm:$0xff] }
 0x110   : > { %8803 = vst [vmem:[#allocation48_spill] sm:$0xff] %v7742_v49  ;;  %v7746_v42 = vpop.f32.mrf.mxu1 }
 0x111   : > { %8804 = vst [vmem:[#allocation49_spill] sm:$0xff] %v7746_v42  ;;  %v7308_v42 = vld [vmem:[%s7486_s27 + $0x80] sm:$0xff] }
 0x112   : > { %v7750_v16 = vpop.f32.mrf.mxu0 }
 0x113   : > { %5876 = vmatmul.msk.bf16.gmra.mxu1 %vm687_vm2, %v7129_v28  ;;  %6274 = vmatmul.msk.bf16.gmra.mxu2 %vm687_vm2, %v7243_v41  ;;  %v7244_v28 = vld [vmem:[%s7486_s27 + $0x38] sm:$0xff] }
 0x114   : > { %6672 = vmatmul.msk.bf16.gmra.mxu3 %vm687_vm2, %v7300_v45  ;;  %v7301_v45 = vld [vmem:[%s7486_s27 + $0x48] sm:$0xff] }
 0x115   : > { %7070 = vmatmul.msk.bf16.gmra.mxu0 %vm687_vm2, %v7357_v5  ;;  %v7358_v5 = vld [vmem:[%s7486_s27 + $0x58] sm:$0xff] }
 0x116   : > { %v7756_v49 = vpop.f32.mrf.mxu2 }
 0x117   : > { %8805 = vst [vmem:[#allocation50_spill] sm:$0xff] %v7756_v49  ;;  %v7758_v17 = vpop.f32.mrf.mxu3 }
 0x118   : > { %8806 = vst [vmem:[#allocation51_spill] sm:$0xff] %v7758_v17  ;;  %v7760_v40 = vpop.f32.mrf.mxu1 }
 0x119   : > { %8807 = vst [vmem:[#allocation52_spill] sm:$0xff] %v7760_v40  ;;  %v7137_v40 = vld [vmem:[%s7486_s27 + $0x50] sm:$0xff] }
 0x11a   : > { %v7762_v24 = vpop.f32.mrf.mxu0 }
 0x11e   : > { %v7764_v12 = vpop.f32.mrf.mxu2 }
 0x11f   : > { %8808 = vst [vmem:[#allocation53_spill] sm:$0xff] %v7764_v12  ;;  %v7766_v36 = vpop.f32.mrf.mxu3 }
 0x120   : > { %8809 = vst [vmem:[#allocation54_spill] sm:$0xff] %v7766_v36  ;;  %v7770_v41 = vpop.f32.mrf.mxu1 }
 0x121   : > { %8810 = vst [vmem:[#allocation55_spill] sm:$0xff] %v7770_v41 }
 0x122   : > { %v7774_v0 = vpop.f32.mrf.mxu0 }
 0x123   : > { %5877 = vmatmul.msk.bf16.gmra.mxu1 %vm687_vm2, %v7130_v4  ;;  %6275 = vmatmul.msk.bf16.gmra.mxu2 %vm687_vm2, %v7244_v28  ;;  %v7245_v4 = vld [vmem:[%s7486_s27 + $0x40] sm:$0xff] }
 0x124   : > { %6673 = vmatmul.msk.bf16.gmra.mxu3 %vm687_vm2, %v7301_v45  ;;  %v7302_v45 = vld [vmem:[%s7486_s27 + $0x50] sm:$0xff] }
 0x125   : > { %7071 = vmatmul.msk.bf16.gmra.mxu0 %vm687_vm2, %v7358_v5  ;;  %v7359_v5 = vld [vmem:[%s7486_s27 + $0x60] sm:$0xff] }
 0x126   : > { %v7780_v36 = vpop.f32.mrf.mxu2 }
 0x127   : > { %8811 = vst [vmem:[#allocation56_spill] sm:$0xff] %v7780_v36  ;;  %v7782_v17 = vpop.f32.mrf.mxu3 }
 0x128   : > { %8812 = vst [vmem:[#allocation57_spill] sm:$0xff] %v7782_v17  ;;  %v7784_v56 = vpop.f32.mrf.mxu1 }
 0x129   : > { %8813 = vst [vmem:[#allocation58_spill] sm:$0xff] %v7784_v56 }
 0x12a   : > { %v7786_v52 = vpop.f32.mrf.mxu0 }
 0x12e   : > { %v7788_v12 = vpop.f32.mrf.mxu2 }
 0x12f   : > { %8814 = vst [vmem:[#allocation59_spill] sm:$0xff] %v7788_v12  ;;  %v7790_v49 = vpop.f32.mrf.mxu3 }
 0x130   : > { %8815 = vst [vmem:[#allocation60_spill] sm:$0xff] %v7790_v49  ;;  %v7794_v28 = vpop.f32.mrf.mxu1 }
 0x131   : > { %8816 = vst [vmem:[#allocation61_spill] sm:$0xff] %v7794_v28 }
 0x132   : > { %v7798_v36 = vpop.f32.mrf.mxu0 }
 0x133   : > { %5878 = vmatmul.msk.bf16.gmra.mxu1 %vm687_vm2, %v7131_v61  ;;  %6276 = vmatmul.msk.bf16.gmra.mxu2 %vm687_vm2, %v7245_v4  ;;  %v7246_v61 = vld [vmem:[%s7486_s27 + $0x48] sm:$0xff] }
 0x134   : > { %6674 = vmatmul.msk.bf16.gmra.mxu3 %vm687_vm2, %v7302_v45  ;;  %v7303_v45 = vld [vmem:[%s7486_s27 + $0x58] sm:$0xff] }
 0x135   : > { %7072 = vmatmul.msk.bf16.gmra.mxu0 %vm687_vm2, %v7359_v5  ;;  %v7360_v5 = vld [vmem:[%s7486_s27 + $0x68] sm:$0xff] }
 0x136   : > { %v7804_v49 = vpop.f32.mrf.mxu2 }
 0x137   : > { %8817 = vst [vmem:[#allocation62_spill] sm:$0xff] %v7804_v49  ;;  %v7806_v17 = vpop.f32.mrf.mxu3 }
 0x138   : > { %8818 = vst [vmem:[#allocation63_spill] sm:$0xff] %v7806_v17  ;;  %v7808_v12 = vpop.f32.mrf.mxu1 }
 0x139   : > { %8819 = vst [vmem:[#allocation64_spill] sm:$0xff] %v7808_v12 }
 0x13a   : > { %v7810_v9 = vpop.f32.mrf.mxu0 }
 0x13e   : > { %v7812_v60 = vpop.f32.mrf.mxu2 }
 0x13f   : > { %8820 = vst [vmem:[#allocation65_spill] sm:$0xff] %v7812_v60  ;;  %v7814_v39 = vpop.f32.mrf.mxu3 }
 0x140   : > { %8821 = vst [vmem:[#allocation66_spill] sm:$0xff] %v7814_v39  ;;  %v7818_v4 = vpop.f32.mrf.mxu1 }
 0x141   : > { %8822 = vst [vmem:[#allocation67_spill] sm:$0xff] %v7818_v4  ;;  %v7250_v4 = vld [vmem:[%s7486_s27 + $0x68] sm:$0xff] }
 0x142   : > { %v7822_v49 = vpop.f32.mrf.mxu0 }
 0x143   : > { %5879 = vmatmul.msk.bf16.gmra.mxu1 %vm687_vm2, %v7132_v32  ;;  %6277 = vmatmul.msk.bf16.gmra.mxu2 %vm687_vm2, %v7246_v61  ;;  %v7247_v32 = vld [vmem:[%s7486_s27 + $0x50] sm:$0xff] }
 0x144   : > { %6675 = vmatmul.msk.bf16.gmra.mxu3 %vm687_vm2, %v7303_v45  ;;  %v7304_v45 = vld [vmem:[%s7486_s27 + $0x60] sm:$0xff] }
 0x145   : > { %7073 = vmatmul.msk.bf16.gmra.mxu0 %vm687_vm2, %v7360_v5  ;;  %v7361_v5 = vld [vmem:[%s7486_s27 + $0x70] sm:$0xff] }
 0x146   : > { %v7828_v39 = vpop.f32.mrf.mxu2 }
 0x147   : > { %8823 = vst [vmem:[#allocation68_spill] sm:$0xff] %v7828_v39  ;;  %v7830_v17 = vpop.f32.mrf.mxu3 }
 0x148   : > { %8824 = vst [vmem:[#allocation69_spill] sm:$0xff] %v7830_v17  ;;  %v7832_v60 = vpop.f32.mrf.mxu1 }
 0x149   : > { %8825 = vst [vmem:[#allocation70_spill] sm:$0xff] %v7832_v60 }
 0x14a   : > { %v7834_v48 = vpop.f32.mrf.mxu0 }
 0x14e   : > { %v7836_v35 = vpop.f32.mrf.mxu2 }
 0x14f   : > { %8826 = vst [vmem:[#allocation71_spill] sm:$0xff] %v7836_v35  ;;  %v7838_v20 = vpop.f32.mrf.mxu3 }
 0x150   : > { %8827 = vst [vmem:[#allocation72_spill] sm:$0xff] %v7838_v20  ;;  %v7842_v61 = vpop.f32.mrf.mxu1 }
 0x151   : > { %8828 = vst [vmem:[#allocation73_spill] sm:$0xff] %v7842_v61 }
 0x152   : > { %v7846_v39 = vpop.f32.mrf.mxu0 }
 0x153   : > { %8829 = vst [vmem:[#allocation74_spill] sm:$0xff] %v7846_v39  ;;  %5880 = vmatmul.msk.bf16.gmra.mxu1 %vm687_vm2, %v7133_v27  ;;  %6278 = vmatmul.msk.bf16.gmra.mxu2 %vm687_vm2, %v7247_v32  ;;  %v7248_v27 = vld [vmem:[%s7486_s27 + $0x58] sm:$0xff] }
 0x154   : > { %6676 = vmatmul.msk.bf16.gmra.mxu3 %vm687_vm2, %v7304_v45  ;;  %v7305_v45 = vld [vmem:[%s7486_s27 + $0x68] sm:$0xff] }
 0x155   : > { %7074 = vmatmul.msk.bf16.gmra.mxu0 %vm687_vm2, %v7361_v5  ;;  %v7362_v5 = vld [vmem:[%s7486_s27 + $0x78] sm:$0xff] }
 0x156   : > { %v7852_v20 = vpop.f32.mrf.mxu2 }
 0x157   : > { %8830 = vst [vmem:[#allocation75_spill] sm:$0xff] %v7852_v20  ;;  %v7854_v17 = vpop.f32.mrf.mxu3 }
 0x158   : > { %8831 = vst [vmem:[#allocation76_spill] sm:$0xff] %v7854_v17  ;;  %v7856_v35 = vpop.f32.mrf.mxu1 }
 0x159   : > { %8832 = vst [vmem:[#allocation77_spill] sm:$0xff] %v7856_v35  ;;  %v7136_v35 = vld [vmem:[%s7486_s27 + $0x48] sm:$0xff] }
 0x15a   : > { %v7858_v23 = vpop.f32.mrf.mxu0 }
 0x15b   : > { %8833 = vst [vmem:[#allocation78_spill] sm:$0xff] %v7858_v23 }
 0x15e   : > { %v7860_v3 = vpop.f32.mrf.mxu2 }
 0x15f   : > { %8834 = vst [vmem:[#allocation79_spill] sm:$0xff] %v7860_v3  ;;  %v7862_v55 = vpop.f32.mrf.mxu3 }
 0x160   : > { %8835 = vst [vmem:[#allocation80_spill] sm:$0xff] %v7862_v55  ;;  %v7866_v32 = vpop.f32.mrf.mxu1 }
 0x161   : > { %8836 = vst [vmem:[#allocation81_spill] sm:$0xff] %v7866_v32  ;;  %v7135_v32 = vld [vmem:[%s7486_s27 + $0x40] sm:$0xff] }
 0x162   : > { %v7870_v20 = vpop.f32.mrf.mxu0 }
 0x163   : > { %8837 = vst [vmem:[#allocation82_spill] sm:$0xff] %v7870_v20  ;;  %5881 = vmatmul.msk.bf16.gmra.mxu1 %vm687_vm2, %v7134_v15  ;;  %6279 = vmatmul.msk.bf16.gmra.mxu2 %vm687_vm2, %v7248_v27  ;;  %v7249_v15 = vld [vmem:[%s7486_s27 + $0x60] sm:$0xff] }
 0x164   : > { %6677 = vmatmul.msk.bf16.gmra.mxu3 %vm687_vm2, %v7305_v45  ;;  %v7306_v45 = vld [vmem:[%s7486_s27 + $0x70] sm:$0xff] }
 0x165   : > { %7075 = vmatmul.msk.bf16.gmra.mxu0 %vm687_vm2, %v7362_v5  ;;  %v7363_v5 = vld [vmem:[%s7486_s27 + $0x80] sm:$0xff] }
 0x166   : > { %v7876_v55 = vpop.f32.mrf.mxu2 }
 0x167   : > { %8838 = vst [vmem:[#allocation83_spill] sm:$0xff] %v7876_v55  ;;  %v7878_v17 = vpop.f32.mrf.mxu3 }
 0x168   : > { %8839 = vst [vmem:[#allocation84_spill] sm:$0xff] %v7878_v17  ;;  %v7880_v3 = vpop.f32.mrf.mxu1 }
 0x169   : > { %8840 = vst [vmem:[#allocation85_spill] sm:$0xff] %v7880_v3 }
 0x16a   : > { %v7882_v63 = vpop.f32.mrf.mxu0 }
 0x16b   : > { %8841 = vst [vmem:[#allocation86_spill] sm:$0xff] %v7882_v63  ;;  %v7366_v63 = vld [vmem:[%s7486_s27 + $0x98] sm:$0xff] }
 0x16e   : > { %v7884_v51 = vpop.f32.mrf.mxu2 }
 0x16f   : > { %8842 = vst [vmem:[#allocation87_spill] sm:$0xff] %v7884_v51  ;;  %v7886_v11 = vpop.f32.mrf.mxu3 }
 0x170   : > { %8843 = vst [vmem:[#allocation88_spill] sm:$0xff] %v7886_v11  ;;  %v1617_v27 = vpop.f32.mrf.mxu1 }
 0x171   : > { %v1618_v13 = vadd.f32 %v1617_v27, %v7558_v50 }
 0x172   : > { %v7892_v55 = vpop.f32.mrf.mxu0 }
 0x173   : > { %5882 = vmatmul.msk.bf16.gmra.mxu1 %vm687_vm2, %v7135_v32  ;;  %6280 = vmatmul.msk.bf16.gmra.mxu2 %vm687_vm2, %v7249_v15  ;;  %v7307_v32 = vld [vmem:[%s7486_s27 + $0x78] sm:$0xff]  ;;  %v7364_v15 = vld [vmem:[%s7486_s27 + $0x88] sm:$0xff] }
 0x174   : > { %6678 = vmatmul.msk.bf16.gmra.mxu3 %vm687_vm2, %v7306_v45 }
 0x175   : > { %7076 = vmatmul.msk.bf16.gmra.mxu0 %vm687_vm2, %v7363_v5 }
 0x176   : > { %v2478_v11 = vpop.f32.mrf.mxu2 }
 0x177   : > { %v3451_v17 = vpop.f32.mrf.mxu3  ;;  %v2758_v19 = vadd.f32 %v2478_v11, %v1618_v13 }
 0x178   : > { %v1619_v51 = vpop.f32.mrf.mxu1 }
 0x179   : > { %v3731_v20 = vadd.f32 %v3451_v17, %v2758_v19  ;;  %v1620_v50 = vadd.f32 %v1619_v51, %v7570_v54 }
 0x17a   : > { %v7898_v3 = vpop.f32.mrf.mxu0 }
 0x17e   : > { %v2480_v60 = vpop.f32.mrf.mxu2 }
 0x17f   : > { %v7900_v12 = vpop.f32.mrf.mxu3 }
 0x180   : > { %v1622_v28 = vpop.f32.mrf.mxu1 }
 0x182   : > { %v4429_v45 = vpop.f32.mrf.mxu0 }
 0x183   : > { %5883 = vmatmul.msk.bf16.gmra.mxu1 %vm687_vm2, %v7136_v35  ;;  %6281 = vmatmul.msk.bf16.gmra.mxu2 %vm687_vm2, %v7250_v4 }
 0x184   : > { %6679 = vmatmul.msk.bf16.gmra.mxu3 %vm687_vm2, %v7307_v32 }
 0x185   : > { %7077 = vmatmul.msk.bf16.gmra.mxu0 %vm687_vm2, %v7364_v15 }
 0x186   : > { %v2483_v5 = vpop.f32.mrf.mxu2 }
 0x187   : > { %v3456_v61 = vpop.f32.mrf.mxu3 }
 0x188   : > { %v1624_v56 = vpop.f32.mrf.mxu1 }
 0x18a   : > { %v7910_v41 = vpop.f32.mrf.mxu0 }
 0x18e   : > { %v2485_v33 = vpop.f32.mrf.mxu2 }
 0x18f   : > { %v3458_v29 = vpop.f32.mrf.mxu3 }
 0x190   : > { %v1627_v8 = vpop.f32.mrf.mxu1 }
 0x191   : > { %v1628_v25 = vadd.f32 %v1627_v8, %v7606_v10 }
 0x192   : > { %v4434_v43 = vpop.f32.mrf.mxu0 }
 0x193   : > { %5884 = vmatmul.msk.bf16.gmra.mxu1 %vm687_vm2, %v7137_v40  ;;  %6282 = vmatmul.msk.bf16.gmra.mxu2 %vm687_vm2, %v7251_v44  ;;  %v1623_v40 = vadd.f32 %v1622_v28, %v7582_v62  ;;  %v1625_v62 = vadd.f32 %v1624_v56, %v7594_v2 }
 0x194   : > { %6680 = vmatmul.msk.bf16.gmra.mxu3 %vm687_vm2, %v7308_v42  ;;  %v7138_v42 = vld [vmem:[%s7486_s27 + $0x58] sm:$0xff] }
 0x195   : > { %7078 = vmatmul.msk.bf16.gmra.mxu0 %vm687_vm2, %v7365_v57  ;;  %v2760_v7 = vadd.f32 %v2483_v5, %v1623_v40  ;;  %v2761_v54 = vadd.f32 %v2485_v33, %v1625_v62  ;;  %v7367_v40 = vld [vmem:[%s7486_s27 + $0xa0] sm:$0xff] }
 0x196   : > { %v2488_v35 = vpop.f32.mrf.mxu2 }
 0x197   : > { %v3461_v4 = vpop.f32.mrf.mxu3  ;;  %v2762_v37 = vadd.f32 %v2488_v35, %v1628_v25  ;;  %v3733_v39 = vadd.f32 %v3456_v61, %v2760_v7  ;;  %v4704_v7 = vadd.f32 %v7892_v55, %v3731_v20 }
 0x198   : > { %v1629_v32 = vpop.f32.mrf.mxu1 }
 0x199   : > { %v3735_v23 = vadd.f32 %v3461_v4, %v2762_v37  ;;  %v1630_v10 = vadd.f32 %v1629_v32, %v7618_v14  ;;  %v7939_v14 = vld [vmem:[%s8755_s2] ss:$0 sm:$0xff]  ;;  %v4706_v51 = vadd.f32 %v4429_v45, %v3733_v39 }
 0x19a   : > { %v4436_v15 = vpop.f32.mrf.mxu0  ;;  %v7139_v4 = vld [vmem:[%s7486_s27 + $0x60] sm:$0xff] }
 0x19b   : > { %v4708_v11 = vadd.f32 %v4434_v43, %v3735_v23  ;;  %v4822_v8 = vadd.f32 %v7939_v14, %v4706_v51 }
 0x19d   : > { %v4824_v56 = vadd.f32 %v7939_v14, %v4708_v11 }
 0x19e   : > { %v2490_v44 = vpop.f32.mrf.mxu2 }
 0x19f   : > { %v3463_v31 = vpop.f32.mrf.mxu3  ;;  %v2763_v13 = vadd.f32 %v2490_v44, %v1630_v10  ;;  %v4936_v20 = vmax.f32 %v4824_v56, 0.0 }
 0x1a0   : > { %v1632_v57 = vpop.f32.mrf.mxu1 }
 0x1a1   : > { %v1633_v25 = vadd.f32 %v1632_v57, %v7630_v22  ;;  %v3736_v2 = vadd.f32 %v3463_v31, %v2763_v13  ;;  %v4820_v22 = vadd.f32 %v7939_v14, %v4704_v7 }
 0x1a2   : > { %v4439_v53 = vpop.f32.mrf.mxu0 }
 0x1a3   : > { %5885 = vmatmul.msk.bf16.gmra.mxu1 %vm687_vm2, %v7138_v42  ;;  %6283 = vmatmul.msk.bf16.gmra.mxu2 %vm687_vm2, %v7252_v1  ;;  %v2759_v1 = vadd.f32 %v2480_v60, %v1620_v50  ;;  %v3734_v60 = vadd.f32 %v3458_v29, %v2761_v54  ;;  %v4709_v33 = vadd.f32 %v4436_v15, %v3736_v2  ;;  %v4932_v28 = vmax.f32 %v4820_v22, 0.0  ;;  %v7310_v15 = vld [vmem:[%s7486_s27 + $0x90] sm:$0xff] }
 0x1a4   : > { %6681 = vmatmul.msk.bf16.gmra.mxu3 %vm687_vm2, %v7309_v59 }
 0x1a5   : > { %7079 = vmatmul.msk.bf16.gmra.mxu0 %vm687_vm2, %v7366_v63  ;;  %v3732_v55 = vadd.f32 %v7900_v12, %v2759_v1  ;;  %v4934_v12 = vmax.f32 %v4822_v8, 0.0  ;;  %v4707_v45 = vadd.f32 %v7910_v41, %v3734_v60  ;;  %v5044_v44 = vmax.f32 %v4932_v28, %v4936_v20  ;;  %v7254_v8 = vld [vmem:[%s7486_s27 + $0x88] sm:$0xff] }
 0x1a6   : > { %v2493_v19 = vpop.f32.mrf.mxu2  ;;  %v7368_v20 = vld [vmem:[%s7486_s27 + $0xa8] sm:$0xff] }
 0x1a7   : > { %v2764_v59 = vadd.f32 %v2493_v19, %v1633_v25  ;;  %v3466_v37 = vpop.f32.mrf.mxu3  ;;  %v4705_v61 = vadd.f32 %v7898_v3, %v3732_v55  ;;  %v4823_v41 = vadd.f32 %v7939_v14, %v4707_v45  ;;  %v7140_v55 = vld [vmem:[%s7486_s27 + $0x68] sm:$0xff]  ;;  %v7141_v45 = vld [vmem:[%s7486_s27 + $0x70] sm:$0xff] }
 0x1a8   : > { %v1634_v63 = vpop.f32.mrf.mxu1 }
 0x1a9   : > { %v3737_v23 = vadd.f32 %v3466_v37, %v2764_v59  ;;  %v1635_v31 = vadd.f32 %v1634_v63, %v7642_v26  ;;  %v4825_v26 = vadd.f32 %v7939_v14, %v4709_v33  ;;  %v4821_v10 = vadd.f32 %v7939_v14, %v4705_v61 }
 0x1aa   : > { %v4441_v43 = vpop.f32.mrf.mxu0  ;;  %v4935_v19 = vmax.f32 %v4823_v41, 0.0 }
 0x1ab   : > { %v4710_v39 = vadd.f32 %v4439_v53, %v3737_v23  ;;  %v7253_v53 = vld [vmem:[%s7486_s27 + $0x80] sm:$0xff]  ;;  %v4937_v11 = vmax.f32 %v4825_v26, 0.0  ;;  %v4933_v1 = vmax.f32 %v4821_v10, 0.0 }
 0x1ad   : > { %v4826_v17 = vadd.f32 %v7939_v14, %v4710_v39  ;;  %v5045_v37 = vmax.f32 %v4933_v1, %v4937_v11  ;;  %v7311_v39 = vld [vmem:[%s7486_s27 + $0x98] sm:$0xff] }
 0x1ae   : > { %v2495_v27 = vpop.f32.mrf.mxu2  ;;  %v7256_v1 = vld [vmem:[%s7486_s27 + $0x98] sm:$0xff] }
 0x1af   : > { %v4938_v5 = vmax.f32 %v4826_v17, 0.0  ;;  %v2765_v35 = vadd.f32 %v2495_v27, %v1635_v31  ;;  %v3468_v29 = vpop.f32.mrf.mxu3 }
 0x1b0   : > { %v7952_v32 = vpop.f32.mrf.mxu1 }
 0x1b1   : > { %v5046_v42 = vmax.f32 %v4934_v12, %v4938_v5  ;;  %v3738_v57 = vadd.f32 %v3468_v29, %v2765_v35  ;;  %v7255_v5 = vld [vmem:[%s7486_s27 + $0x90] sm:$0xff]  ;;  %v7312_v29 = vld [vmem:[%s7486_s27 + $0xa0] sm:$0xff] }
 0x1b2   : > { %v7957_v3 = vpop.f32.mrf.mxu0 }
 0x1b3   : > { %v5100_v50 = vmax.f32 %v5044_v44, %v5046_v42  ;;  %v4711_v62 = vadd.f32 %v4441_v43, %v3738_v57  ;;  %5886 = vmatmul.msk.bf16.gmra.mxu1 %vm687_vm2, %v7139_v4  ;;  %6284 = vmatmul.msk.bf16.gmra.mxu2 %vm687_vm2, %v7253_v53  ;;  %v7369_v4 = vld [vmem:[%s7486_s27 + $0xb0] sm:$0xff]  ;;  %v1638_v57 = vadd.f32 %v7952_v32, %v7654_v34 }
 0x1b4   : > { %6682 = vmatmul.msk.bf16.gmra.mxu3 %vm687_vm2, %v7310_v15 }
 0x1b5   : > { %7080 = vmatmul.msk.bf16.gmra.mxu0 %vm687_vm2, %v7367_v40  ;;  %v5128_v13 = vpack.c.bf16 %v5100_v50, %v5100_v50  ;;  %v4827_v25 = vadd.f32 %v7939_v14, %v4711_v62 }
 0x1b6   : > { %v2498_v7 = vpop.f32.mrf.mxu2 }
 0x1b7   : > { %5157 = vst.msk [vmem:[%s7966_s6] sm:$0xf] %vm5156_vm3, %v5128_v13  ;;  %v4939_v51 = vmax.f32 %v4827_v25, 0.0  ;;  %v3471_v54 = vpop.f32.mrf.mxu3  ;;  %v2766_v50 = vadd.f32 %v2498_v7, %v1638_v57  ;;  %v7142_v25 = vld [vmem:[%s7486_s27 + $0x78] sm:$0xff] }
 0x1b8   : > { %v1639_v59 = vpop.f32.mrf.mxu1 }
 0x1b9   : > { %v5047_v63 = vmax.f32 %v4935_v19, %v4939_v51  ;;  %v7313_v51 = vld [vmem:[%s7486_s27 + $0xa8] sm:$0xff]  ;;  %v1640_v34 = vadd.f32 %v1639_v59, %v7666_v38 }
 0x1ba   : > { %v7973_v56 = vpop.f32.mrf.mxu0 }
 0x1bb   : > { %v5101_v2 = vmax.f32 %v5045_v37, %v5047_v63  ;;  %v7370_v37 = vld [vmem:[%s7486_s27 + $0xb8] sm:$0xff] }
 0x1bd   : > { %v5129_v23 = vpack.c.bf16 %v5101_v2, %v5101_v2 }
 0x1be   : > { %v2500_v43 = vpop.f32.mrf.mxu2 }
 0x1bf   : > { %5158 = vst.msk [vmem:[%s7966_s6 + $0x4] sm:$0xf] %vm5156_vm3, %v5129_v23  ;;  %v7977_v22 = vpop.f32.mrf.mxu3  ;;  %v3739_v23 = vadd.f32 %v3471_v54, %v2766_v50 }
 0x1c0   : > { %v1642_v60 = vpop.f32.mrf.mxu1 }
 0x1c1   : > { %v1643_v10 = vadd.f32 %v1642_v60, %v7678_v46  ;;  %v4712_v54 = vadd.f32 %v7957_v3, %v3739_v23  ;;  %v2767_v60 = vadd.f32 %v2500_v43, %v1640_v34 }
 0x1c2   : > { %v4449_v33 = vpop.f32.mrf.mxu0 }
 0x1c3   : > { %5887 = vmatmul.msk.bf16.gmra.mxu1 %vm687_vm2, %v7140_v55  ;;  %6285 = vmatmul.msk.bf16.gmra.mxu2 %vm687_vm2, %v7254_v8 }
 0x1c4   : > { %6683 = vmatmul.msk.bf16.gmra.mxu3 %vm687_vm2, %v7311_v39 }
 0x1c5   : > { %7081 = vmatmul.msk.bf16.gmra.mxu0 %vm687_vm2, %v7368_v20 }
 0x1c6   : > { %v2503_v17 = vpop.f32.mrf.mxu2 }
 0x1c7   : > { %v3476_v31 = vpop.f32.mrf.mxu3  ;;  %v2768_v11 = vadd.f32 %v2503_v17, %v1643_v10 }
 0x1c8   : > { %v1644_v28 = vpop.f32.mrf.mxu1 }
 0x1c9   : > { %v3741_v55 = vadd.f32 %v3476_v31, %v2768_v11  ;;  %v1645_v46 = vadd.f32 %v1644_v28, %v7690_v58  ;;  %v4828_v58 = vadd.f32 %v7939_v14, %v4712_v54  ;;  %v3740_v28 = vadd.f32 %v7977_v22, %v2767_v60 }
 0x1ca   : > { %v7987_v61 = vpop.f32.mrf.mxu0 }
 0x1cb   : > { %v4714_v39 = vadd.f32 %v4449_v33, %v3741_v55 }
 0x1ce   : > { %v2505_v27 = vpop.f32.mrf.mxu2 }
 0x1cf   : > { %v3478_v12 = vpop.f32.mrf.mxu3  ;;  %v2769_v20 = vadd.f32 %v2505_v27, %v1645_v46 }
 0x1d0   : > { %v1647_v35 = vpop.f32.mrf.mxu1 }
 0x1d1   : > { %v1648_v42 = vadd.f32 %v1647_v35, %v7702_v18  ;;  %v3742_v3 = vadd.f32 %v3478_v12, %v2769_v20  ;;  %v7143_v12 = vld [vmem:[%s7486_s27 + $0x80] sm:$0xff] }
 0x1d2   : > { %v4454_v53 = vpop.f32.mrf.mxu0 }
 0x1d3   : > { %5888 = vmatmul.msk.bf16.gmra.mxu1 %vm687_vm2, %v7141_v45  ;;  %6286 = vmatmul.msk.bf16.gmra.mxu2 %vm687_vm2, %v7255_v5  ;;  %v4715_v22 = vadd.f32 %v7987_v61, %v3742_v3 }
 0x1d4   : > { %6684 = vmatmul.msk.bf16.gmra.mxu3 %vm687_vm2, %v7312_v29 }
 0x1d5   : > { %7082 = vmatmul.msk.bf16.gmra.mxu0 %vm687_vm2, %v7369_v4  ;;  %v4831_v61 = vadd.f32 %v7939_v14, %v4715_v22 }
 0x1d6   : > { %v2508_v15 = vpop.f32.mrf.mxu2 }
 0x1d7   : > { %v3481_v40 = vpop.f32.mrf.mxu3  ;;  %v2770_v41 = vadd.f32 %v2508_v15, %v1648_v42  ;;  %v4713_v15 = vadd.f32 %v7973_v56, %v3740_v28 }
 0x1d8   : > { %v1649_v44 = vpop.f32.mrf.mxu1 }
 0x1d9   : > { %v3743_v63 = vadd.f32 %v3481_v40, %v2770_v41  ;;  %v1650_v18 = vadd.f32 %v1649_v44, %v7714_v30  ;;  %v7257_v41 = vld [vmem:[%s7486_s27 + $0xa0] sm:$0xff] }
 0x1da   : > { %v4456_v26 = vpop.f32.mrf.mxu0 }
 0x1db   : > { %v4716_v32 = vadd.f32 %v4454_v53, %v3743_v63  ;;  %v4940_v53 = vmax.f32 %v4828_v58, 0.0 }
 0x1dd   : > { %v4832_v38 = vadd.f32 %v7939_v14, %v4716_v32 }
 0x1de   : > { %v2510_v62 = vpop.f32.mrf.mxu2 }
 0x1df   : > { %v3483_v13 = vpop.f32.mrf.mxu3  ;;  %v2771_v7 = vadd.f32 %v2510_v62, %v1650_v18  ;;  %v4944_v33 = vmax.f32 %v4832_v38, 0.0  ;;  %v7314_v62 = vld [vmem:[%s7486_s27 + $0xb0] sm:$0xff]  ;;  %v4943_v18 = vmax.f32 %v4831_v61, 0.0  ;;  %v7315_v38 = vld [vmem:[%s7486_s27 + $0xb8] sm:$0xff]  ;;  %v7317_v61 = vld [vmem:[%s7486_s27 + $0xc8] sm:$0xff] }
 0x1e0   : > { %v1652_v19 = vpop.f32.mrf.mxu1 }
 0x1e1   : > { %v1653_v8 = vadd.f32 %v1652_v19, %v7726_v6  ;;  %v3744_v59 = vadd.f32 %v3483_v13, %v2771_v7  ;;  %v4830_v6 = vadd.f32 %v7939_v14, %v4714_v39  ;;  %v5048_v11 = vmax.f32 %v4940_v53, %v4944_v33  ;;  %v7145_v33 = vld [vmem:[%s7486_s27 + $0x90] sm:$0xff] }
 0x1e2   : > { %v4459_v2 = vpop.f32.mrf.mxu0  ;;  %v7373_v53 = vld [vmem:[%s7486_s27 + $0xd0] sm:$0xff] }
 0x1e3   : > { %5889 = vmatmul.msk.bf16.gmra.mxu1 %vm687_vm2, %v7142_v25  ;;  %6287 = vmatmul.msk.bf16.gmra.mxu2 %vm687_vm2, %v7256_v1  ;;  %v4717_v27 = vadd.f32 %v4456_v26, %v3744_v59  ;;  %v4942_v44 = vmax.f32 %v4830_v6, 0.0  ;;  %v7371_v26 = vld [vmem:[%s7486_s27 + $0xc0] sm:$0xff]  ;;  %v4829_v1 = vadd.f32 %v7939_v14, %v4713_v15  ;;  %v7372_v59 = vld [vmem:[%s7486_s27 + $0xc8] sm:$0xff] }
 0x1e4   : > { %6685 = vmatmul.msk.bf16.gmra.mxu3 %vm687_vm2, %v7313_v51 }
 0x1e5   : > { %7083 = vmatmul.msk.bf16.gmra.mxu0 %vm687_vm2, %v7370_v37  ;;  %v4833_v13 = vadd.f32 %v7939_v14, %v4717_v27  ;;  %v4941_v55 = vmax.f32 %v4829_v1, 0.0  ;;  %v7259_v27 = vld [vmem:[%s7486_s27 + $0xb0] sm:$0xff] }
 0x1e6   : > { %v2513_v30 = vpop.f32.mrf.mxu2 }
 0x1e7   : > { %v2772_v17 = vadd.f32 %v2513_v30, %v1653_v8  ;;  %v3486_v31 = vpop.f32.mrf.mxu3  ;;  %v4945_v37 = vmax.f32 %v4833_v13, 0.0 }
 0x1e8   : > { %v1654_v45 = vpop.f32.mrf.mxu1 }
 0x1e9   : > { %v3745_v5 = vadd.f32 %v3486_v31, %v2772_v17  ;;  %v1655_v4 = vadd.f32 %v1654_v45, %v7738_v21  ;;  %v5049_v7 = vmax.f32 %v4941_v55, %v4945_v37  ;;  %v7144_v17 = vld [vmem:[%s7486_s27 + $0x88] sm:$0xff] }
 0x1ea   : > { %v4461_v35 = vpop.f32.mrf.mxu0  ;;  %v7258_v31 = vld [vmem:[%s7486_s27 + $0xa8] sm:$0xff] }
 0x1eb   : > { %v4718_v43 = vadd.f32 %v4459_v2, %v3745_v5 }
 0x1ed   : > { %v4834_v29 = vadd.f32 %v7939_v14, %v4718_v43 }
 0x1ee   : > { %v2515_v40 = vpop.f32.mrf.mxu2 }
 0x1ef   : > { %v4946_v42 = vmax.f32 %v4834_v29, 0.0  ;;  %v2773_v57 = vadd.f32 %v2515_v40, %v1655_v4  ;;  %v3488_v10 = vpop.f32.mrf.mxu3  ;;  %v7316_v4 = vld [vmem:[%s7486_s27 + $0xc0] sm:$0xff] }
 0x1f0   : > { %v8024_v50 = vpop.f32.mrf.mxu1 }
 0x1f1   : > { %v5050_v21 = vmax.f32 %v4942_v44, %v4946_v42  ;;  %v3746_v25 = vadd.f32 %v3488_v10, %v2773_v57  ;;  %v1658_v10 = vadd.f32 %v8024_v50, %v7750_v16 }
 0x1f2   : > { %v8029_v56 = vpop.f32.mrf.mxu0 }
 0x1f3   : > { %v5102_v19 = vmax.f32 %v5048_v11, %v5050_v21  ;;  %v4719_v51 = vadd.f32 %v4461_v35, %v3746_v25  ;;  %5890 = vmatmul.msk.bf16.gmra.mxu1 %vm687_vm2, %v7143_v12  ;;  %6288 = vmatmul.msk.bf16.gmra.mxu2 %vm687_vm2, %v7257_v41  ;;  %v7146_v21 = vld [vmem:[%s7486_s27 + $0x98] sm:$0xff] }
 0x1f4   : > { %6686 = vmatmul.msk.bf16.gmra.mxu3 %vm687_vm2, %v7314_v62  ;;  %v7260_v25 = vld [vmem:[%s7486_s27 + $0xb8] sm:$0xff] }
 0x1f5   : > { %7084 = vmatmul.msk.bf16.gmra.mxu0 %vm687_vm2, %v7371_v26  ;;  %v5130_v63 = vpack.c.bf16 %v5102_v19, %v5102_v19  ;;  %v4835_v2 = vadd.f32 %v7939_v14, %v4719_v51  ;;  %v7374_v19 = vld [vmem:[%s7486_s27 + $0xd8] sm:$0xff] }
 0x1f6   : > { %v2518_v23 = vpop.f32.mrf.mxu2 }
 0x1f7   : > { %5159 = vst.msk [vmem:[%s7966_s6 + $0x8] sm:$0xf] %vm5156_vm3, %v5130_v63  ;;  %v4947_v34 = vmax.f32 %v4835_v2, 0.0  ;;  %v3491_v46 = vpop.f32.mrf.mxu3  ;;  %v2774_v62 = vadd.f32 %v2518_v23, %v1658_v10 }
 0x1f8   : > { %v1659_v32 = vpop.f32.mrf.mxu1 }
 0x1f9   : > { %v5051_v8 = vmax.f32 %v4943_v18, %v4947_v34  ;;  %v3747_v63 = vadd.f32 %v3491_v46, %v2774_v62 }
 0x1fa   : > { %v8040_v54 = vpop.f32.mrf.mxu0 }
 0x1fb   : > { %v5103_v60 = vmax.f32 %v5049_v7, %v5051_v8  ;;  %v4720_v18 = vadd.f32 %v8029_v56, %v3747_v63 }
 0x1fd   : > { %v5131_v30 = vpack.c.bf16 %v5103_v60, %v5103_v60 }
 0x1fe   : > { %v2520_v39 = vpop.f32.mrf.mxu2 }
 0x1ff   : > { %5160 = vst.msk [vmem:[%s7966_s6 + $0xc] sm:$0xf] %vm5156_vm3, %v5131_v30  ;;  %v8044_v20 = vpop.f32.mrf.mxu3 }
 0x200   : > { %v1662_v45 = vpop.f32.mrf.mxu1 }
 0x201   : > { %v1663_v12 = vadd.f32 %v1662_v45, %v7774_v0  ;;  %v1660_v0 = vadd.f32 %v1659_v32, %v7762_v24 }
 0x202   : > { %v4469_v5 = vpop.f32.mrf.mxu0 }
 0x203   : > { %5891 = vmatmul.msk.bf16.gmra.mxu1 %vm687_vm2, %v7144_v17  ;;  %6289 = vmatmul.msk.bf16.gmra.mxu2 %vm687_vm2, %v7258_v31  ;;  %v2775_v34 = vadd.f32 %v2520_v39, %v1660_v0 }
 0x204   : > { %6687 = vmatmul.msk.bf16.gmra.mxu3 %vm687_vm2, %v7315_v38 }
 0x205   : > { %7085 = vmatmul.msk.bf16.gmra.mxu0 %vm687_vm2, %v7372_v59  ;;  %v3748_v45 = vadd.f32 %v8044_v20, %v2775_v34  ;;  %v7376_v34 = vld [vmem:[%s7486_s27 + $0xe8] sm:$0xff] }
 0x206   : > { %v2523_v35 = vpop.f32.mrf.mxu2 }
 0x207   : > { %v3496_v58 = vpop.f32.mrf.mxu3  ;;  %v2776_v11 = vadd.f32 %v2523_v35, %v1663_v12 }
 0x208   : > { %v1664_v28 = vpop.f32.mrf.mxu1 }
 0x209   : > { %v3749_v2 = vadd.f32 %v3496_v58, %v2776_v11  ;;  %v1665_v16 = vadd.f32 %v1664_v28, %v7786_v52  ;;  %v4836_v52 = vadd.f32 %v7939_v14, %v4720_v18  ;;  %v4721_v28 = vadd.f32 %v8040_v54, %v3748_v45  ;;  %v7319_v18 = vld [vmem:[%s7486_s27 + $0xd8] sm:$0xff]  ;;  %v7377_v45 = vld [vmem:[%s7486_s27 + $0xf0] sm:$0xff] }
 0x20a   : > { %v8054_v6 = vpop.f32.mrf.mxu0 }
 0x20b   : > { %v4722_v46 = vadd.f32 %v4469_v5, %v3749_v2  ;;  %v4948_v58 = vmax.f32 %v4836_v52, 0.0  ;;  %v4837_v10 = vadd.f32 %v7939_v14, %v4721_v28  ;;  %v7320_v52 = vld [vmem:[%s7486_s27 + $0xe0] sm:$0xff] }
 0x20c   : > { %v8845_v28 = vld [vmem:[#allocation82_spill] sm:$0xff] }
 0x20e   : > { %v2525_v3 = vpop.f32.mrf.mxu2 }
 0x20f   : > { %v3498_v43 = vpop.f32.mrf.mxu3  ;;  %v2777_v7 = vadd.f32 %v2525_v3, %v1665_v16 }
 0x210   : > { %v1667_v29 = vpop.f32.mrf.mxu1 }
 0x211   : > { %v1668_v57 = vadd.f32 %v1667_v29, %v7798_v36  ;;  %v3750_v56 = vadd.f32 %v3498_v43, %v2777_v7  ;;  %v7147_v43 = vld [vmem:[%s7486_s27 + $0xa0] sm:$0xff] }
 0x212   : > { %v4474_v15 = vpop.f32.mrf.mxu0 }
 0x213   : > { %5892 = vmatmul.msk.bf16.gmra.mxu1 %vm687_vm2, %v7145_v33  ;;  %6290 = vmatmul.msk.bf16.gmra.mxu2 %vm687_vm2, %v7259_v27  ;;  %v4723_v20 = vadd.f32 %v8054_v6, %v3750_v56 }
 0x214   : > { %6688 = vmatmul.msk.bf16.gmra.mxu3 %vm687_vm2, %v7316_v4 }
 0x215   : > { %7086 = vmatmul.msk.bf16.gmra.mxu0 %vm687_vm2, %v7373_v53  ;;  %v7261_v53 = vld [vmem:[%s7486_s27 + $0xc0] sm:$0xff]  ;;  %v4839_v6 = vadd.f32 %v7939_v14, %v4723_v20 }
 0x216   : > { %v2528_v40 = vpop.f32.mrf.mxu2 }
 0x217   : > { %v3501_v44 = vpop.f32.mrf.mxu3  ;;  %v2778_v41 = vadd.f32 %v2528_v40, %v1668_v57  ;;  %v7318_v40 = vld [vmem:[%s7486_s27 + $0xd0] sm:$0xff] }
 0x218   : > { %v1669_v22 = vpop.f32.mrf.mxu1 }
 0x219   : > { %v3751_v51 = vadd.f32 %v3501_v44, %v2778_v41  ;;  %v1670_v36 = vadd.f32 %v1669_v22, %v7810_v9  ;;  %v7375_v44 = vld [vmem:[%s7486_s27 + $0xe0] sm:$0xff] }
 0x21a   : > { %v4476_v42 = vpop.f32.mrf.mxu0 }
 0x21b   : > { %v4724_v50 = vadd.f32 %v4474_v15, %v3751_v51 }
 0x21d   : > { %v4840_v24 = vadd.f32 %v7939_v14, %v4724_v50  ;;  %v7148_v50 = vld [vmem:[%s7486_s27 + $0xa8] sm:$0xff] }
 0x21e   : > { %v2530_v26 = vpop.f32.mrf.mxu2 }
 0x21f   : > { %v3503_v13 = vpop.f32.mrf.mxu3  ;;  %v2779_v23 = vadd.f32 %v2530_v26, %v1670_v36  ;;  %v4952_v38 = vmax.f32 %v4840_v24, 0.0 }
 0x220   : > { %v1672_v1 = vpop.f32.mrf.mxu1 }
 0x221   : > { %v1673_v55 = vadd.f32 %v1672_v1, %v7822_v49  ;;  %v3752_v32 = vadd.f32 %v3503_v13, %v2779_v23  ;;  %v4838_v49 = vadd.f32 %v7939_v14, %v4722_v46  ;;  %v5052_v22 = vmax.f32 %v4948_v58, %v4952_v38  ;;  %v7262_v23 = vld [vmem:[%s7486_s27 + $0xc8] sm:$0xff] }
 0x222   : > { %v4479_v37 = vpop.f32.mrf.mxu0 }
 0x223   : > { %5893 = vmatmul.msk.bf16.gmra.mxu1 %vm687_vm2, %v7146_v21  ;;  %6291 = vmatmul.msk.bf16.gmra.mxu2 %vm687_vm2, %v7260_v25  ;;  %v4725_v59 = vadd.f32 %v4476_v42, %v3752_v32  ;;  %v4950_v33 = vmax.f32 %v4838_v49, 0.0  ;;  %v4949_v21 = vmax.f32 %v4837_v10, 0.0  ;;  %v4951_v25 = vmax.f32 %v4839_v6, 0.0  ;;  %v7149_v32 = vld [vmem:[%s7486_s27 + $0xb0] sm:$0xff] }
 0x224   : > { %6689 = vmatmul.msk.bf16.gmra.mxu3 %vm687_vm2, %v7317_v61 }
 0x225   : > { %7087 = vmatmul.msk.bf16.gmra.mxu0 %vm687_vm2, %v7374_v19  ;;  %v4841_v42 = vadd.f32 %v7939_v14, %v4725_v59 }
 0x226   : > { %v2533_v9 = vpop.f32.mrf.mxu2 }
 0x227   : > { %v2780_v8 = vadd.f32 %v2533_v9, %v1673_v55  ;;  %v3506_v60 = vpop.f32.mrf.mxu3  ;;  %v4953_v62 = vmax.f32 %v4841_v42, 0.0 }
 0x228   : > { %v1674_v30 = vpop.f32.mrf.mxu1 }
 0x229   : > { %v3753_v17 = vadd.f32 %v3506_v60, %v2780_v8  ;;  %v1675_v35 = vadd.f32 %v1674_v30, %v7834_v48  ;;  %v5053_v51 = vmax.f32 %v4949_v21, %v4953_v62 }
 0x22a   : > { %v4481_v31 = vpop.f32.mrf.mxu0 }
 0x22b   : > { %v4726_v39 = vadd.f32 %v4479_v37, %v3753_v17  ;;  %v7263_v17 = vld [vmem:[%s7486_s27 + $0xd0] sm:$0xff] }
 0x22d   : > { %v4842_v5 = vadd.f32 %v7939_v14, %v4726_v39 }
 0x22e   : > { %v2535_v3 = vpop.f32.mrf.mxu2 }
 0x22f   : > { %v4954_v27 = vmax.f32 %v4842_v5, 0.0  ;;  %v2781_v29 = vadd.f32 %v2535_v3, %v1675_v35  ;;  %v3508_v4 = vpop.f32.mrf.mxu3  ;;  %v8844_v35 = vld [vmem:[#allocation74_spill] sm:$0xff] }
 0x230   : > { %v8091_v15 = vpop.f32.mrf.mxu1 }
 0x231   : > { %v5054_v48 = vmax.f32 %v4950_v33, %v4954_v27  ;;  %v3754_v57 = vadd.f32 %v3508_v4, %v2781_v29  ;;  %v1678_v58 = vadd.f32 %v8091_v15, %v8844_v35  ;;  %v8847_v15 = vld [vmem:[#allocation78_spill] sm:$0xff] }
 0x232   : > { %v8096_v54 = vpop.f32.mrf.mxu0 }
 0x233   : > { %v5104_v12 = vmax.f32 %v5052_v22, %v5054_v48  ;;  %v4727_v41 = vadd.f32 %v4481_v31, %v3754_v57  ;;  %5894 = vmatmul.msk.bf16.gmra.mxu1 %vm687_vm2, %v7147_v43  ;;  %6292 = vmatmul.msk.bf16.gmra.mxu2 %vm687_vm2, %v7261_v53  ;;  %v7150_v43 = vld [vmem:[%s7486_s27 + $0xb8] sm:$0xff] }
 0x234   : > { %6690 = vmatmul.msk.bf16.gmra.mxu3 %vm687_vm2, %v7318_v40  ;;  %v7264_v53 = vld [vmem:[%s7486_s27 + $0xd8] sm:$0xff] }
 0x235   : > { %7088 = vmatmul.msk.bf16.gmra.mxu0 %vm687_vm2, %v7375_v44  ;;  %v5132_v26 = vpack.c.bf16 %v5104_v12, %v5104_v12  ;;  %v4843_v11 = vadd.f32 %v7939_v14, %v4727_v41  ;;  %v7321_v44 = vld [vmem:[%s7486_s27 + $0xe8] sm:$0xff]  ;;  %v7378_v22 = vld [vmem:[%s7486_s27 + $0xf8] sm:$0xff]  ;;  %v8848_v41 = vld [vmem:[#allocation86_spill] sm:$0xff] }
 0x236   : > { %v2538_v13 = vpop.f32.mrf.mxu2 }
 0x237   : > { %5161 = vst.msk [vmem:[%s7966_s6 + $0x10] sm:$0xf] %vm5156_vm3, %v5132_v26  ;;  %v4955_v1 = vmax.f32 %v4843_v11, 0.0  ;;  %v3511_v61 = vpop.f32.mrf.mxu3  ;;  %v2782_v20 = vadd.f32 %v2538_v13, %v1678_v58  ;;  %v8849_v13 = vld [vmem:[#allocation7_spill] sm:$0xff]  ;;  %v7322_v58 = vld [vmem:[%s7486_s27 + $0xf0] sm:$0xff] }
 0x238   : > { %v1679_v19 = vpop.f32.mrf.mxu1 }
 0x239   : > { %v5055_v37 = vmax.f32 %v4951_v25, %v4955_v1  ;;  %v3755_v57 = vadd.f32 %v3511_v61, %v2782_v20  ;;  %v1680_v12 = vadd.f32 %v1679_v19, %v8847_v15 }
 0x23a   : > { %v8107_v63 = vpop.f32.mrf.mxu0 }
 0x23b   : > { %v5105_v2 = vmax.f32 %v5053_v51, %v5055_v37  ;;  %v4728_v25 = vadd.f32 %v8096_v54, %v3755_v57 }
 0x23d   : > { %v5133_v36 = vpack.c.bf16 %v5105_v2, %v5105_v2 }
 0x23e   : > { %v2540_v0 = vpop.f32.mrf.mxu2 }
 0x23f   : > { %5162 = vst.msk [vmem:[%s7966_s6 + $0x14] sm:$0xf] %vm5156_vm3, %v5133_v36  ;;  %v8111_v16 = vpop.f32.mrf.mxu3  ;;  %v2783_v1 = vadd.f32 %v2540_v0, %v1680_v12 }
 0x240   : > { %v1682_v55 = vpop.f32.mrf.mxu1 }
 0x241   : > { %v1683_v3 = vadd.f32 %v1682_v55, %v8845_v28 }
 0x242   : > { %v4489_v9 = vpop.f32.mrf.mxu0 }
 0x243   : > { %5895 = vmatmul.msk.bf16.gmra.mxu1 %vm687_vm2, %v7148_v50  ;;  %6293 = vmatmul.msk.bf16.gmra.mxu2 %vm687_vm2, %v7262_v23 }
 0x244   : > { %6691 = vmatmul.msk.bf16.gmra.mxu3 %vm687_vm2, %v7319_v18 }
 0x245   : > { %7089 = vmatmul.msk.bf16.gmra.mxu0 %vm687_vm2, %v7376_v34  ;;  %v4844_v34 = vadd.f32 %v7939_v14, %v4728_v25  ;;  %v7323_v25 = vld [vmem:[%s7486_s27 + $0xf8] sm:$0xff] }
 0x246   : > { %v2543_v46 = vpop.f32.mrf.mxu2 }
 0x247   : > { %v3516_v7 = vpop.f32.mrf.mxu3  ;;  %v2784_v29 = vadd.f32 %v2543_v46, %v1683_v3  ;;  %v3756_v46 = vadd.f32 %v8111_v16, %v2783_v1  ;;  %v7380_v1 = vld [vmem:[%s7486_s27 + $0x108] sm:$0xff] }
 0x248   : > { %v1684_v8 = vpop.f32.mrf.mxu1 }
 0x249   : > { %v3757_v10 = vadd.f32 %v3516_v7, %v2784_v29  ;;  %v1685_v62 = vadd.f32 %v1684_v8, %v8848_v41 }
 0x24a   : > { %v8121_v60 = vpop.f32.mrf.mxu0 }
 0x24b   : > { %v4730_v51 = vadd.f32 %v4489_v9, %v3757_v10 }
 0x24d   : > { %v4846_v7 = vadd.f32 %v7939_v14, %v4730_v51 }
 0x24e   : > { %v2545_v30 = vpop.f32.mrf.mxu2 }
 0x24f   : > { %v3518_v24 = vpop.f32.mrf.mxu3  ;;  %v2785_v37 = vadd.f32 %v2545_v30, %v1685_v62 }
 0x250   : > { %v1687_v31 = vpop.f32.mrf.mxu1 }
 0x251   : > { %v1688_v5 = vadd.f32 %v1687_v31, %v7554_v47  ;;  %v8846_v47 = vld [vmem:[#allocation4_spill] sm:$0xff]  ;;  %v3758_v54 = vadd.f32 %v3518_v24, %v2785_v37  ;;  %v4956_v31 = vmax.f32 %v4844_v34, 0.0  ;;  %v7151_v24 = vld [vmem:[%s7486_s27 + $0xc0] sm:$0xff] }
 0x252   : > { %v4494_v49 = vpop.f32.mrf.mxu0  ;;  %v7324_v34 = vld [vmem:[%s7486_s27 + $0x100] sm:$0xff] }
 0x253   : > { %5896 = vmatmul.msk.bf16.gmra.mxu1 %vm687_vm2, %v7149_v32  ;;  %6294 = vmatmul.msk.bf16.gmra.mxu2 %vm687_vm2, %v7263_v17  ;;  %v8850_v32 = vld [vmem:[#allocation10_spill] sm:$0xff]  ;;  %v4731_v16 = vadd.f32 %v8121_v60, %v3758_v54 }
 0x254   : > { %6692 = vmatmul.msk.bf16.gmra.mxu3 %vm687_vm2, %v7320_v52  ;;  %v4729_v52 = vadd.f32 %v8107_v63, %v3756_v46  ;;  %v7381_v46 = vld [vmem:[%s7486_s27 + $0x110] sm:$0xff] }
 0x255   : > { %7090 = vmatmul.msk.bf16.gmra.mxu0 %vm687_vm2, %v7377_v45  ;;  %v4847_v60 = vadd.f32 %v7939_v14, %v4731_v16 }
 0x256   : > { %v2548_v56 = vpop.f32.mrf.mxu2 }
 0x257   : > { %v3521_v39 = vpop.f32.mrf.mxu3  ;;  %v2786_v33 = vadd.f32 %v2548_v56, %v1688_v5  ;;  %v7265_v5 = vld [vmem:[%s7486_s27 + $0xe0] sm:$0xff] }
 0x258   : > { %v1689_v38 = vpop.f32.mrf.mxu1 }
 0x259   : > { %v3759_v42 = vadd.f32 %v3521_v39, %v2786_v33  ;;  %v1690_v6 = vadd.f32 %v1689_v38, %v8846_v47 }
 0x25a   : > { %v4496_v59 = vpop.f32.mrf.mxu0 }
 0x25b   : > { %v4732_v26 = vadd.f32 %v4494_v49, %v3759_v42  ;;  %v4958_v49 = vmax.f32 %v4846_v7, 0.0  ;;  %v4959_v42 = vmax.f32 %v4847_v60, 0.0  ;;  %v8854_v60 = vld [vmem:[#allocation28_spill] sm:$0xff] }
 0x25d   : > { %v4848_v19 = vadd.f32 %v7939_v14, %v4732_v26 }
 0x25e   : > { %v2550_v27 = vpop.f32.mrf.mxu2 }
 0x25f   : > { %v3523_v4 = vpop.f32.mrf.mxu3  ;;  %v2787_v11 = vadd.f32 %v2550_v27, %v1690_v6  ;;  %v4960_v9 = vmax.f32 %v4848_v19, 0.0  ;;  %v4845_v27 = vadd.f32 %v7939_v14, %v4729_v52  ;;  %v8853_v52 = vld [vmem:[#allocation19_spill] sm:$0xff] }
 0x260   : > { %v1692_v40 = vpop.f32.mrf.mxu1 }
 0x261   : > { %v1693_v21 = vadd.f32 %v1692_v40, %v8849_v13  ;;  %v3760_v23 = vadd.f32 %v3523_v4, %v2787_v11  ;;  %v5056_v28 = vmax.f32 %v4956_v31, %v4960_v9  ;;  %v7152_v11 = vld [vmem:[%s7486_s27 + $0xc8] sm:$0xff] }
 0x262   : > { %v4499_v48 = vpop.f32.mrf.mxu0  ;;  %v7266_v13 = vld [vmem:[%s7486_s27 + $0xe8] sm:$0xff] }
 0x263   : > { %5897 = vmatmul.msk.bf16.gmra.mxu1 %vm687_vm2, %v7150_v43  ;;  %6295 = vmatmul.msk.bf16.gmra.mxu2 %vm687_vm2, %v7264_v53  ;;  %v4733_v8 = vadd.f32 %v4496_v59, %v3760_v23  ;;  %v7379_v59 = vld [vmem:[%s7486_s27 + $0x100] sm:$0xff]  ;;  %v7153_v23 = vld [vmem:[%s7486_s27 + $0xd0] sm:$0xff] }
 0x264   : > { %6693 = vmatmul.msk.bf16.gmra.mxu3 %vm687_vm2, %v7321_v44 }
 0x265   : > { %7091 = vmatmul.msk.bf16.gmra.mxu0 %vm687_vm2, %v7378_v22  ;;  %v4849_v3 = vadd.f32 %v7939_v14, %v4733_v8  ;;  %v4957_v22 = vmax.f32 %v4845_v27, 0.0 }
 0x266   : > { %v2553_v61 = vpop.f32.mrf.mxu2 }
 0x267   : > { %v2788_v2 = vadd.f32 %v2553_v61, %v1693_v21  ;;  %v3526_v36 = vpop.f32.mrf.mxu3  ;;  %v4961_v43 = vmax.f32 %v4849_v3, 0.0 }
 0x268   : > { %v1694_v50 = vpop.f32.mrf.mxu1 }
 0x269   : > { %v3761_v55 = vadd.f32 %v3526_v36, %v2788_v2  ;;  %v1695_v17 = vadd.f32 %v1694_v50, %v8850_v32  ;;  %v5057_v47 = vmax.f32 %v4957_v22, %v4961_v43  ;;  %v8856_v43 = vld [vmem:[#allocation22_spill] sm:$0xff]  ;;  %v8857_v22 = vld [vmem:[#allocation31_spill] sm:$0xff] }
 0x26a   : > { %v4501_v18 = vpop.f32.mrf.mxu0 }
 0x26b   : > { %v4734_v0 = vadd.f32 %v4499_v48, %v3761_v55  ;;  %v7267_v55 = vld [vmem:[%s7486_s27 + $0xf0] sm:$0xff] }
 0x26d   : > { %v4850_v30 = vadd.f32 %v7939_v14, %v4734_v0 }
 0x26e   : > { %v2555_v45 = vpop.f32.mrf.mxu2 }
 0x26f   : > { %v4962_v56 = vmax.f32 %v4850_v30, 0.0  ;;  %v2789_v39 = vadd.f32 %v2555_v45, %v1695_v17  ;;  %v3528_v38 = vpop.f32.mrf.mxu3  ;;  %v8851_v30 = vld [vmem:[#allocation25_spill] sm:$0xff] }
 0x270   : > { %v8158_v35 = vpop.f32.mrf.mxu1  ;;  %v8852_v17 = vld [vmem:[#allocation13_spill] sm:$0xff] }
 0x271   : > { %v5058_v33 = vmax.f32 %v4958_v49, %v4962_v56  ;;  %v3762_v20 = vadd.f32 %v3528_v38, %v2789_v39  ;;  %v1698_v31 = vadd.f32 %v8158_v35, %v8852_v17  ;;  %v8855_v35 = vld [vmem:[#allocation16_spill] sm:$0xff] }
 0x272   : > { %v8163_v63 = vpop.f32.mrf.mxu0 }
 0x273   : > { %v5106_v29 = vmax.f32 %v5056_v28, %v5058_v33  ;;  %v4735_v4 = vadd.f32 %v4501_v18, %v3762_v20  ;;  %5898 = vmatmul.msk.bf16.gmra.mxu1 %vm687_vm2, %v7151_v24  ;;  %6296 = vmatmul.msk.bf16.gmra.mxu2 %vm687_vm2, %v7265_v5  ;;  %v7154_v24 = vld [vmem:[%s7486_s27 + $0xd8] sm:$0xff] }
 0x274   : > { %6694 = vmatmul.msk.bf16.gmra.mxu3 %vm687_vm2, %v7322_v58  ;;  %v7268_v5 = vld [vmem:[%s7486_s27 + $0xf8] sm:$0xff] }
 0x275   : > { %7092 = vmatmul.msk.bf16.gmra.mxu0 %vm687_vm2, %v7379_v59  ;;  %v5134_v53 = vpack.c.bf16 %v5106_v29, %v5106_v29  ;;  %v4851_v40 = vadd.f32 %v7939_v14, %v4735_v4  ;;  %v7325_v59 = vld [vmem:[%s7486_s27 + $0x108] sm:$0xff]  ;;  %v7382_v28 = vld [vmem:[%s7486_s27 + $0x118] sm:$0xff] }
 0x276   : > { %v2558_v44 = vpop.f32.mrf.mxu2 }
 0x277   : > { %5163 = vst.msk [vmem:[%s7966_s6 + $0x18] sm:$0xf] %vm5156_vm3, %v5134_v53  ;;  %v4963_v48 = vmax.f32 %v4851_v40, 0.0  ;;  %v3531_v57 = vpop.f32.mrf.mxu3  ;;  %v2790_v16 = vadd.f32 %v2558_v44, %v1698_v31  ;;  %v7326_v31 = vld [vmem:[%s7486_s27 + $0x110] sm:$0xff] }
 0x278   : > { %v1699_v10 = vpop.f32.mrf.mxu1 }
 0x279   : > { %v5059_v6 = vmax.f32 %v4959_v42, %v4963_v48  ;;  %v3763_v20 = vadd.f32 %v3531_v57, %v2790_v16  ;;  %v1700_v4 = vadd.f32 %v1699_v10, %v8855_v35 }
 0x27a   : > { %v8174_v15 = vpop.f32.mrf.mxu0 }
 0x27b   : > { %v5107_v12 = vmax.f32 %v5057_v47, %v5059_v6  ;;  %v4736_v48 = vadd.f32 %v8163_v63, %v3763_v20 }
 0x27d   : > { %v5135_v41 = vpack.c.bf16 %v5107_v12, %v5107_v12 }
 0x27e   : > { %v2560_v62 = vpop.f32.mrf.mxu2 }
 0x27f   : > { %5164 = vst.msk [vmem:[%s7966_s6 + $0x1c] sm:$0xf] %vm5156_vm3, %v5135_v41  ;;  %v8178_v26 = vpop.f32.mrf.mxu3  ;;  %v2791_v57 = vadd.f32 %v2560_v62, %v1700_v4 }
 0x280   : > { %v1702_v21 = vpop.f32.mrf.mxu1 }
 0x281   : > { %v1703_v45 = vadd.f32 %v1702_v21, %v8853_v52 }
 0x282   : > { %v4509_v61 = vpop.f32.mrf.mxu0 }
 0x283   : > { %5899 = vmatmul.msk.bf16.gmra.mxu1 %vm687_vm2, %v7152_v11  ;;  %6297 = vmatmul.msk.bf16.gmra.mxu2 %vm687_vm2, %v7266_v13 }
 0x284   : > { %6695 = vmatmul.msk.bf16.gmra.mxu3 %vm687_vm2, %v7323_v25 }
 0x285   : > { %7093 = vmatmul.msk.bf16.gmra.mxu0 %vm687_vm2, %v7380_v1 }
 0x286   : > { %v2563_v51 = vpop.f32.mrf.mxu2 }
 0x287   : > { %v3536_v37 = vpop.f32.mrf.mxu3  ;;  %v2792_v39 = vadd.f32 %v2563_v51, %v1703_v45  ;;  %v4852_v51 = vadd.f32 %v7939_v14, %v4736_v48  ;;  %v7327_v48 = vld [vmem:[%s7486_s27 + $0x118] sm:$0xff] }
 0x288   : > { %v1704_v2 = vpop.f32.mrf.mxu1 }
 0x289   : > { %v3765_v27 = vadd.f32 %v3536_v37, %v2792_v39  ;;  %v1705_v53 = vadd.f32 %v1704_v2, %v8856_v43  ;;  %v3764_v37 = vadd.f32 %v8178_v26, %v2791_v57  ;;  %v7384_v57 = vld [vmem:[%s7486_s27 + $0x128] sm:$0xff] }
 0x28a   : > { %v8188_v36 = vpop.f32.mrf.mxu0 }
 0x28b   : > { %v4738_v6 = vadd.f32 %v4509_v61, %v3765_v27 }
 0x28d   : > { %v4854_v2 = vadd.f32 %v7939_v14, %v4738_v6 }
 0x28e   : > { %v2565_v50 = vpop.f32.mrf.mxu2 }
 0x28f   : > { %v3538_v19 = vpop.f32.mrf.mxu3  ;;  %v2793_v12 = vadd.f32 %v2565_v50, %v1705_v53 }
 0x290   : > { %v1707_v18 = vpop.f32.mrf.mxu1 }
 0x291   : > { %v1708_v32 = vadd.f32 %v1707_v18, %v8851_v30  ;;  %v3766_v63 = vadd.f32 %v3538_v19, %v2793_v12  ;;  %v7155_v19 = vld [vmem:[%s7486_s27 + $0xe0] sm:$0xff] }
 0x292   : > { %v4514_v7 = vpop.f32.mrf.mxu0 }
 0x293   : > { %5900 = vmatmul.msk.bf16.gmra.mxu1 %vm687_vm2, %v7153_v23  ;;  %6298 = vmatmul.msk.bf16.gmra.mxu2 %vm687_vm2, %v7267_v55  ;;  %v8858_v55 = vld [vmem:[#allocation34_spill] sm:$0xff]  ;;  %v4739_v26 = vadd.f32 %v8188_v36, %v3766_v63 }
 0x294   : > { %6696 = vmatmul.msk.bf16.gmra.mxu3 %vm687_vm2, %v7324_v34  ;;  %v4964_v34 = vmax.f32 %v4852_v51, 0.0  ;;  %v7328_v51 = vld [vmem:[%s7486_s27 + $0x120] sm:$0xff] }
 0x295   : > { %7094 = vmatmul.msk.bf16.gmra.mxu0 %vm687_vm2, %v7381_v46  ;;  %v4737_v46 = vadd.f32 %v8174_v15, %v3764_v37  ;;  %v7385_v37 = vld [vmem:[%s7486_s27 + $0x130] sm:$0xff] }
 0x296   : > { %v2568_v54 = vpop.f32.mrf.mxu2 }
 0x297   : > { %v3541_v0 = vpop.f32.mrf.mxu3  ;;  %v2794_v49 = vadd.f32 %v2568_v54, %v1708_v32  ;;  %v4966_v54 = vmax.f32 %v4854_v2, 0.0  ;;  %v7269_v32 = vld [vmem:[%s7486_s27 + $0x100] sm:$0xff] }
 0x298   : > { %v1709_v9 = vpop.f32.mrf.mxu1 }
 0x299   : > { %v3767_v3 = vadd.f32 %v3541_v0, %v2794_v49  ;;  %v1710_v29 = vadd.f32 %v1709_v9, %v8854_v60 }
 0x29a   : > { %v4516_v8 = vpop.f32.mrf.mxu0 }
 0x29b   : > { %v4740_v40 = vadd.f32 %v4514_v7, %v3767_v3 }
 0x29d   : > { %v4856_v10 = vadd.f32 %v7939_v14, %v4740_v40 }
 0x29e   : > { %v2570_v56 = vpop.f32.mrf.mxu2 }
 0x29f   : > { %v3543_v38 = vpop.f32.mrf.mxu3  ;;  %v2795_v44 = vadd.f32 %v2570_v56, %v1710_v29  ;;  %v4968_v61 = vmax.f32 %v4856_v10, 0.0 }
 0x2a0   : > { %v1712_v58 = vpop.f32.mrf.mxu1 }
 0x2a1   : > { %v1713_v42 = vadd.f32 %v1712_v58, %v8857_v22  ;;  %v3768_v21 = vadd.f32 %v3543_v38, %v2795_v44  ;;  %v5060_v52 = vmax.f32 %v4964_v34, %v4968_v61  ;;  %v7156_v44 = vld [vmem:[%s7486_s27 + $0xe8] sm:$0xff] }
 0x2a2   : > { %v4519_v33 = vpop.f32.mrf.mxu0  ;;  %v7270_v22 = vld [vmem:[%s7486_s27 + $0x108] sm:$0xff] }
 0x2a3   : > { %5901 = vmatmul.msk.bf16.gmra.mxu1 %vm687_vm2, %v7154_v24  ;;  %6299 = vmatmul.msk.bf16.gmra.mxu2 %vm687_vm2, %v7268_v5  ;;  %v4741_v50 = vadd.f32 %v4516_v8, %v3768_v21  ;;  %v7383_v8 = vld [vmem:[%s7486_s27 + $0x120] sm:$0xff]  ;;  %v7157_v21 = vld [vmem:[%s7486_s27 + $0xf0] sm:$0xff] }
 0x2a4   : > { %6697 = vmatmul.msk.bf16.gmra.mxu3 %vm687_vm2, %v7325_v59 }
 0x2a5   : > { %7095 = vmatmul.msk.bf16.gmra.mxu0 %vm687_vm2, %v7382_v28 }
 0x2a6   : > { %v2573_v47 = vpop.f32.mrf.mxu2 }
 0x2a7   : > { %v2796_v41 = vadd.f32 %v2573_v47, %v1713_v42  ;;  %v3546_v11 = vpop.f32.mrf.mxu3 }
 0x2a8   : > { %v1714_v13 = vpop.f32.mrf.mxu1 }
 0x2a9   : > { %v3769_v25 = vadd.f32 %v3546_v11, %v2796_v41  ;;  %v1715_v18 = vadd.f32 %v1714_v13, %v8858_v55 }
 0x2aa   : > { %v4521_v1 = vpop.f32.mrf.mxu0 }
 0x2ab   : > { %v4742_v62 = vadd.f32 %v4519_v33, %v3769_v25  ;;  %v7271_v25 = vld [vmem:[%s7486_s27 + $0x110] sm:$0xff] }
 0x2ad   : > { %v4858_v23 = vadd.f32 %v7939_v14, %v4742_v62  ;;  %v8232_v14 = vld [vmem:[%s8755_s2] ss:$0 sm:$0xff] }
 0x2ae   : > { %v2575_v7 = vpop.f32.mrf.mxu2  ;;  %v4857_v15 = vadd.f32 %v8232_v14, %v4741_v50  ;;  %v4853_v16 = vadd.f32 %v8232_v14, %v4737_v46  ;;  %v4855_v56 = vadd.f32 %v8232_v14, %v4739_v26  ;;  %v8861_v46 = vld [vmem:[#allocation43_spill] sm:$0xff] }
 0x2af   : > { %v4970_v0 = vmax.f32 %v4858_v23, 0.0  ;;  %v2797_v9 = vadd.f32 %v2575_v7, %v1715_v18  ;;  %v3548_v30 = vpop.f32.mrf.mxu3  ;;  %v8859_v23 = vld [vmem:[#allocation49_spill] sm:$0xff] }
 0x2b0   : > { %v8225_v17 = vpop.f32.mrf.mxu1  ;;  %v4969_v24 = vmax.f32 %v4857_v15, 0.0  ;;  %v4965_v28 = vmax.f32 %v4853_v16, 0.0  ;;  %v4967_v3 = vmax.f32 %v4855_v56, 0.0  ;;  %v8860_v18 = vld [vmem:[#allocation37_spill] sm:$0xff]  ;;  %v8862_v56 = vld [vmem:[#allocation52_spill] sm:$0xff] }
 0x2b1   : > { %v5062_v45 = vmax.f32 %v4966_v54, %v4970_v0  ;;  %v3770_v49 = vadd.f32 %v3548_v30, %v2797_v9  ;;  %v1718_v34 = vadd.f32 %v8225_v17, %v8860_v18  ;;  %v8863_v17 = vld [vmem:[#allocation40_spill] sm:$0xff] }
 0x2b2   : > { %v8235_v36 = vpop.f32.mrf.mxu0  ;;  %v5061_v60 = vmax.f32 %v4965_v28, %v4969_v24  ;;  %v8864_v24 = vld [vmem:[#allocation46_spill] sm:$0xff]  ;;  %v8865_v28 = vld [vmem:[#allocation55_spill] sm:$0xff] }
 0x2b3   : > { %v5108_v39 = vmax.f32 %v5060_v52, %v5062_v45  ;;  %v4743_v38 = vadd.f32 %v4521_v1, %v3770_v49  ;;  %5902 = vmatmul.msk.bf16.gmra.mxu1 %vm687_vm2, %v7155_v19  ;;  %6300 = vmatmul.msk.bf16.gmra.mxu2 %vm687_vm2, %v7269_v32  ;;  %v7158_v19 = vld [vmem:[%s7486_s27 + $0xf8] sm:$0xff] }
 0x2b4   : > { %6698 = vmatmul.msk.bf16.gmra.mxu3 %vm687_vm2, %v7326_v31  ;;  %v7272_v32 = vld [vmem:[%s7486_s27 + $0x118] sm:$0xff] }
 0x2b5   : > { %7096 = vmatmul.msk.bf16.gmra.mxu0 %vm687_vm2, %v7383_v8  ;;  %v5136_v5 = vpack.c.bf16 %v5108_v39, %v5108_v39  ;;  %v4859_v58 = vadd.f32 %v8232_v14, %v4743_v38  ;;  %v7329_v8 = vld [vmem:[%s7486_s27 + $0x128] sm:$0xff]  ;;  %v7386_v52 = vld [vmem:[%s7486_s27 + $0x138] sm:$0xff] }
 0x2b6   : > { %v2578_v59 = vpop.f32.mrf.mxu2 }
 0x2b7   : > { %5165 = vst.msk [vmem:[%s7966_s6 + $0x20] sm:$0xf] %vm5156_vm3, %v5136_v5  ;;  %v4971_v33 = vmax.f32 %v4859_v58, 0.0  ;;  %v3551_v20 = vpop.f32.mrf.mxu3  ;;  %v2798_v26 = vadd.f32 %v2578_v59, %v1718_v34  ;;  %v7330_v34 = vld [vmem:[%s7486_s27 + $0x130] sm:$0xff] }
 0x2b8   : > { %v1719_v27 = vpop.f32.mrf.mxu1 }
 0x2b9   : > { %v5063_v29 = vmax.f32 %v4967_v3, %v4971_v33  ;;  %v3771_v49 = vadd.f32 %v3551_v20, %v2798_v26  ;;  %v1720_v38 = vadd.f32 %v1719_v27, %v8863_v17 }
 0x2ba   : > { %v8246_v35 = vpop.f32.mrf.mxu0 }
 0x2bb   : > { %v5109_v4 = vmax.f32 %v5061_v60, %v5063_v29  ;;  %v4744_v33 = vadd.f32 %v8235_v36, %v3771_v49 }
 0x2bd   : > { %v5137_v43 = vpack.c.bf16 %v5109_v4, %v5109_v4 }
 0x2be   : > { %v2580_v53 = vpop.f32.mrf.mxu2 }
 0x2bf   : > { %5166 = vst.msk [vmem:[%s7966_s6 + $0x24] sm:$0xf] %vm5156_vm3, %v5137_v43  ;;  %v8250_v40 = vpop.f32.mrf.mxu3  ;;  %v2799_v20 = vadd.f32 %v2580_v53, %v1720_v38 }
 0x2c0   : > { %v1722_v42 = vpop.f32.mrf.mxu1 }
 0x2c1   : > { %v1723_v7 = vadd.f32 %v1722_v42, %v8861_v46 }
 0x2c2   : > { %v4529_v47 = vpop.f32.mrf.mxu0 }
 0x2c3   : > { %5903 = vmatmul.msk.bf16.gmra.mxu1 %vm687_vm2, %v7156_v44  ;;  %6301 = vmatmul.msk.bf16.gmra.mxu2 %vm687_vm2, %v7270_v22 }
 0x2c4   : > { %6699 = vmatmul.msk.bf16.gmra.mxu3 %vm687_vm2, %v7327_v48 }
 0x2c5   : > { %7097 = vmatmul.msk.bf16.gmra.mxu0 %vm687_vm2, %v7384_v57 }
 0x2c6   : > { %v2583_v6 = vpop.f32.mrf.mxu2 }
 0x2c7   : > { %v3556_v12 = vpop.f32.mrf.mxu3  ;;  %v2800_v9 = vadd.f32 %v2583_v6, %v1723_v7  ;;  %v4860_v6 = vadd.f32 %v8232_v14, %v4744_v33  ;;  %v7331_v33 = vld [vmem:[%s7486_s27 + $0x138] sm:$0xff] }
 0x2c8   : > { %v1724_v41 = vpop.f32.mrf.mxu1 }
 0x2c9   : > { %v3773_v16 = vadd.f32 %v3556_v12, %v2800_v9  ;;  %v1725_v5 = vadd.f32 %v1724_v41, %v8864_v24  ;;  %v3772_v12 = vadd.f32 %v8250_v40, %v2799_v20  ;;  %v7388_v20 = vld [vmem:[%s7486_s27 + $0x148] sm:$0xff] }
 0x2ca   : > { %v8260_v11 = vpop.f32.mrf.mxu0 }
 0x2cb   : > { %v4746_v29 = vadd.f32 %v4529_v47, %v3773_v16 }
 0x2cd   : > { %v4862_v41 = vadd.f32 %v8232_v14, %v4746_v29 }
 0x2ce   : > { %v2585_v13 = vpop.f32.mrf.mxu2 }
 0x2cf   : > { %v3558_v10 = vpop.f32.mrf.mxu3  ;;  %v2801_v4 = vadd.f32 %v2585_v13, %v1725_v5 }
 0x2d0   : > { %v1727_v1 = vpop.f32.mrf.mxu1 }
 0x2d1   : > { %v1728_v55 = vadd.f32 %v1727_v1, %v8859_v23  ;;  %v3774_v36 = vadd.f32 %v3558_v10, %v2801_v4  ;;  %v7159_v10 = vld [vmem:[%s7486_s27 + $0x100] sm:$0xff] }
 0x2d2   : > { %v4534_v2 = vpop.f32.mrf.mxu0 }
 0x2d3   : > { %5904 = vmatmul.msk.bf16.gmra.mxu1 %vm687_vm2, %v7157_v21  ;;  %6302 = vmatmul.msk.bf16.gmra.mxu2 %vm687_vm2, %v7271_v25  ;;  %v8866_v25 = vld [vmem:[#allocation58_spill] sm:$0xff]  ;;  %v4747_v40 = vadd.f32 %v8260_v11, %v3774_v36 }
 0x2d4   : > { %6700 = vmatmul.msk.bf16.gmra.mxu3 %vm687_vm2, %v7328_v51  ;;  %v4972_v51 = vmax.f32 %v4860_v6, 0.0  ;;  %v7332_v6 = vld [vmem:[%s7486_s27 + $0x140] sm:$0xff] }
 0x2d5   : > { %7098 = vmatmul.msk.bf16.gmra.mxu0 %vm687_vm2, %v7385_v37  ;;  %v4745_v37 = vadd.f32 %v8246_v35, %v3772_v12  ;;  %v4863_v11 = vadd.f32 %v8232_v14, %v4747_v40  ;;  %v7389_v12 = vld [vmem:[%s7486_s27 + $0x150] sm:$0xff] }
 0x2d6   : > { %v2588_v63 = vpop.f32.mrf.mxu2 }
 0x2d7   : > { %v3561_v62 = vpop.f32.mrf.mxu3  ;;  %v2802_v54 = vadd.f32 %v2588_v63, %v1728_v55  ;;  %v4974_v63 = vmax.f32 %v4862_v41, 0.0  ;;  %v7273_v55 = vld [vmem:[%s7486_s27 + $0x120] sm:$0xff] }
 0x2d8   : > { %v1729_v61 = vpop.f32.mrf.mxu1 }
 0x2d9   : > { %v3775_v15 = vadd.f32 %v3561_v62, %v2802_v54  ;;  %v1730_v39 = vadd.f32 %v1729_v61, %v8862_v56 }
 0x2da   : > { %v4536_v50 = vpop.f32.mrf.mxu0 }
 0x2db   : > { %v4748_v58 = vadd.f32 %v4534_v2, %v3775_v15  ;;  %v4975_v15 = vmax.f32 %v4863_v11, 0.0  ;;  %v8870_v11 = vld [vmem:[#allocation77_spill] sm:$0xff] }
 0x2dd   : > { %v4864_v27 = vadd.f32 %v8232_v14, %v4748_v58 }
 0x2de   : > { %v2590_v0 = vpop.f32.mrf.mxu2 }
 0x2df   : > { %v3563_v30 = vpop.f32.mrf.mxu3  ;;  %v2803_v59 = vadd.f32 %v2590_v0, %v1730_v39  ;;  %v4976_v47 = vmax.f32 %v4864_v27, 0.0  ;;  %v4861_v0 = vadd.f32 %v8232_v14, %v4745_v37  ;;  %v8869_v37 = vld [vmem:[#allocation67_spill] sm:$0xff] }
 0x2e0   : > { %v1732_v31 = vpop.f32.mrf.mxu1 }
 0x2e1   : > { %v1733_v3 = vadd.f32 %v1732_v31, %v8865_v28  ;;  %v3776_v42 = vadd.f32 %v3563_v30, %v2803_v59  ;;  %v5064_v46 = vmax.f32 %v4972_v51, %v4976_v47  ;;  %v7160_v59 = vld [vmem:[%s7486_s27 + $0x108] sm:$0xff] }
 0x2e2   : > { %v4539_v45 = vpop.f32.mrf.mxu0  ;;  %v7274_v28 = vld [vmem:[%s7486_s27 + $0x128] sm:$0xff] }
 0x2e3   : > { %5905 = vmatmul.msk.bf16.gmra.mxu1 %vm687_vm2, %v7158_v19  ;;  %6303 = vmatmul.msk.bf16.gmra.mxu2 %vm687_vm2, %v7272_v32  ;;  %v4749_v13 = vadd.f32 %v4536_v50, %v3776_v42  ;;  %v7387_v50 = vld [vmem:[%s7486_s27 + $0x140] sm:$0xff]  ;;  %v7161_v42 = vld [vmem:[%s7486_s27 + $0x110] sm:$0xff] }
 0x2e4   : > { %6701 = vmatmul.msk.bf16.gmra.mxu3 %vm687_vm2, %v7329_v8 }
 0x2e5   : > { %7099 = vmatmul.msk.bf16.gmra.mxu0 %vm687_vm2, %v7386_v52  ;;  %v4865_v7 = vadd.f32 %v8232_v14, %v4749_v13  ;;  %v4973_v52 = vmax.f32 %v4861_v0, 0.0 }
 0x2e6   : > { %v2593_v60 = vpop.f32.mrf.mxu2 }
 0x2e7   : > { %v2804_v43 = vadd.f32 %v2593_v60, %v1733_v3  ;;  %v3566_v44 = vpop.f32.mrf.mxu3  ;;  %v4977_v19 = vmax.f32 %v4865_v7, 0.0 }
 0x2e8   : > { %v1734_v22 = vpop.f32.mrf.mxu1 }
 0x2e9   : > { %v3777_v48 = vadd.f32 %v3566_v44, %v2804_v43  ;;  %v1735_v1 = vadd.f32 %v1734_v22, %v8866_v25  ;;  %v5065_v56 = vmax.f32 %v4973_v52, %v4977_v19  ;;  %v8872_v19 = vld [vmem:[#allocation70_spill] sm:$0xff]  ;;  %v8873_v52 = vld [vmem:[#allocation81_spill] sm:$0xff] }
 0x2ea   : > { %v4541_v57 = vpop.f32.mrf.mxu0 }
 0x2eb   : > { %v4750_v53 = vadd.f32 %v4539_v45, %v3777_v48  ;;  %v7275_v48 = vld [vmem:[%s7486_s27 + $0x130] sm:$0xff] }
 0x2ed   : > { %v4866_v21 = vadd.f32 %v8232_v14, %v4750_v53 }
 0x2ee   : > { %v2595_v2 = vpop.f32.mrf.mxu2 }
 0x2ef   : > { %v4978_v62 = vmax.f32 %v4866_v21, 0.0  ;;  %v2805_v61 = vadd.f32 %v2595_v2, %v1735_v1  ;;  %v3568_v23 = vpop.f32.mrf.mxu3  ;;  %v8867_v21 = vld [vmem:[#allocation73_spill] sm:$0xff] }
 0x2f0   : > { %v8297_v18 = vpop.f32.mrf.mxu1  ;;  %v8868_v1 = vld [vmem:[#allocation61_spill] sm:$0xff] }
 0x2f1   : > { %v5066_v54 = vmax.f32 %v4974_v63, %v4978_v62  ;;  %v3778_v26 = vadd.f32 %v3568_v23, %v2805_v61  ;;  %v1738_v51 = vadd.f32 %v8297_v18, %v8868_v1  ;;  %v8871_v18 = vld [vmem:[#allocation64_spill] sm:$0xff] }
 0x2f2   : > { %v8302_v35 = vpop.f32.mrf.mxu0 }
 0x2f3   : > { %v5110_v9 = vmax.f32 %v5064_v46, %v5066_v54  ;;  %v4751_v30 = vadd.f32 %v4541_v57, %v3778_v26  ;;  %5906 = vmatmul.msk.bf16.gmra.mxu1 %vm687_vm2, %v7159_v10  ;;  %6304 = vmatmul.msk.bf16.gmra.mxu2 %vm687_vm2, %v7273_v55  ;;  %v7162_v10 = vld [vmem:[%s7486_s27 + $0x118] sm:$0xff] }
 0x2f4   : > { %6702 = vmatmul.msk.bf16.gmra.mxu3 %vm687_vm2, %v7330_v34  ;;  %v7276_v55 = vld [vmem:[%s7486_s27 + $0x138] sm:$0xff] }
 0x2f5   : > { %7100 = vmatmul.msk.bf16.gmra.mxu0 %vm687_vm2, %v7387_v50  ;;  %v5138_v32 = vpack.c.bf16 %v5110_v9, %v5110_v9  ;;  %v4867_v31 = vadd.f32 %v8232_v14, %v4751_v30  ;;  %v7333_v50 = vld [vmem:[%s7486_s27 + $0x148] sm:$0xff]  ;;  %v7390_v46 = vld [vmem:[%s7486_s27 + $0x158] sm:$0xff] }
 0x2f6   : > { %v2598_v8 = vpop.f32.mrf.mxu2 }
 0x2f7   : > { %5167 = vst.msk [vmem:[%s7966_s6 + $0x28] sm:$0xf] %vm5156_vm3, %v5138_v32  ;;  %v4979_v45 = vmax.f32 %v4867_v31, 0.0  ;;  %v3571_v49 = vpop.f32.mrf.mxu3  ;;  %v2806_v40 = vadd.f32 %v2598_v8, %v1738_v51  ;;  %v7334_v51 = vld [vmem:[%s7486_s27 + $0x150] sm:$0xff] }
 0x2f8   : > { %v1739_v16 = vpop.f32.mrf.mxu1 }
 0x2f9   : > { %v5067_v39 = vmax.f32 %v4975_v15, %v4979_v45  ;;  %v3779_v26 = vadd.f32 %v3571_v49, %v2806_v40  ;;  %v1740_v30 = vadd.f32 %v1739_v16, %v8871_v18 }
 0x2fa   : > { %v8313_v17 = vpop.f32.mrf.mxu0 }
 0x2fb   : > { %v5111_v38 = vmax.f32 %v5065_v56, %v5067_v39  ;;  %v4752_v45 = vadd.f32 %v8302_v35, %v3779_v26 }
 0x2fd   : > { %v5139_v24 = vpack.c.bf16 %v5111_v38, %v5111_v38 }
 0x2fe   : > { %v2600_v5 = vpop.f32.mrf.mxu2 }
 0x2ff   : > { %5168 = vst.msk [vmem:[%s7966_s6 + $0x2c] sm:$0xf] %vm5156_vm3, %v5139_v24  ;;  %v8317_v58 = vpop.f32.mrf.mxu3  ;;  %v2807_v49 = vadd.f32 %v2600_v5, %v1740_v30 }
 0x300   : > { %v1742_v3 = vpop.f32.mrf.mxu1 }
 0x301   : > { %v1743_v2 = vadd.f32 %v1742_v3, %v8869_v37 }
 0x302   : > { %v4549_v60 = vpop.f32.mrf.mxu0 }
 0x303   : > { %5907 = vmatmul.msk.bf16.gmra.mxu1 %vm687_vm2, %v7160_v59  ;;  %6305 = vmatmul.msk.bf16.gmra.mxu2 %vm687_vm2, %v7274_v28 }
 0x304   : > { %6703 = vmatmul.msk.bf16.gmra.mxu3 %vm687_vm2, %v7331_v33 }
 0x305   : > { %7101 = vmatmul.msk.bf16.gmra.mxu0 %vm687_vm2, %v7388_v20 }
 0x306   : > { %v2603_v29 = vpop.f32.mrf.mxu2 }
 0x307   : > { %v3576_v4 = vpop.f32.mrf.mxu3  ;;  %v2808_v61 = vadd.f32 %v2603_v29, %v1743_v2  ;;  %v4868_v29 = vadd.f32 %v8232_v14, %v4752_v45  ;;  %v7335_v45 = vld [vmem:[%s7486_s27 + $0x158] sm:$0xff] }
 0x308   : > { %v1744_v43 = vpop.f32.mrf.mxu1 }
 0x309   : > { %v3781_v0 = vadd.f32 %v3576_v4, %v2808_v61  ;;  %v1745_v32 = vadd.f32 %v1744_v43, %v8872_v19  ;;  %v3780_v4 = vadd.f32 %v8317_v58, %v2807_v49  ;;  %v7392_v49 = vld [vmem:[%s7486_s27 + $0x168] sm:$0xff] }
 0x30a   : > { %v8327_v44 = vpop.f32.mrf.mxu0 }
 0x30b   : > { %v4754_v39 = vadd.f32 %v4549_v60, %v3781_v0 }
 0x30d   : > { %v4870_v43 = vadd.f32 %v8232_v14, %v4754_v39 }
 0x30e   : > { %v2605_v22 = vpop.f32.mrf.mxu2 }
 0x30f   : > { %v3578_v27 = vpop.f32.mrf.mxu3  ;;  %v2809_v38 = vadd.f32 %v2605_v22, %v1745_v32 }
 0x310   : > { %v1747_v57 = vpop.f32.mrf.mxu1 }
 0x311   : > { %v1748_v25 = vadd.f32 %v1747_v57, %v8867_v21  ;;  %v3782_v35 = vadd.f32 %v3578_v27, %v2809_v38  ;;  %v7163_v27 = vld [vmem:[%s7486_s27 + $0x120] sm:$0xff] }
 0x312   : > { %v4554_v41 = vpop.f32.mrf.mxu0 }
 0x313   : > { %5908 = vmatmul.msk.bf16.gmra.mxu1 %vm687_vm2, %v7161_v42  ;;  %6306 = vmatmul.msk.bf16.gmra.mxu2 %vm687_vm2, %v7275_v48  ;;  %v8874_v48 = vld [vmem:[#allocation85_spill] sm:$0xff]  ;;  %v4755_v58 = vadd.f32 %v8327_v44, %v3782_v35 }
 0x314   : > { %6704 = vmatmul.msk.bf16.gmra.mxu3 %vm687_vm2, %v7332_v6  ;;  %v4980_v6 = vmax.f32 %v4868_v29, 0.0  ;;  %v7336_v29 = vld [vmem:[%s7486_s27 + $0x160] sm:$0xff] }
 0x315   : > { %7102 = vmatmul.msk.bf16.gmra.mxu0 %vm687_vm2, %v7389_v12  ;;  %v4753_v12 = vadd.f32 %v8313_v17, %v3780_v4  ;;  %v4871_v44 = vadd.f32 %v8232_v14, %v4755_v58  ;;  %v7393_v4 = vld [vmem:[%s7486_s27 + $0x170] sm:$0xff] }
 0x316   : > { %v2608_v36 = vpop.f32.mrf.mxu2 }
 0x317   : > { %v3581_v53 = vpop.f32.mrf.mxu3  ;;  %v2810_v63 = vadd.f32 %v2608_v36, %v1748_v25  ;;  %v4982_v36 = vmax.f32 %v4870_v43, 0.0  ;;  %v7277_v25 = vld [vmem:[%s7486_s27 + $0x140] sm:$0xff] }
 0x318   : > { %v1749_v47 = vpop.f32.mrf.mxu1 }
 0x319   : > { %v3783_v7 = vadd.f32 %v3581_v53, %v2810_v63  ;;  %v1750_v9 = vadd.f32 %v1749_v47, %v8870_v11 }
 0x31a   : > { %v4556_v13 = vpop.f32.mrf.mxu0 }
 0x31b   : > { %v4756_v31 = vadd.f32 %v4554_v41, %v3783_v7  ;;  %v4983_v7 = vmax.f32 %v4871_v44, 0.0  ;;  %v8878_v44 = vld [vmem:[#allocation17_spill] sm:$0xff] }
 0x31d   : > { %v4872_v16 = vadd.f32 %v8232_v14, %v4756_v31 }
 0x31e   : > { %v2610_v62 = vpop.f32.mrf.mxu2 }
 0x31f   : > { %v3583_v23 = vpop.f32.mrf.mxu3  ;;  %v2811_v8 = vadd.f32 %v2610_v62, %v1750_v9  ;;  %v4984_v60 = vmax.f32 %v4872_v16, 0.0  ;;  %v4869_v62 = vadd.f32 %v8232_v14, %v4753_v12  ;;  %v8877_v12 = vld [vmem:[#allocation8_spill] sm:$0xff] }
 0x320   : > { %v1752_v34 = vpop.f32.mrf.mxu1 }
 0x321   : > { %v1753_v15 = vadd.f32 %v1752_v34, %v8873_v52  ;;  %v3784_v3 = vadd.f32 %v3583_v23, %v2811_v8  ;;  %v5068_v37 = vmax.f32 %v4980_v6, %v4984_v60  ;;  %v7164_v8 = vld [vmem:[%s7486_s27 + $0x128] sm:$0xff] }
 0x322   : > { %v4559_v54 = vpop.f32.mrf.mxu0  ;;  %v7278_v52 = vld [vmem:[%s7486_s27 + $0x148] sm:$0xff] }
 0x323   : > { %5909 = vmatmul.msk.bf16.gmra.mxu1 %vm687_vm2, %v7162_v10  ;;  %6307 = vmatmul.msk.bf16.gmra.mxu2 %vm687_vm2, %v7276_v55  ;;  %v4757_v22 = vadd.f32 %v4556_v13, %v3784_v3  ;;  %v7391_v13 = vld [vmem:[%s7486_s27 + $0x160] sm:$0xff]  ;;  %v7165_v3 = vld [vmem:[%s7486_s27 + $0x130] sm:$0xff] }
 0x324   : > { %6705 = vmatmul.msk.bf16.gmra.mxu3 %vm687_vm2, %v7333_v50 }
 0x325   : > { %7103 = vmatmul.msk.bf16.gmra.mxu0 %vm687_vm2, %v7390_v46  ;;  %v4873_v2 = vadd.f32 %v8232_v14, %v4757_v22  ;;  %v4981_v46 = vmax.f32 %v4869_v62, 0.0 }
 0x326   : > { %v2613_v56 = vpop.f32.mrf.mxu2 }
 0x327   : > { %v2812_v24 = vadd.f32 %v2613_v56, %v1753_v15  ;;  %v3586_v59 = vpop.f32.mrf.mxu3  ;;  %v4985_v10 = vmax.f32 %v4873_v2, 0.0 }
 0x328   : > { %v1754_v28 = vpop.f32.mrf.mxu1 }
 0x329   : > { %v3785_v33 = vadd.f32 %v3586_v59, %v2812_v24  ;;  %v1755_v57 = vadd.f32 %v1754_v28, %v8874_v48  ;;  %v5069_v11 = vmax.f32 %v4981_v46, %v4985_v10  ;;  %v8880_v10 = vld [vmem:[#allocation11_spill] sm:$0xff]  ;;  %v8881_v46 = vld [vmem:[#allocation20_spill] sm:$0xff] }
 0x32a   : > { %v4561_v20 = vpop.f32.mrf.mxu0 }
 0x32b   : > { %v4758_v5 = vadd.f32 %v4559_v54, %v3785_v33  ;;  %v7279_v33 = vld [vmem:[%s7486_s27 + $0x150] sm:$0xff] }
 0x32d   : > { %v4874_v42 = vadd.f32 %v8232_v14, %v4758_v5 }
 0x32e   : > { %v2615_v41 = vpop.f32.mrf.mxu2 }
 0x32f   : > { %v4986_v53 = vmax.f32 %v4874_v42, 0.0  ;;  %v2813_v47 = vadd.f32 %v2615_v41, %v1755_v57  ;;  %v3588_v21 = vpop.f32.mrf.mxu3  ;;  %v8875_v42 = vld [vmem:[#allocation14_spill] sm:$0xff] }
 0x330   : > { %v8364_v1 = vpop.f32.mrf.mxu1  ;;  %v8876_v57 = vld [vmem:[#allocation2_spill] sm:$0xff] }
 0x331   : > { %v5070_v63 = vmax.f32 %v4982_v36, %v4986_v53  ;;  %v3786_v40 = vadd.f32 %v3588_v21, %v2813_v47  ;;  %v1758_v6 = vadd.f32 %v8364_v1, %v8876_v57  ;;  %v8879_v1 = vld [vmem:[#allocation5_spill] sm:$0xff] }
 0x332   : > { %v8369_v17 = vpop.f32.mrf.mxu0 }
 0x333   : > { %v5112_v61 = vmax.f32 %v5068_v37, %v5070_v63  ;;  %v4759_v23 = vadd.f32 %v4561_v20, %v3786_v40  ;;  %5910 = vmatmul.msk.bf16.gmra.mxu1 %vm687_vm2, %v7163_v27  ;;  %6308 = vmatmul.msk.bf16.gmra.mxu2 %vm687_vm2, %v7277_v25  ;;  %v7166_v27 = vld [vmem:[%s7486_s27 + $0x138] sm:$0xff] }
 0x334   : > { %6706 = vmatmul.msk.bf16.gmra.mxu3 %vm687_vm2, %v7334_v51  ;;  %v7280_v25 = vld [vmem:[%s7486_s27 + $0x158] sm:$0xff] }
 0x335   : > { %7104 = vmatmul.msk.bf16.gmra.mxu0 %vm687_vm2, %v7391_v13  ;;  %v5140_v55 = vpack.c.bf16 %v5112_v61, %v5112_v61  ;;  %v4875_v34 = vadd.f32 %v8232_v14, %v4759_v23  ;;  %v7337_v13 = vld [vmem:[%s7486_s27 + $0x168] sm:$0xff]  ;;  %v7394_v37 = vld [vmem:[%s7486_s27 + $0x178] sm:$0xff] }
 0x336   : > { %v2618_v50 = vpop.f32.mrf.mxu2 }
 0x337   : > { %5169 = vst.msk [vmem:[%s7966_s6 + $0x30] sm:$0xf] %vm5156_vm3, %v5140_v55  ;;  %v4987_v54 = vmax.f32 %v4875_v34, 0.0  ;;  %v3591_v26 = vpop.f32.mrf.mxu3  ;;  %v2814_v58 = vadd.f32 %v2618_v50, %v1758_v6  ;;  %v7338_v6 = vld [vmem:[%s7486_s27 + $0x170] sm:$0xff] }
 0x338   : > { %v1759_v0 = vpop.f32.mrf.mxu1 }
 0x339   : > { %v5071_v9 = vmax.f32 %v4983_v7, %v4987_v54  ;;  %v3787_v40 = vadd.f32 %v3591_v26, %v2814_v58  ;;  %v1760_v23 = vadd.f32 %v1759_v0, %v8879_v1 }
 0x33a   : > { %v8380_v18 = vpop.f32.mrf.mxu0 }
 0x33b   : > { %v5113_v30 = vmax.f32 %v5069_v11, %v5071_v9  ;;  %v4760_v54 = vadd.f32 %v8369_v17, %v3787_v40 }
 0x33d   : > { %v5141_v19 = vpack.c.bf16 %v5113_v30, %v5113_v30 }
 0x33e   : > { %v2620_v32 = vpop.f32.mrf.mxu2 }
 0x33f   : > { %5170 = vst.msk [vmem:[%s7966_s6 + $0x34] sm:$0xf] %vm5156_vm3, %v5141_v19  ;;  %v8384_v31 = vpop.f32.mrf.mxu3  ;;  %v2815_v26 = vadd.f32 %v2620_v32, %v1760_v23 }
 0x340   : > { %v1762_v15 = vpop.f32.mrf.mxu1 }
 0x341   : > { %v1763_v41 = vadd.f32 %v1762_v15, %v8877_v12 }
 0x342   : > { %v4569_v56 = vpop.f32.mrf.mxu0 }
 0x343   : > { %5911 = vmatmul.msk.bf16.gmra.mxu1 %vm687_vm2, %v7164_v8  ;;  %6309 = vmatmul.msk.bf16.gmra.mxu2 %vm687_vm2, %v7278_v52 }
 0x344   : > { %6707 = vmatmul.msk.bf16.gmra.mxu3 %vm687_vm2, %v7335_v45 }
 0x345   : > { %7105 = vmatmul.msk.bf16.gmra.mxu0 %vm687_vm2, %v7392_v49 }
 0x346   : > { %v2623_v39 = vpop.f32.mrf.mxu2 }
 0x347   : > { %v3596_v38 = vpop.f32.mrf.mxu3  ;;  %v2816_v47 = vadd.f32 %v2623_v39, %v1763_v41  ;;  %v4876_v39 = vadd.f32 %v8232_v14, %v4760_v54  ;;  %v7339_v54 = vld [vmem:[%s7486_s27 + $0x178] sm:$0xff] }
 0x348   : > { %v1764_v24 = vpop.f32.mrf.mxu1 }
 0x349   : > { %v3789_v62 = vadd.f32 %v3596_v38, %v2816_v47  ;;  %v1765_v55 = vadd.f32 %v1764_v24, %v8880_v10  ;;  %v3788_v38 = vadd.f32 %v8384_v31, %v2815_v26  ;;  %v7396_v26 = vld [vmem:[%s7486_s27 + $0x188] sm:$0xff] }
 0x34a   : > { %v8394_v59 = vpop.f32.mrf.mxu0 }
 0x34b   : > { %v4762_v9 = vadd.f32 %v4569_v56, %v3789_v62 }
 0x34d   : > { %v4878_v24 = vadd.f32 %v8232_v14, %v4762_v9 }
 0x34e   : > { %v2625_v28 = vpop.f32.mrf.mxu2 }
 0x34f   : > { %v3598_v16 = vpop.f32.mrf.mxu3  ;;  %v2817_v30 = vadd.f32 %v2625_v28, %v1765_v55 }
 0x350   : > { %v1767_v20 = vpop.f32.mrf.mxu1 }
 0x351   : > { %v1768_v48 = vadd.f32 %v1767_v20, %v8875_v42  ;;  %v3790_v17 = vadd.f32 %v3598_v16, %v2817_v30  ;;  %v7167_v16 = vld [vmem:[%s7486_s27 + $0x140] sm:$0xff] }
 0x352   : > { %v4574_v43 = vpop.f32.mrf.mxu0 }
 0x353   : > { %5912 = vmatmul.msk.bf16.gmra.mxu1 %vm687_vm2, %v7165_v3  ;;  %6310 = vmatmul.msk.bf16.gmra.mxu2 %vm687_vm2, %v7279_v33  ;;  %v8882_v33 = vld [vmem:[#allocation23_spill] sm:$0xff]  ;;  %v4763_v31 = vadd.f32 %v8394_v59, %v3790_v17 }
 0x354   : > { %6708 = vmatmul.msk.bf16.gmra.mxu3 %vm687_vm2, %v7336_v29  ;;  %v4988_v29 = vmax.f32 %v4876_v39, 0.0  ;;  %v7340_v39 = vld [vmem:[%s7486_s27 + $0x180] sm:$0xff] }
 0x355   : > { %7106 = vmatmul.msk.bf16.gmra.mxu0 %vm687_vm2, %v7393_v4  ;;  %v4761_v4 = vadd.f32 %v8380_v18, %v3788_v38  ;;  %v4879_v59 = vadd.f32 %v8232_v14, %v4763_v31  ;;  %v7397_v38 = vld [vmem:[%s7486_s27 + $0x190] sm:$0xff] }
 0x356   : > { %v2628_v35 = vpop.f32.mrf.mxu2 }
 0x357   : > { %v3601_v5 = vpop.f32.mrf.mxu3  ;;  %v2818_v36 = vadd.f32 %v2628_v35, %v1768_v48  ;;  %v4990_v35 = vmax.f32 %v4878_v24, 0.0  ;;  %v7281_v48 = vld [vmem:[%s7486_s27 + $0x160] sm:$0xff] }
 0x358   : > { %v1769_v60 = vpop.f32.mrf.mxu1 }
 0x359   : > { %v3791_v2 = vadd.f32 %v3601_v5, %v2818_v36  ;;  %v1770_v61 = vadd.f32 %v1769_v60, %v8878_v44 }
 0x35a   : > { %v4576_v22 = vpop.f32.mrf.mxu0 }
 0x35b   : > { %v4764_v34 = vadd.f32 %v4574_v43, %v3791_v2  ;;  %v4991_v2 = vmax.f32 %v4879_v59, 0.0  ;;  %v8886_v59 = vld [vmem:[#allocation41_spill] sm:$0xff] }
 0x35d   : > { %v4880_v0 = vadd.f32 %v8232_v14, %v4764_v34 }
 0x35e   : > { %v2630_v53 = vpop.f32.mrf.mxu2 }
 0x35f   : > { %v3603_v21 = vpop.f32.mrf.mxu3  ;;  %v2819_v50 = vadd.f32 %v2630_v53, %v1770_v61  ;;  %v4992_v56 = vmax.f32 %v4880_v0, 0.0  ;;  %v4877_v53 = vadd.f32 %v8232_v14, %v4761_v4  ;;  %v8885_v4 = vld [vmem:[#allocation32_spill] sm:$0xff] }
 0x360   : > { %v1772_v51 = vpop.f32.mrf.mxu1 }
 0x361   : > { %v1773_v7 = vadd.f32 %v1772_v51, %v8881_v46  ;;  %v3792_v15 = vadd.f32 %v3603_v21, %v2819_v50  ;;  %v5072_v12 = vmax.f32 %v4988_v29, %v4992_v56  ;;  %v7168_v50 = vld [vmem:[%s7486_s27 + $0x148] sm:$0xff] }
 0x362   : > { %v4579_v63 = vpop.f32.mrf.mxu0  ;;  %v7282_v46 = vld [vmem:[%s7486_s27 + $0x168] sm:$0xff] }
 0x363   : > { %5913 = vmatmul.msk.bf16.gmra.mxu1 %vm687_vm2, %v7166_v27  ;;  %6311 = vmatmul.msk.bf16.gmra.mxu2 %vm687_vm2, %v7280_v25  ;;  %v4765_v28 = vadd.f32 %v4576_v22, %v3792_v15  ;;  %v7395_v22 = vld [vmem:[%s7486_s27 + $0x180] sm:$0xff]  ;;  %v7169_v15 = vld [vmem:[%s7486_s27 + $0x150] sm:$0xff] }
 0x364   : > { %6709 = vmatmul.msk.bf16.gmra.mxu3 %vm687_vm2, %v7337_v13 }
 0x365   : > { %7107 = vmatmul.msk.bf16.gmra.mxu0 %vm687_vm2, %v7394_v37  ;;  %v4881_v41 = vadd.f32 %v8232_v14, %v4765_v28  ;;  %v4989_v37 = vmax.f32 %v4877_v53, 0.0 }
 0x366   : > { %v2633_v11 = vpop.f32.mrf.mxu2 }
 0x367   : > { %v2820_v19 = vadd.f32 %v2633_v11, %v1773_v7  ;;  %v3606_v8 = vpop.f32.mrf.mxu3  ;;  %v4993_v27 = vmax.f32 %v4881_v41, 0.0 }
 0x368   : > { %v1774_v52 = vpop.f32.mrf.mxu1 }
 0x369   : > { %v3793_v45 = vadd.f32 %v3606_v8, %v2820_v19  ;;  %v1775_v20 = vadd.f32 %v1774_v52, %v8882_v33  ;;  %v5073_v44 = vmax.f32 %v4989_v37, %v4993_v27  ;;  %v8888_v27 = vld [vmem:[#allocation35_spill] sm:$0xff]  ;;  %v8889_v37 = vld [vmem:[#allocation44_spill] sm:$0xff] }
 0x36a   : > { %v4581_v49 = vpop.f32.mrf.mxu0 }
 0x36b   : > { %v4766_v32 = vadd.f32 %v4579_v63, %v3793_v45  ;;  %v7283_v45 = vld [vmem:[%s7486_s27 + $0x170] sm:$0xff] }
 0x36d   : > { %v4882_v3 = vadd.f32 %v8232_v14, %v4766_v32 }
 0x36e   : > { %v2635_v43 = vpop.f32.mrf.mxu2 }
 0x36f   : > { %v4994_v5 = vmax.f32 %v4882_v3, 0.0  ;;  %v2821_v60 = vadd.f32 %v2635_v43, %v1775_v20  ;;  %v3608_v42 = vpop.f32.mrf.mxu3  ;;  %v8883_v3 = vld [vmem:[#allocation38_spill] sm:$0xff] }
 0x370   : > { %v8431_v57 = vpop.f32.mrf.mxu1  ;;  %v8884_v20 = vld [vmem:[#allocation26_spill] sm:$0xff] }
 0x371   : > { %v5074_v36 = vmax.f32 %v4990_v35, %v4994_v5  ;;  %v3794_v58 = vadd.f32 %v3608_v42, %v2821_v60  ;;  %v1778_v29 = vadd.f32 %v8431_v57, %v8884_v20  ;;  %v8887_v57 = vld [vmem:[#allocation29_spill] sm:$0xff] }
 0x372   : > { %v8436_v18 = vpop.f32.mrf.mxu0 }
 0x373   : > { %v5114_v47 = vmax.f32 %v5072_v12, %v5074_v36  ;;  %v4767_v21 = vadd.f32 %v4581_v49, %v3794_v58  ;;  %5914 = vmatmul.msk.bf16.gmra.mxu1 %vm687_vm2, %v7167_v16  ;;  %6312 = vmatmul.msk.bf16.gmra.mxu2 %vm687_vm2, %v7281_v48  ;;  %v7170_v16 = vld [vmem:[%s7486_s27 + $0x158] sm:$0xff] }
 0x374   : > { %6710 = vmatmul.msk.bf16.gmra.mxu3 %vm687_vm2, %v7338_v6  ;;  %v7284_v48 = vld [vmem:[%s7486_s27 + $0x178] sm:$0xff] }
 0x375   : > { %7108 = vmatmul.msk.bf16.gmra.mxu0 %vm687_vm2, %v7395_v22  ;;  %v5142_v25 = vpack.c.bf16 %v5114_v47, %v5114_v47  ;;  %v4883_v51 = vadd.f32 %v8232_v14, %v4767_v21  ;;  %v7341_v22 = vld [vmem:[%s7486_s27 + $0x188] sm:$0xff]  ;;  %v7398_v12 = vld [vmem:[%s7486_s27 + $0x198] sm:$0xff] }
 0x376   : > { %v2638_v13 = vpop.f32.mrf.mxu2 }
 0x377   : > { %5171 = vst.msk [vmem:[%s7966_s6 + $0x38] sm:$0xf] %vm5156_vm3, %v5142_v25  ;;  %v4995_v63 = vmax.f32 %v4883_v51, 0.0  ;;  %v3611_v40 = vpop.f32.mrf.mxu3  ;;  %v2822_v31 = vadd.f32 %v2638_v13, %v1778_v29  ;;  %v7342_v29 = vld [vmem:[%s7486_s27 + $0x190] sm:$0xff] }
 0x378   : > { %v1779_v62 = vpop.f32.mrf.mxu1 }
 0x379   : > { %v5075_v61 = vmax.f32 %v4991_v2, %v4995_v63  ;;  %v3795_v58 = vadd.f32 %v3611_v40, %v2822_v31  ;;  %v1780_v21 = vadd.f32 %v1779_v62, %v8887_v57 }
 0x37a   : > { %v8447_v1 = vpop.f32.mrf.mxu0 }
 0x37b   : > { %v5115_v23 = vmax.f32 %v5073_v44, %v5075_v61  ;;  %v4768_v63 = vadd.f32 %v8436_v18, %v3795_v58 }
 0x37d   : > { %v5143_v10 = vpack.c.bf16 %v5115_v23, %v5115_v23 }
 0x37e   : > { %v2640_v55 = vpop.f32.mrf.mxu2 }
 0x37f   : > { %5172 = vst.msk [vmem:[%s7966_s6 + $0x3c] sm:$0xf] %vm5156_vm3, %v5143_v10  ;;  %v8451_v34 = vpop.f32.mrf.mxu3  ;;  %v2823_v40 = vadd.f32 %v2640_v55, %v1780_v21 }
 0x380   : > { %v1782_v7 = vpop.f32.mrf.mxu1 }
 0x381   : > { %v1783_v43 = vadd.f32 %v1782_v7, %v8885_v4 }
 0x382   : > { %v4589_v11 = vpop.f32.mrf.mxu0 }
 0x383   : > { %5915 = vmatmul.msk.bf16.gmra.mxu1 %vm687_vm2, %v7168_v50  ;;  %6313 = vmatmul.msk.bf16.gmra.mxu2 %vm687_vm2, %v7282_v46 }
 0x384   : > { %6711 = vmatmul.msk.bf16.gmra.mxu3 %vm687_vm2, %v7339_v54 }
 0x385   : > { %7109 = vmatmul.msk.bf16.gmra.mxu0 %vm687_vm2, %v7396_v26 }
 0x386   : > { %v2643_v9 = vpop.f32.mrf.mxu2 }
 0x387   : > { %v3616_v30 = vpop.f32.mrf.mxu3  ;;  %v2824_v60 = vadd.f32 %v2643_v9, %v1783_v43  ;;  %v4884_v9 = vadd.f32 %v8232_v14, %v4768_v63  ;;  %v7400_v63 = vld [vmem:[%s7486_s27 + $0x1a8] sm:$0xff] }
 0x388   : > { %v1784_v19 = vpop.f32.mrf.mxu1 }
 0x389   : > { %v3797_v53 = vadd.f32 %v3616_v30, %v2824_v60  ;;  %v1785_v25 = vadd.f32 %v1784_v19, %v8888_v27  ;;  %v3796_v30 = vadd.f32 %v8451_v34, %v2823_v40 }
 0x38a   : > { %v8461_v8 = vpop.f32.mrf.mxu0 }
 0x38b   : > { %v4770_v61 = vadd.f32 %v4589_v11, %v3797_v53 }
 0x38d   : > { %v4886_v19 = vadd.f32 %v8232_v14, %v4770_v61 }
 0x38e   : > { %v2645_v52 = vpop.f32.mrf.mxu2 }
 0x38f   : > { %v3618_v0 = vpop.f32.mrf.mxu3  ;;  %v2825_v23 = vadd.f32 %v2645_v52, %v1785_v25 }
 0x390   : > { %v1787_v49 = vpop.f32.mrf.mxu1 }
 0x391   : > { %v1788_v33 = vadd.f32 %v1787_v49, %v8883_v3  ;;  %v3798_v18 = vadd.f32 %v3618_v0, %v2825_v23  ;;  %v7171_v0 = vld [vmem:[%s7486_s27 + $0x160] sm:$0xff] }
 0x392   : > { %v4594_v24 = vpop.f32.mrf.mxu0 }
 0x393   : > { %5916 = vmatmul.msk.bf16.gmra.mxu1 %vm687_vm2, %v7169_v15  ;;  %6314 = vmatmul.msk.bf16.gmra.mxu2 %vm687_vm2, %v7283_v45  ;;  %v8890_v45 = vld [vmem:[#allocation47_spill] sm:$0xff]  ;;  %v4771_v34 = vadd.f32 %v8461_v8, %v3798_v18 }
 0x394   : > { %6712 = vmatmul.msk.bf16.gmra.mxu3 %vm687_vm2, %v7340_v39  ;;  %v4996_v39 = vmax.f32 %v4884_v9, 0.0  ;;  %v7401_v9 = vld [vmem:[%s7486_s27 + $0x1b0] sm:$0xff] }
 0x395   : > { %7110 = vmatmul.msk.bf16.gmra.mxu0 %vm687_vm2, %v7397_v38  ;;  %v4769_v38 = vadd.f32 %v8447_v1, %v3796_v30  ;;  %v4887_v8 = vadd.f32 %v8232_v14, %v4771_v34 }
 0x396   : > { %v2648_v17 = vpop.f32.mrf.mxu2 }
 0x397   : > { %v3621_v32 = vpop.f32.mrf.mxu3  ;;  %v2826_v35 = vadd.f32 %v2648_v17, %v1788_v33  ;;  %v4998_v17 = vmax.f32 %v4886_v19, 0.0  ;;  %v7285_v33 = vld [vmem:[%s7486_s27 + $0x180] sm:$0xff] }
 0x398   : > { %v1789_v56 = vpop.f32.mrf.mxu1 }
 0x399   : > { %v3799_v41 = vadd.f32 %v3621_v32, %v2826_v35  ;;  %v1790_v47 = vadd.f32 %v1789_v56, %v8886_v59 }
 0x39a   : > { %v4596_v28 = vpop.f32.mrf.mxu0 }
 0x39b   : > { %v4772_v51 = vadd.f32 %v4594_v24, %v3799_v41  ;;  %v4999_v41 = vmax.f32 %v4887_v8, 0.0 }
 0x39d   : > { %v4888_v62 = vadd.f32 %v8232_v14, %v4772_v51  ;;  %v7172_v51 = vld [vmem:[%s7486_s27 + $0x168] sm:$0xff] }
 0x39e   : > { %v2650_v5 = vpop.f32.mrf.mxu2 }
 0x39f   : > { %v3623_v42 = vpop.f32.mrf.mxu3  ;;  %v2827_v13 = vadd.f32 %v2650_v5, %v1790_v47  ;;  %v5000_v11 = vmax.f32 %v4888_v62, 0.0  ;;  %v4885_v5 = vadd.f32 %v8232_v14, %v4769_v38  ;;  %v7173_v62 = vld [vmem:[%s7486_s27 + $0x170] sm:$0xff] }
 0x3a0   : > { %v1792_v6 = vpop.f32.mrf.mxu1 }
 0x3a1   : > { %v1793_v2 = vadd.f32 %v1792_v6, %v8889_v37  ;;  %v3800_v7 = vadd.f32 %v3623_v42, %v2827_v13  ;;  %v5076_v4 = vmax.f32 %v4996_v39, %v5000_v11  ;;  %v7286_v13 = vld [vmem:[%s7486_s27 + $0x188] sm:$0xff]  ;;  %v8893_v39 = vld [vmem:[#allocation56_spill] sm:$0xff] }
 0x3a2   : > { %v4599_v36 = vpop.f32.mrf.mxu0 }
 0x3a3   : > { %5917 = vmatmul.msk.bf16.gmra.mxu1 %vm687_vm2, %v7170_v16  ;;  %6315 = vmatmul.msk.bf16.gmra.mxu2 %vm687_vm2, %v7284_v48  ;;  %v4773_v52 = vadd.f32 %v4596_v28, %v3800_v7  ;;  %v7399_v28 = vld [vmem:[%s7486_s27 + $0x1a0] sm:$0xff]  ;;  %v7287_v7 = vld [vmem:[%s7486_s27 + $0x190] sm:$0xff] }
 0x3a4   : > { %6713 = vmatmul.msk.bf16.gmra.mxu3 %vm687_vm2, %v7341_v22 }
 0x3a5   : > { %7111 = vmatmul.msk.bf16.gmra.mxu0 %vm687_vm2, %v7398_v12  ;;  %v4889_v43 = vadd.f32 %v8232_v14, %v4773_v52  ;;  %v4997_v12 = vmax.f32 %v4885_v5, 0.0  ;;  %v8891_v52 = vld [vmem:[#allocation62_spill] sm:$0xff]  ;;  %v8894_v5 = vld [vmem:[#allocation65_spill] sm:$0xff] }
 0x3a6   : > { %v2653_v44 = vpop.f32.mrf.mxu2 }
 0x3a7   : > { %v2828_v10 = vadd.f32 %v2653_v44, %v1793_v2  ;;  %v3626_v50 = vpop.f32.mrf.mxu3  ;;  %v5001_v16 = vmax.f32 %v4889_v43, 0.0  ;;  %v7343_v2 = vld [vmem:[%s7486_s27 + $0x198] sm:$0xff] }
 0x3a8   : > { %v1794_v46 = vpop.f32.mrf.mxu1 }
 0x3a9   : > { %v3801_v54 = vadd.f32 %v3626_v50, %v2828_v10  ;;  %v1795_v49 = vadd.f32 %v1794_v46, %v8890_v45  ;;  %v5077_v59 = vmax.f32 %v4997_v12, %v5001_v16  ;;  %v8892_v45 = vld [vmem:[#allocation50_spill] sm:$0xff] }
 0x3aa   : > { %v4601_v26 = vpop.f32.mrf.mxu0 }
 0x3ab   : > { %v4774_v55 = vadd.f32 %v4599_v36, %v3801_v54 }
 0x3ad   : > { %v4890_v15 = vadd.f32 %v8232_v14, %v4774_v55 }
 0x3ae   : > { %v2655_v24 = vpop.f32.mrf.mxu2 }
 0x3af   : > { %v5002_v32 = vmax.f32 %v4890_v15, 0.0  ;;  %v2829_v56 = vadd.f32 %v2655_v24, %v1795_v49  ;;  %v3628_v3 = vpop.f32.mrf.mxu3 }
 0x3b0   : > { %v8498_v20 = vpop.f32.mrf.mxu1 }
 0x3b1   : > { %v5078_v35 = vmax.f32 %v4998_v17, %v5002_v32  ;;  %v3802_v31 = vadd.f32 %v3628_v3, %v2829_v56  ;;  %v1798_v49 = vadd.f32 %v8498_v20, %v8892_v45  ;;  %v7174_v3 = vld [vmem:[%s7486_s27 + $0x178] sm:$0xff] }
 0x3b2   : > { %v8503_v1 = vpop.f32.mrf.mxu0  ;;  %v8895_v20 = vld [vmem:[#allocation53_spill] sm:$0xff] }
 0x3b3   : > { %v5116_v60 = vmax.f32 %v5076_v4, %v5078_v35  ;;  %v4775_v42 = vadd.f32 %v4601_v26, %v3802_v31  ;;  %5918 = vmatmul.msk.bf16.gmra.mxu1 %vm687_vm2, %v7171_v0  ;;  %6316 = vmatmul.msk.bf16.gmra.mxu2 %vm687_vm2, %v7285_v33  ;;  %v7344_v26 = vld [vmem:[%s7486_s27 + $0x1a0] sm:$0xff]  ;;  %v7288_v0 = vld [vmem:[%s7486_s27 + $0x198] sm:$0xff] }
 0x3b4   : > { %6714 = vmatmul.msk.bf16.gmra.mxu3 %vm687_vm2, %v7342_v29  ;;  %v7345_v29 = vld [vmem:[%s7486_s27 + $0x1a8] sm:$0xff] }
 0x3b5   : > { %7112 = vmatmul.msk.bf16.gmra.mxu0 %vm687_vm2, %v7399_v28  ;;  %v5144_v48 = vpack.c.bf16 %v5116_v60, %v5116_v60  ;;  %v4891_v6 = vadd.f32 %v8232_v14, %v4775_v42  ;;  %v7402_v28 = vld [vmem:[%s7486_s27 + $0x1b8] sm:$0xff]  ;;  %v8896_v42 = vld [vmem:[#allocation59_spill] sm:$0xff] }
 0x3b6   : > { %v2658_v22 = vpop.f32.mrf.mxu2 }
 0x3b7   : > { %5173 = vst.msk [vmem:[%s7966_s6 + $0x40] sm:$0xf] %vm5156_vm3, %v5144_v48  ;;  %v5003_v36 = vmax.f32 %v4891_v6, 0.0  ;;  %v3631_v58 = vpop.f32.mrf.mxu3  ;;  %v2830_v17 = vadd.f32 %v2658_v22, %v1798_v49  ;;  %v8897_v22 = vld [vmem:[#allocation68_spill] sm:$0xff] }
 0x3b8   : > { %v1799_v53 = vpop.f32.mrf.mxu1  ;;  %v7346_v49 = vld [vmem:[%s7486_s27 + $0x1b0] sm:$0xff] }
 0x3b9   : > { %v5079_v47 = vmax.f32 %v4999_v41, %v5003_v36  ;;  %v3803_v35 = vadd.f32 %v3631_v58, %v2830_v17  ;;  %v1800_v60 = vadd.f32 %v1799_v53, %v8895_v20  ;;  %v8558_v53 = vld [vmem:[%s8755_s2] ss:$0 sm:$0xff] }
 0x3ba   : > { %v8514_v57 = vpop.f32.mrf.mxu0 }
 0x3bb   : > { %v5117_v21 = vmax.f32 %v5077_v59, %v5079_v47  ;;  %v4776_v41 = vadd.f32 %v8503_v1, %v3803_v35 }
 0x3bd   : > { %v5145_v27 = vpack.c.bf16 %v5117_v21, %v5117_v21 }
 0x3be   : > { %v2660_v25 = vpop.f32.mrf.mxu2 }
 0x3bf   : > { %5174 = vst.msk [vmem:[%s7966_s6 + $0x44] sm:$0xf] %vm5156_vm3, %v5145_v27  ;;  %v8518_v14 = vpop.f32.mrf.mxu3  ;;  %v2831_v36 = vadd.f32 %v2660_v25, %v1800_v60 }
 0x3c0   : > { %v1802_v37 = vpop.f32.mrf.mxu1 }
 0x3c1   : > { %v1803_v38 = vadd.f32 %v1802_v37, %v8893_v39  ;;  %v3804_v1 = vadd.f32 %v8518_v14, %v2831_v36  ;;  %v7404_v36 = vld [vmem:[%s7486_s27 + $0x1c8] sm:$0xff] }
 0x3c2   : > { %v4609_v40 = vpop.f32.mrf.mxu0 }
 0x3c3   : > { %5919 = vmatmul.msk.bf16.gmra.mxu1 %vm687_vm2, %v7172_v51  ;;  %6317 = vmatmul.msk.bf16.gmra.mxu2 %vm687_vm2, %v7286_v13 }
 0x3c4   : > { %6715 = vmatmul.msk.bf16.gmra.mxu3 %vm687_vm2, %v7343_v2 }
 0x3c5   : > { %7113 = vmatmul.msk.bf16.gmra.mxu0 %vm687_vm2, %v7400_v63 }
 0x3c6   : > { %v2663_v44 = vpop.f32.mrf.mxu2 }
 0x3c7   : > { %v3636_v61 = vpop.f32.mrf.mxu3  ;;  %v2832_v32 = vadd.f32 %v2663_v44, %v1803_v38  ;;  %v4892_v44 = vadd.f32 %v8558_v53, %v4776_v41  ;;  %v7347_v41 = vld [vmem:[%s7486_s27 + $0x1b8] sm:$0xff] }
 0x3c8   : > { %v1804_v23 = vpop.f32.mrf.mxu1 }
 0x3c9   : > { %v3805_v31 = vadd.f32 %v3636_v61, %v2832_v32  ;;  %v1805_v16 = vadd.f32 %v1804_v23, %v8896_v42 }
 0x3ca   : > { %v8528_v10 = vpop.f32.mrf.mxu0 }
 0x3cb   : > { %v4778_v59 = vadd.f32 %v4609_v40, %v3805_v31 }
 0x3cd   : > { %v4894_v25 = vadd.f32 %v8558_v53, %v4778_v59 }
 0x3ce   : > { %v2665_v50 = vpop.f32.mrf.mxu2 }
 0x3cf   : > { %v3638_v46 = vpop.f32.mrf.mxu3  ;;  %v2833_v47 = vadd.f32 %v2665_v50, %v1805_v16 }
 0x3d0   : > { %v1807_v54 = vpop.f32.mrf.mxu1 }
 0x3d1   : > { %v1808_v15 = vadd.f32 %v1807_v54, %v8891_v52  ;;  %v3806_v40 = vadd.f32 %v3638_v46, %v2833_v47  ;;  %v7175_v46 = vld [vmem:[%s7486_s27 + $0x180] sm:$0xff] }
 0x3d2   : > { %v4614_v30 = vpop.f32.mrf.mxu0 }
 0x3d3   : > { %5920 = vmatmul.msk.bf16.gmra.mxu1 %vm687_vm2, %v7173_v62  ;;  %6318 = vmatmul.msk.bf16.gmra.mxu2 %vm687_vm2, %v7287_v7  ;;  %v8898_v7 = vld [vmem:[#allocation71_spill] sm:$0xff]  ;;  %v4779_v14 = vadd.f32 %v8528_v10, %v3806_v40 }
 0x3d4   : > { %6716 = vmatmul.msk.bf16.gmra.mxu3 %vm687_vm2, %v7344_v26  ;;  %v5004_v26 = vmax.f32 %v4892_v44, 0.0  ;;  %v7348_v44 = vld [vmem:[%s7486_s27 + $0x1c0] sm:$0xff] }
 0x3d5   : > { %7114 = vmatmul.msk.bf16.gmra.mxu0 %vm687_vm2, %v7401_v9  ;;  %v4777_v9 = vadd.f32 %v8514_v57, %v3804_v1  ;;  %v4895_v10 = vadd.f32 %v8558_v53, %v4779_v14  ;;  %v7405_v1 = vld [vmem:[%s7486_s27 + $0x1d0] sm:$0xff] }
 0x3d6   : > { %v2668_v19 = vpop.f32.mrf.mxu2 }
 0x3d7   : > { %v3641_v18 = vpop.f32.mrf.mxu3  ;;  %v2834_v24 = vadd.f32 %v2668_v19, %v1808_v15  ;;  %v5006_v19 = vmax.f32 %v4894_v25, 0.0  ;;  %v7289_v15 = vld [vmem:[%s7486_s27 + $0x1a0] sm:$0xff] }
 0x3d8   : > { %v1809_v55 = vpop.f32.mrf.mxu1 }
 0x3d9   : > { %v3807_v4 = vadd.f32 %v3641_v18, %v2834_v24  ;;  %v1810_v8 = vadd.f32 %v1809_v55, %v8894_v5 }
 0x3da   : > { %v4616_v11 = vpop.f32.mrf.mxu0 }
 0x3db   : > { %v4780_v48 = vadd.f32 %v4614_v30, %v3807_v4  ;;  %v5007_v4 = vmax.f32 %v4895_v10, 0.0  ;;  %v8902_v10 = vld [vmem:[#allocation6_spill] sm:$0xff] }
 0x3dd   : > { %v4896_v13 = vadd.f32 %v8558_v53, %v4780_v48 }
 0x3de   : > { %v2670_v34 = vpop.f32.mrf.mxu2 }
 0x3df   : > { %v3643_v56 = vpop.f32.mrf.mxu3  ;;  %v2835_v6 = vadd.f32 %v2670_v34, %v1810_v8  ;;  %v5008_v23 = vmax.f32 %v4896_v13, 0.0  ;;  %v4893_v34 = vadd.f32 %v8558_v53, %v4777_v9  ;;  %v8901_v9 = vld [vmem:[#allocation83_spill] sm:$0xff] }
 0x3e0   : > { %v1812_v33 = vpop.f32.mrf.mxu1 }
 0x3e1   : > { %v1813_v12 = vadd.f32 %v1812_v33, %v8897_v22  ;;  %v3808_v37 = vadd.f32 %v3643_v56, %v2835_v6  ;;  %v5080_v39 = vmax.f32 %v5004_v26, %v5008_v23  ;;  %v7176_v6 = vld [vmem:[%s7486_s27 + $0x188] sm:$0xff] }
 0x3e2   : > { %v4619_v43 = vpop.f32.mrf.mxu0  ;;  %v7290_v22 = vld [vmem:[%s7486_s27 + $0x1a8] sm:$0xff] }
 0x3e3   : > { %5921 = vmatmul.msk.bf16.gmra.mxu1 %vm687_vm2, %v7174_v3  ;;  %6319 = vmatmul.msk.bf16.gmra.mxu2 %vm687_vm2, %v7288_v0  ;;  %v4781_v50 = vadd.f32 %v4616_v11, %v3808_v37  ;;  %v7403_v11 = vld [vmem:[%s7486_s27 + $0x1c0] sm:$0xff]  ;;  %v7177_v37 = vld [vmem:[%s7486_s27 + $0x190] sm:$0xff] }
 0x3e4   : > { %6717 = vmatmul.msk.bf16.gmra.mxu3 %vm687_vm2, %v7345_v29 }
 0x3e5   : > { %7115 = vmatmul.msk.bf16.gmra.mxu0 %vm687_vm2, %v7402_v28  ;;  %v4897_v38 = vadd.f32 %v8558_v53, %v4781_v50  ;;  %v5005_v28 = vmax.f32 %v4893_v34, 0.0 }
 0x3e6   : > { %v2673_v58 = vpop.f32.mrf.mxu2 }
 0x3e7   : > { %v2836_v21 = vadd.f32 %v2673_v58, %v1813_v12  ;;  %v3646_v27 = vpop.f32.mrf.mxu3  ;;  %v5009_v3 = vmax.f32 %v4897_v38, 0.0 }
 0x3e8   : > { %v1814_v51 = vpop.f32.mrf.mxu1 }
 0x3e9   : > { %v3809_v2 = vadd.f32 %v3646_v27, %v2836_v21  ;;  %v1815_v54 = vadd.f32 %v1814_v51, %v8898_v7  ;;  %v5081_v5 = vmax.f32 %v5005_v28, %v5009_v3  ;;  %v8904_v3 = vld [vmem:[#allocation87_spill] sm:$0xff]  ;;  %v8905_v28 = vld [vmem:[#allocation9_spill] sm:$0xff] }
 0x3ea   : > { %v4621_v63 = vpop.f32.mrf.mxu0 }
 0x3eb   : > { %v4782_v61 = vadd.f32 %v4619_v43, %v3809_v2  ;;  %v7291_v2 = vld [vmem:[%s7486_s27 + $0x1b0] sm:$0xff] }
 0x3ed   : > { %v4898_v62 = vadd.f32 %v8558_v53, %v4782_v61 }
 0x3ee   : > { %v2675_v30 = vpop.f32.mrf.mxu2 }
 0x3ef   : > { %v5010_v18 = vmax.f32 %v4898_v62, 0.0  ;;  %v2837_v55 = vadd.f32 %v2675_v30, %v1815_v54  ;;  %v3648_v52 = vpop.f32.mrf.mxu3  ;;  %v8899_v62 = vld [vmem:[#allocation3_spill] sm:$0xff] }
 0x3f0   : > { %v8570_v45 = vpop.f32.mrf.mxu1  ;;  %v8900_v54 = vld [vmem:[#allocation75_spill] sm:$0xff] }
 0x3f1   : > { %v5082_v24 = vmax.f32 %v5006_v19, %v5010_v18  ;;  %v3810_v17 = vadd.f32 %v3648_v52, %v2837_v55  ;;  %v1818_v26 = vadd.f32 %v8570_v45, %v8900_v54  ;;  %v8903_v45 = vld [vmem:[#allocation79_spill] sm:$0xff] }
 0x3f2   : > { %v8575_v57 = vpop.f32.mrf.mxu0 }
 0x3f3   : > { %v5118_v32 = vmax.f32 %v5080_v39, %v5082_v24  ;;  %v4783_v56 = vadd.f32 %v4621_v63, %v3810_v17  ;;  %5922 = vmatmul.msk.bf16.gmra.mxu1 %vm687_vm2, %v7175_v46  ;;  %6320 = vmatmul.msk.bf16.gmra.mxu2 %vm687_vm2, %v7289_v15  ;;  %v7178_v46 = vld [vmem:[%s7486_s27 + $0x198] sm:$0xff] }
 0x3f4   : > { %6718 = vmatmul.msk.bf16.gmra.mxu3 %vm687_vm2, %v7346_v49  ;;  %v7292_v15 = vld [vmem:[%s7486_s27 + $0x1b8] sm:$0xff] }
 0x3f5   : > { %7116 = vmatmul.msk.bf16.gmra.mxu0 %vm687_vm2, %v7403_v11  ;;  %v5146_v0 = vpack.c.bf16 %v5118_v32, %v5118_v32  ;;  %v4899_v33 = vadd.f32 %v8558_v53, %v4783_v56  ;;  %v7349_v11 = vld [vmem:[%s7486_s27 + $0x1c8] sm:$0xff]  ;;  %v7406_v39 = vld [vmem:[%s7486_s27 + $0x1d8] sm:$0xff] }
 0x3f6   : > { %v2678_v29 = vpop.f32.mrf.mxu2 }
 0x3f7   : > { %5175 = vst.msk [vmem:[%s7966_s6 + $0x48] sm:$0xf] %vm5156_vm3, %v5146_v0  ;;  %v5011_v43 = vmax.f32 %v4899_v33, 0.0  ;;  %v3651_v35 = vpop.f32.mrf.mxu3  ;;  %v2838_v14 = vadd.f32 %v2678_v29, %v1818_v26  ;;  %v7350_v26 = vld [vmem:[%s7486_s27 + $0x1d0] sm:$0xff] }
 0x3f8   : > { %v1819_v31 = vpop.f32.mrf.mxu1 }
 0x3f9   : > { %v5083_v8 = vmax.f32 %v5007_v4, %v5011_v43  ;;  %v3811_v17 = vadd.f32 %v3651_v35, %v2838_v14  ;;  %v1820_v56 = vadd.f32 %v1819_v31, %v8903_v45 }
 0x3fa   : > { %v8586_v20 = vpop.f32.mrf.mxu0 }
 0x3fb   : > { %v5119_v60 = vmax.f32 %v5081_v5, %v5083_v8  ;;  %v4784_v43 = vadd.f32 %v8575_v57, %v3811_v17 }
 0x3fd   : > { %v5147_v42 = vpack.c.bf16 %v5119_v60, %v5119_v60 }
 0x3fe   : > { %v2680_v16 = vpop.f32.mrf.mxu2 }
 0x3ff   : > { %5176 = vst.msk [vmem:[%s7966_s6 + $0x4c] sm:$0xf] %vm5156_vm3, %v5147_v42  ;;  %v8590_v48 = vpop.f32.mrf.mxu3  ;;  %v2839_v35 = vadd.f32 %v2680_v16, %v1820_v56 }
 0x400   : > { %v1822_v12 = vpop.f32.mrf.mxu1 }
 0x401   : > { %v1823_v30 = vadd.f32 %v1822_v12, %v8901_v9 }
 0x402   : > { %v4629_v58 = vpop.f32.mrf.mxu0 }
 0x403   : > { %5923 = vmatmul.msk.bf16.gmra.mxu1 %vm687_vm2, %v7176_v6  ;;  %6321 = vmatmul.msk.bf16.gmra.mxu2 %vm687_vm2, %v7290_v22 }
 0x404   : > { %6719 = vmatmul.msk.bf16.gmra.mxu3 %vm687_vm2, %v7347_v41 }
 0x405   : > { %7117 = vmatmul.msk.bf16.gmra.mxu0 %vm687_vm2, %v7404_v36 }
 0x406   : > { %v2683_v59 = vpop.f32.mrf.mxu2 }
 0x407   : > { %v3656_v47 = vpop.f32.mrf.mxu3  ;;  %v2840_v55 = vadd.f32 %v2683_v59, %v1823_v30  ;;  %v4900_v59 = vadd.f32 %v8558_v53, %v4784_v43  ;;  %v7351_v43 = vld [vmem:[%s7486_s27 + $0x1d8] sm:$0xff] }
 0x408   : > { %v1824_v21 = vpop.f32.mrf.mxu1 }
 0x409   : > { %v3813_v34 = vadd.f32 %v3656_v47, %v2840_v55  ;;  %v1825_v0 = vadd.f32 %v1824_v21, %v8904_v3  ;;  %v3812_v47 = vadd.f32 %v8590_v48, %v2839_v35  ;;  %v7408_v35 = vld [vmem:[%s7486_s27 + $0x1e8] sm:$0xff] }
 0x40a   : > { %v8600_v27 = vpop.f32.mrf.mxu0 }
 0x40b   : > { %v4786_v8 = vadd.f32 %v4629_v58, %v3813_v34 }
 0x40d   : > { %v4902_v21 = vadd.f32 %v8558_v53, %v4786_v8 }
 0x40e   : > { %v2685_v51 = vpop.f32.mrf.mxu2 }
 0x40f   : > { %v3658_v13 = vpop.f32.mrf.mxu3  ;;  %v2841_v60 = vadd.f32 %v2685_v51, %v1825_v0 }
 0x410   : > { %v1827_v63 = vpop.f32.mrf.mxu1 }
 0x411   : > { %v1828_v7 = vadd.f32 %v1827_v63, %v8899_v62  ;;  %v3814_v57 = vadd.f32 %v3658_v13, %v2841_v60  ;;  %v7179_v13 = vld [vmem:[%s7486_s27 + $0x1a0] sm:$0xff] }
 0x412   : > { %v4634_v25 = vpop.f32.mrf.mxu0 }
 0x413   : > { %5924 = vmatmul.msk.bf16.gmra.mxu1 %vm687_vm2, %v7177_v37  ;;  %6322 = vmatmul.msk.bf16.gmra.mxu2 %vm687_vm2, %v7291_v2  ;;  %v8906_v2 = vld [vmem:[#allocation12_spill] sm:$0xff]  ;;  %v4787_v48 = vadd.f32 %v8600_v27, %v3814_v57 }
 0x414   : > { %6720 = vmatmul.msk.bf16.gmra.mxu3 %vm687_vm2, %v7348_v44  ;;  %v5012_v44 = vmax.f32 %v4900_v59, 0.0  ;;  %v7352_v59 = vld [vmem:[%s7486_s27 + $0x1e0] sm:$0xff] }
 0x415   : > { %7118 = vmatmul.msk.bf16.gmra.mxu0 %vm687_vm2, %v7405_v1  ;;  %v4785_v1 = vadd.f32 %v8586_v20, %v3812_v47  ;;  %v4903_v27 = vadd.f32 %v8558_v53, %v4787_v48  ;;  %v7409_v47 = vld [vmem:[%s7486_s27 + $0x1f0] sm:$0xff] }
 0x416   : > { %v2688_v40 = vpop.f32.mrf.mxu2 }
 0x417   : > { %v3661_v61 = vpop.f32.mrf.mxu3  ;;  %v2842_v19 = vadd.f32 %v2688_v40, %v1828_v7  ;;  %v5014_v40 = vmax.f32 %v4902_v21, 0.0  ;;  %v7293_v7 = vld [vmem:[%s7486_s27 + $0x1c0] sm:$0xff] }
 0x418   : > { %v1829_v23 = vpop.f32.mrf.mxu1 }
 0x419   : > { %v3815_v38 = vadd.f32 %v3661_v61, %v2842_v19  ;;  %v1830_v32 = vadd.f32 %v1829_v23, %v8902_v10 }
 0x41a   : > { %v4636_v50 = vpop.f32.mrf.mxu0 }
 0x41b   : > { %v4788_v33 = vadd.f32 %v4634_v25, %v3815_v38  ;;  %v5015_v38 = vmax.f32 %v4903_v27, 0.0  ;;  %v8910_v27 = vld [vmem:[#allocation30_spill] sm:$0xff] }
 0x41d   : > { %v4904_v31 = vadd.f32 %v8558_v53, %v4788_v33 }
 0x41e   : > { %v2690_v18 = vpop.f32.mrf.mxu2 }
 0x41f   : > { %v3663_v52 = vpop.f32.mrf.mxu3  ;;  %v2843_v29 = vadd.f32 %v2690_v18, %v1830_v32  ;;  %v5016_v58 = vmax.f32 %v4904_v31, 0.0  ;;  %v4901_v18 = vadd.f32 %v8558_v53, %v4785_v1  ;;  %v8909_v1 = vld [vmem:[#allocation21_spill] sm:$0xff] }
 0x420   : > { %v1832_v49 = vpop.f32.mrf.mxu1 }
 0x421   : > { %v1833_v4 = vadd.f32 %v1832_v49, %v8905_v28  ;;  %v3816_v12 = vadd.f32 %v3663_v52, %v2843_v29  ;;  %v5084_v9 = vmax.f32 %v5012_v44, %v5016_v58  ;;  %v7180_v29 = vld [vmem:[%s7486_s27 + $0x1a8] sm:$0xff] }
 0x422   : > { %v4639_v24 = vpop.f32.mrf.mxu0  ;;  %v7294_v28 = vld [vmem:[%s7486_s27 + $0x1c8] sm:$0xff] }
 0x423   : > { %5925 = vmatmul.msk.bf16.gmra.mxu1 %vm687_vm2, %v7178_v46  ;;  %6323 = vmatmul.msk.bf16.gmra.mxu2 %vm687_vm2, %v7292_v15  ;;  %v4789_v51 = vadd.f32 %v4636_v50, %v3816_v12  ;;  %v7407_v50 = vld [vmem:[%s7486_s27 + $0x1e0] sm:$0xff]  ;;  %v7181_v12 = vld [vmem:[%s7486_s27 + $0x1b0] sm:$0xff] }
 0x424   : > { %6721 = vmatmul.msk.bf16.gmra.mxu3 %vm687_vm2, %v7349_v11 }
 0x425   : > { %7119 = vmatmul.msk.bf16.gmra.mxu0 %vm687_vm2, %v7406_v39  ;;  %v4905_v30 = vadd.f32 %v8558_v53, %v4789_v51  ;;  %v5013_v39 = vmax.f32 %v4901_v18, 0.0 }
 0x426   : > { %v2693_v5 = vpop.f32.mrf.mxu2 }
 0x427   : > { %v2844_v42 = vadd.f32 %v2693_v5, %v1833_v4  ;;  %v3666_v6 = vpop.f32.mrf.mxu3  ;;  %v5017_v46 = vmax.f32 %v4905_v30, 0.0 }
 0x428   : > { %v1834_v22 = vpop.f32.mrf.mxu1 }
 0x429   : > { %v3817_v41 = vadd.f32 %v3666_v6, %v2844_v42  ;;  %v1835_v63 = vadd.f32 %v1834_v22, %v8906_v2  ;;  %v5085_v10 = vmax.f32 %v5013_v39, %v5017_v46  ;;  %v8912_v46 = vld [vmem:[#allocation24_spill] sm:$0xff]  ;;  %v8913_v39 = vld [vmem:[#allocation33_spill] sm:$0xff] }
 0x42a   : > { %v4641_v36 = vpop.f32.mrf.mxu0 }
 0x42b   : > { %v4790_v16 = vadd.f32 %v4639_v24, %v3817_v41  ;;  %v7295_v41 = vld [vmem:[%s7486_s27 + $0x1d0] sm:$0xff] }
 0x42d   : > { %v4906_v37 = vadd.f32 %v8558_v53, %v4790_v16 }
 0x42e   : > { %v2695_v25 = vpop.f32.mrf.mxu2 }
 0x42f   : > { %v5018_v61 = vmax.f32 %v4906_v37, 0.0  ;;  %v2845_v23 = vadd.f32 %v2695_v25, %v1835_v63  ;;  %v3668_v62 = vpop.f32.mrf.mxu3  ;;  %v8907_v37 = vld [vmem:[#allocation27_spill] sm:$0xff] }
 0x430   : > { %v8637_v54 = vpop.f32.mrf.mxu1  ;;  %v8908_v63 = vld [vmem:[#allocation15_spill] sm:$0xff] }
 0x431   : > { %v5086_v19 = vmax.f32 %v5014_v40, %v5018_v61  ;;  %v3818_v14 = vadd.f32 %v3668_v62, %v2845_v23  ;;  %v1838_v44 = vadd.f32 %v8637_v54, %v8908_v63  ;;  %v8911_v54 = vld [vmem:[#allocation18_spill] sm:$0xff] }
 0x432   : > { %v8642_v20 = vpop.f32.mrf.mxu0 }
 0x433   : > { %v5120_v55 = vmax.f32 %v5084_v9, %v5086_v19  ;;  %v4791_v52 = vadd.f32 %v4641_v36, %v3818_v14  ;;  %5926 = vmatmul.msk.bf16.gmra.mxu1 %vm687_vm2, %v7179_v13  ;;  %6324 = vmatmul.msk.bf16.gmra.mxu2 %vm687_vm2, %v7293_v7  ;;  %v7182_v13 = vld [vmem:[%s7486_s27 + $0x1b8] sm:$0xff] }
 0x434   : > { %6722 = vmatmul.msk.bf16.gmra.mxu3 %vm687_vm2, %v7350_v26  ;;  %v7296_v7 = vld [vmem:[%s7486_s27 + $0x1d8] sm:$0xff] }
 0x435   : > { %7120 = vmatmul.msk.bf16.gmra.mxu0 %vm687_vm2, %v7407_v50  ;;  %v5148_v15 = vpack.c.bf16 %v5120_v55, %v5120_v55  ;;  %v4907_v49 = vadd.f32 %v8558_v53, %v4791_v52  ;;  %v7353_v50 = vld [vmem:[%s7486_s27 + $0x1e8] sm:$0xff]  ;;  %v7410_v9 = vld [vmem:[%s7486_s27 + $0x1f8] sm:$0xff] }
 0x436   : > { %v2698_v11 = vpop.f32.mrf.mxu2 }
 0x437   : > { %5177 = vst.msk [vmem:[%s7966_s6 + $0x50] sm:$0xf] %vm5156_vm3, %v5148_v15  ;;  %v5019_v24 = vmax.f32 %v4907_v49, 0.0  ;;  %v3671_v17 = vpop.f32.mrf.mxu3  ;;  %v2846_v48 = vadd.f32 %v2698_v11, %v1838_v44 }
 0x438   : > { %v1839_v34 = vpop.f32.mrf.mxu1 }
 0x439   : > { %v5087_v32 = vmax.f32 %v5015_v38, %v5019_v24  ;;  %v3819_v14 = vadd.f32 %v3671_v17, %v2846_v48  ;;  %v1840_v52 = vadd.f32 %v1839_v34, %v8911_v54 }
 0x43a   : > { %v8653_v45 = vpop.f32.mrf.mxu0 }
 0x43b   : > { %v5121_v56 = vmax.f32 %v5085_v10, %v5087_v32  ;;  %v4792_v24 = vadd.f32 %v8642_v20, %v3819_v14 }
 0x43d   : > { %v5149_v3 = vpack.c.bf16 %v5121_v56, %v5121_v56 }
 0x43e   : > { %v2700_v0 = vpop.f32.mrf.mxu2 }
 0x43f   : > { %5178 = vst.msk [vmem:[%s7966_s6 + $0x54] sm:$0xf] %vm5156_vm3, %v5149_v3  ;;  %v8657_v33 = vpop.f32.mrf.mxu3  ;;  %v2847_v17 = vadd.f32 %v2700_v0, %v1840_v52 }
 0x440   : > { %v1842_v4 = vpop.f32.mrf.mxu1 }
 0x441   : > { %v1843_v25 = vadd.f32 %v1842_v4, %v8909_v1 }
 0x442   : > { %v4649_v5 = vpop.f32.mrf.mxu0 }
 0x443   : > { %5927 = vmatmul.msk.bf16.gmra.mxu1 %vm687_vm2, %v7180_v29  ;;  %6325 = vmatmul.msk.bf16.gmra.mxu2 %vm687_vm2, %v7294_v28 }
 0x444   : > { %6723 = vmatmul.msk.bf16.gmra.mxu3 %vm687_vm2, %v7351_v43 }
 0x445   : > { %7121 = vmatmul.msk.bf16.gmra.mxu0 %vm687_vm2, %v7408_v35 }
 0x446   : > { %v2703_v8 = vpop.f32.mrf.mxu2 }
 0x447   : > { %v3676_v60 = vpop.f32.mrf.mxu3  ;;  %v2848_v23 = vadd.f32 %v2703_v8, %v1843_v25  ;;  %v4908_v8 = vadd.f32 %v8558_v53, %v4792_v24 }
 0x448   : > { %v1844_v42 = vpop.f32.mrf.mxu1 }
 0x449   : > { %v3821_v18 = vadd.f32 %v3676_v60, %v2848_v23  ;;  %v1845_v15 = vadd.f32 %v1844_v42, %v8912_v46  ;;  %v3820_v60 = vadd.f32 %v8657_v33, %v2847_v17 }
 0x44a   : > { %v8667_v6 = vpop.f32.mrf.mxu0 }
 0x44b   : > { %v4794_v32 = vadd.f32 %v4649_v5, %v3821_v18 }
 0x44d   : > { %v4910_v42 = vadd.f32 %v8558_v53, %v4794_v32 }
 0x44e   : > { %v2705_v22 = vpop.f32.mrf.mxu2 }
 0x44f   : > { %v3678_v31 = vpop.f32.mrf.mxu3  ;;  %v2849_v56 = vadd.f32 %v2705_v22, %v1845_v15  ;;  %v8914_v22 = vld [vmem:[#allocation36_spill] sm:$0xff] }
 0x450   : > { %v1847_v36 = vpop.f32.mrf.mxu1 }
 0x451   : > { %v1848_v2 = vadd.f32 %v1847_v36, %v8907_v37 }
 0x452   : > { %v4654_v21 = vpop.f32.mrf.mxu0 }
 0x453   : > { %5928 = vmatmul.msk.bf16.gmra.mxu1 %vm687_vm2, %v7181_v12  ;;  %6326 = vmatmul.msk.bf16.gmra.mxu2 %vm687_vm2, %v7295_v41  ;;  %v3822_v12 = vadd.f32 %v3678_v31, %v2849_v56 }
 0x454   : > { %6724 = vmatmul.msk.bf16.gmra.mxu3 %vm687_vm2, %v7352_v59  ;;  %v5020_v59 = vmax.f32 %v4908_v8, 0.0 }
 0x455   : > { %7122 = vmatmul.msk.bf16.gmra.mxu0 %vm687_vm2, %v7409_v47  ;;  %v4793_v47 = vadd.f32 %v8653_v45, %v3820_v60 }
 0x456   : > { %v2708_v57 = vpop.f32.mrf.mxu2 }
 0x457   : > { %v3681_v16 = vpop.f32.mrf.mxu3  ;;  %v2850_v40 = vadd.f32 %v2708_v57, %v1848_v2  ;;  %v5022_v57 = vmax.f32 %v4910_v42, 0.0  ;;  %v4909_v25 = vadd.f32 %v8558_v53, %v4793_v47  ;;  %v8918_v47 = vld [vmem:[#allocation54_spill] sm:$0xff] }
 0x458   : > { %v1849_v58 = vpop.f32.mrf.mxu1 }
 0x459   : > { %v3823_v30 = vadd.f32 %v3681_v16, %v2850_v40  ;;  %v1850_v55 = vadd.f32 %v1849_v58, %v8910_v27  ;;  %v4795_v16 = vadd.f32 %v8667_v6, %v3822_v12 }
 0x45a   : > { %v4656_v51 = vpop.f32.mrf.mxu0 }
 0x45b   : > { %v4796_v49 = vadd.f32 %v4654_v21, %v3823_v30  ;;  %v4911_v40 = vadd.f32 %v8558_v53, %v4795_v16 }
 0x45d   : > { %v4912_v34 = vadd.f32 %v8558_v53, %v4796_v49 }
 0x45e   : > { %v2710_v61 = vpop.f32.mrf.mxu2 }
 0x45f   : > { %v3683_v62 = vpop.f32.mrf.mxu3  ;;  %v2851_v11 = vadd.f32 %v2710_v61, %v1850_v55  ;;  %v5024_v0 = vmax.f32 %v4912_v34, 0.0 }
 0x460   : > { %v1852_v26 = vpop.f32.mrf.mxu1 }
 0x461   : > { %v1853_v38 = vadd.f32 %v1852_v26, %v8913_v39  ;;  %v3824_v4 = vadd.f32 %v3683_v62, %v2851_v11  ;;  %v5088_v31 = vmax.f32 %v5020_v59, %v5024_v0 }
 0x462   : > { %v4659_v19 = vpop.f32.mrf.mxu0 }
 0x463   : > { %5929 = vmatmul.msk.bf16.gmra.mxu1 %vm687_vm2, %v7182_v13  ;;  %6327 = vmatmul.msk.bf16.gmra.mxu2 %vm687_vm2, %v7296_v7  ;;  %v4797_v41 = vadd.f32 %v4656_v51, %v3824_v4  ;;  %v5021_v13 = vmax.f32 %v4909_v25, 0.0  ;;  %v5023_v7 = vmax.f32 %v4911_v40, 0.0  ;;  %v8916_v4 = vld [vmem:[#allocation39_spill] sm:$0xff] }
 0x464   : > { %6725 = vmatmul.msk.bf16.gmra.mxu3 %vm687_vm2, %v7353_v50 }
 0x465   : > { %7123 = vmatmul.msk.bf16.gmra.mxu0 %vm687_vm2, %v7410_v9  ;;  %v4913_v63 = vadd.f32 %v8558_v53, %v4797_v41 }
 0x466   : > { %v2713_v10 = vpop.f32.mrf.mxu2 }
 0x467   : > { %v2852_v3 = vadd.f32 %v2713_v10, %v1853_v38  ;;  %v3686_v29 = vpop.f32.mrf.mxu3  ;;  %v5025_v61 = vmax.f32 %v4913_v63, 0.0 }
 0x468   : > { %v1854_v28 = vpop.f32.mrf.mxu1 }
 0x469   : > { %v3825_v43 = vadd.f32 %v3686_v29, %v2852_v3  ;;  %v1855_v36 = vadd.f32 %v1854_v28, %v8914_v22  ;;  %v5089_v30 = vmax.f32 %v5021_v13, %v5025_v61  ;;  %v8915_v28 = vld [vmem:[#allocation51_spill] sm:$0xff] }
 0x46a   : > { %v4661_v35 = vpop.f32.mrf.mxu0 }
 0x46b   : > { %v4798_v20 = vadd.f32 %v4659_v19, %v3825_v43 }
 0x46d   : > { %v4914_v5 = vadd.f32 %v8558_v53, %v4798_v20 }
 0x46e   : > { %v2715_v21 = vpop.f32.mrf.mxu2 }
 0x46f   : > { %v5026_v58 = vmax.f32 %v4914_v5, 0.0  ;;  %v2853_v37 = vadd.f32 %v2715_v21, %v1855_v36  ;;  %v3688_v33 = vpop.f32.mrf.mxu3 }
 0x470   : > { %v1857_v2 = vpop.f32.mrf.mxu1 }
 0x471   : > { %v5090_v51 = vmax.f32 %v5022_v57, %v5026_v58  ;;  %v3826_v44 = vadd.f32 %v3688_v33, %v2853_v37  ;;  %v1858_v43 = vadd.f32 %v1857_v2, %v8916_v4  ;;  %v8919_v57 = vld [vmem:[#allocation42_spill] sm:$0xff]  ;;  %v8920_v58 = vld [vmem:[#allocation48_spill] sm:$0xff] }
 0x472   : > { %v4664_v1 = vpop.f32.mrf.mxu0 }
 0x473   : > { %v5122_v45 = vmax.f32 %v5088_v31, %v5090_v51  ;;  %v4799_v48 = vadd.f32 %v4661_v35, %v3826_v44  ;;  %v8917_v35 = vld [vmem:[#allocation45_spill] sm:$0xff] }
 0x474   : > { %v8921_v31 = vld [vmem:[#allocation57_spill] sm:$0xff] }
 0x475   : > { %v5150_v6 = vpack.c.bf16 %v5122_v45, %v5122_v45  ;;  %v4915_v23 = vadd.f32 %v8558_v53, %v4799_v48 }
 0x476   : > { %v2718_v62 = vpop.f32.mrf.mxu2 }
 0x477   : > { %5179 = vst.msk [vmem:[%s7966_s6 + $0x58] sm:$0xf] %vm5156_vm3, %v5150_v6  ;;  %v5027_v26 = vmax.f32 %v4915_v23, 0.0  ;;  %v3691_v50 = vpop.f32.mrf.mxu3  ;;  %v2854_v42 = vadd.f32 %v2718_v62, %v1858_v43 }
 0x478   : > { %v1859_v9 = vpop.f32.mrf.mxu1 }
 0x479   : > { %v5091_v19 = vmax.f32 %v5023_v7, %v5027_v26  ;;  %v3827_v36 = vadd.f32 %v3691_v50, %v2854_v42  ;;  %v1860_v16 = vadd.f32 %v1859_v9, %v8919_v57 }
 0x47a   : > { %v4666_v14 = vpop.f32.mrf.mxu0 }
 0x47b   : > { %v5123_v18 = vmax.f32 %v5089_v30, %v5091_v19  ;;  %v4800_v51 = vadd.f32 %v4664_v1, %v3827_v36 }
 0x47d   : > { %v5151_v27 = vpack.c.bf16 %v5123_v18, %v5123_v18  ;;  %v4916_v26 = vadd.f32 %v8558_v53, %v4800_v51 }
 0x47e   : > { %v2720_v55 = vpop.f32.mrf.mxu2 }
 0x47f   : > { %5180 = vst.msk [vmem:[%s7966_s6 + $0x5c] sm:$0xf] %vm5156_vm3, %v5151_v27  ;;  %v3693_v54 = vpop.f32.mrf.mxu3  ;;  %v2855_v44 = vadd.f32 %v2720_v55, %v1860_v16  ;;  %v8922_v55 = vld [vmem:[#allocation60_spill] sm:$0xff] }
 0x480   : > { %v1862_v52 = vpop.f32.mrf.mxu1 }
 0x481   : > { %v1863_v8 = vadd.f32 %v1862_v52, %v8917_v35  ;;  %v3828_v50 = vadd.f32 %v3693_v54, %v2855_v44 }
 0x482   : > { %v4669_v46 = vpop.f32.mrf.mxu0 }
 0x486   : > { %v2723_v15 = vpop.f32.mrf.mxu2 }
 0x487   : > { %v3696_v49 = vpop.f32.mrf.mxu3  ;;  %v2856_v20 = vadd.f32 %v2723_v15, %v1863_v8  ;;  %v4801_v15 = vadd.f32 %v4666_v14, %v3828_v50 }
 0x488   : > { %v1864_v11 = vpop.f32.mrf.mxu1 }
 0x489   : > { %v3829_v59 = vadd.f32 %v3696_v49, %v2856_v20  ;;  %v1865_v37 = vadd.f32 %v1864_v11, %v8920_v58 }
 0x48a   : > { %v4671_v39 = vpop.f32.mrf.mxu0 }
 0x48b   : > { %v4802_v40 = vadd.f32 %v4669_v46, %v3829_v59  ;;  %v5028_v46 = vmax.f32 %v4916_v26, 0.0 }
 0x48d   : > { %v4918_v9 = vadd.f32 %v8558_v53, %v4802_v40 }
 0x48e   : > { %v2725_v38 = vpop.f32.mrf.mxu2 }
 0x48f   : > { %v3698_v24 = vpop.f32.mrf.mxu3  ;;  %v2857_v45 = vadd.f32 %v2725_v38, %v1865_v37  ;;  %v5030_v11 = vmax.f32 %v4918_v9, 0.0 }
 0x490   : > { %v1867_v17 = vpop.f32.mrf.mxu1 }
 0x491   : > { %v1868_v34 = vadd.f32 %v1867_v17, %v8915_v28  ;;  %v3830_v30 = vadd.f32 %v3698_v24, %v2857_v45 }
 0x492   : > { %v4674_v10 = vpop.f32.mrf.mxu0 }
 0x493   : > { %v4803_v38 = vadd.f32 %v4671_v39, %v3830_v30 }
 0x495   : > { %v4919_v4 = vadd.f32 %v8558_v53, %v4803_v38  ;;  %v8928_v38 = vld [vmem:[#allocation72_spill] sm:$0xff] }
 0x496   : > { %v2728_v32 = vpop.f32.mrf.mxu2 }
 0x497   : > { %v3701_v56 = vpop.f32.mrf.mxu3  ;;  %v2858_v60 = vadd.f32 %v2728_v32, %v1868_v34  ;;  %v4917_v34 = vadd.f32 %v8558_v53, %v4801_v15 }
 0x498   : > { %v1869_v3 = vpop.f32.mrf.mxu1 }
 0x499   : > { %v3831_v5 = vadd.f32 %v3701_v56, %v2858_v60  ;;  %v1870_v21 = vadd.f32 %v1869_v3, %v8918_v47  ;;  %v5029_v42 = vmax.f32 %v4917_v34, 0.0 }
 0x49a   : > { %v4676_v29 = vpop.f32.mrf.mxu0 }
 0x49b   : > { %v4804_v33 = vadd.f32 %v4674_v10, %v3831_v5 }
 0x49d   : > { %v4920_v23 = vadd.f32 %v8558_v53, %v4804_v33 }
 0x49e   : > { %v2730_v12 = vpop.f32.mrf.mxu2 }
 0x49f   : > { %v3703_v0 = vpop.f32.mrf.mxu3  ;;  %v2859_v2 = vadd.f32 %v2730_v12, %v1870_v21  ;;  %v5032_v1 = vmax.f32 %v4920_v23, 0.0  ;;  %v5031_v12 = vmax.f32 %v4919_v4, 0.0  ;;  %v8924_v23 = vld [vmem:[#allocation63_spill] sm:$0xff] }
 0x4a0   : > { %v1872_v41 = vpop.f32.mrf.mxu1 }
 0x4a1   : > { %v1873_v63 = vadd.f32 %v1872_v41, %v8921_v31  ;;  %v3832_v62 = vadd.f32 %v3703_v0, %v2859_v2  ;;  %v5092_v54 = vmax.f32 %v5028_v46, %v5032_v1  ;;  %v8926_v46 = vld [vmem:[#allocation80_spill] sm:$0xff] }
 0x4a2   : > { %v4679_v22 = vpop.f32.mrf.mxu0 }
 0x4a3   : > { %v4805_v18 = vadd.f32 %v4676_v29, %v3832_v62 }
 0x4a5   : > { %v4921_v24 = vadd.f32 %v8558_v53, %v4805_v18 }
 0x4a6   : > { %v2733_v25 = vpop.f32.mrf.mxu2 }
 0x4a7   : > { %v2860_v48 = vadd.f32 %v2733_v25, %v1873_v63  ;;  %v3706_v61 = vpop.f32.mrf.mxu3  ;;  %v5033_v35 = vmax.f32 %v4921_v24, 0.0 }
 0x4a8   : > { %v1874_v6 = vpop.f32.mrf.mxu1 }
 0x4a9   : > { %v3833_v13 = vadd.f32 %v3706_v61, %v2860_v48  ;;  %v1875_v52 = vadd.f32 %v1874_v6, %v8922_v55  ;;  %v5093_v5 = vmax.f32 %v5029_v42, %v5033_v35  ;;  %v8923_v61 = vld [vmem:[#allocation76_spill] sm:$0xff] }
 0x4aa   : > { %v4681_v7 = vpop.f32.mrf.mxu0 }
 0x4ab   : > { %v4806_v19 = vadd.f32 %v4679_v22, %v3833_v13  ;;  %v8925_v13 = vld [vmem:[#allocation69_spill] sm:$0xff] }
 0x4ad   : > { %v4922_v27 = vadd.f32 %v8558_v53, %v4806_v19 }
 0x4ae   : > { %v2735_v49 = vpop.f32.mrf.mxu2 }
 0x4af   : > { %v5034_v17 = vmax.f32 %v4922_v27, 0.0  ;;  %v2861_v10 = vadd.f32 %v2735_v49, %v1875_v52  ;;  %v3708_v32 = vpop.f32.mrf.mxu3  ;;  %v8927_v49 = vld [vmem:[#allocation66_spill] sm:$0xff] }
 0x4b0   : > { %v1877_v56 = vpop.f32.mrf.mxu1 }
 0x4b1   : > { %v5094_v3 = vmax.f32 %v5030_v11, %v5034_v17  ;;  %v3834_v28 = vadd.f32 %v3708_v32, %v2861_v10  ;;  %v1878_v62 = vadd.f32 %v1877_v56, %v8924_v23  ;;  %v8929_v56 = vld [vmem:[#allocation84_spill] sm:$0xff] }
 0x4b2   : > { %v4684_v29 = vpop.f32.mrf.mxu0 }
 0x4b3   : > { %v5124_v43 = vmax.f32 %v5092_v54, %v5094_v3  ;;  %v4807_v14 = vadd.f32 %v4681_v7, %v3834_v28 }
 0x4b5   : > { %v5152_v39 = vpack.c.bf16 %v5124_v43, %v5124_v43  ;;  %v4923_v8 = vadd.f32 %v8558_v53, %v4807_v14 }
 0x4b6   : > { %v2738_v60 = vpop.f32.mrf.mxu2 }
 0x4b7   : > { %5181 = vst.msk [vmem:[%s7966_s6 + $0x60] sm:$0xf] %vm5156_vm3, %v5152_v39  ;;  %v5035_v20 = vmax.f32 %v4923_v8, 0.0  ;;  %v3711_v0 = vpop.f32.mrf.mxu3  ;;  %v2862_v50 = vadd.f32 %v2738_v60, %v1878_v62 }
 0x4b8   : > { %v1879_v41 = vpop.f32.mrf.mxu1 }
 0x4b9   : > { %v5095_v22 = vmax.f32 %v5031_v12, %v5035_v20  ;;  %v3835_v55 = vadd.f32 %v3711_v0, %v2862_v50  ;;  %v1880_v11 = vadd.f32 %v1879_v41, %v8927_v49 }
 0x4ba   : > { %v4686_v36 = vpop.f32.mrf.mxu0 }
 0x4bb   : > { %v5125_v59 = vmax.f32 %v5093_v5, %v5095_v22  ;;  %v4808_v24 = vadd.f32 %v4684_v29, %v3835_v55 }
 0x4bd   : > { %v5153_v47 = vpack.c.bf16 %v5125_v59, %v5125_v59  ;;  %v4924_v42 = vadd.f32 %v8558_v53, %v4808_v24 }
 0x4be   : > { %v2740_v21 = vpop.f32.mrf.mxu2 }
 0x4bf   : > { %5182 = vst.msk [vmem:[%s7966_s6 + $0x64] sm:$0xf] %vm5156_vm3, %v5153_v47  ;;  %v3713_v57 = vpop.f32.mrf.mxu3  ;;  %v2863_v3 = vadd.f32 %v2740_v21, %v1880_v11  ;;  %v8930_v47 = vld [vmem:[#allocation88_spill] sm:$0xff] }
 0x4c0   : > { %v1882_v16 = vpop.f32.mrf.mxu1 }
 0x4c1   : > { %v1883_v7 = vadd.f32 %v1882_v16, %v8925_v13  ;;  %v3836_v12 = vadd.f32 %v3713_v57, %v2863_v3  ;;  %v5036_v16 = vmax.f32 %v4924_v42, 0.0 }
 0x4c2   : > { %v4689_v58 = vpop.f32.mrf.mxu0 }
 0x4c6   : > { %v2743_v37 = vpop.f32.mrf.mxu2 }
 0x4c7   : > { %v3716_v33 = vpop.f32.mrf.mxu3  ;;  %v2864_v19 = vadd.f32 %v2743_v37, %v1883_v7 }
 0x4c8   : > { %v1884_v2 = vpop.f32.mrf.mxu1 }
 0x4c9   : > { %v3837_v52 = vadd.f32 %v3716_v33, %v2864_v19  ;;  %v1885_v17 = vadd.f32 %v1884_v2, %v8928_v38 }
 0x4ca   : > { %v4691_v31 = vpop.f32.mrf.mxu0 }
 0x4cb   : > { %v4810_v34 = vadd.f32 %v4689_v58, %v3837_v52  ;;  %v4809_v58 = vadd.f32 %v4686_v36, %v3836_v12 }
 0x4cd   : > { %v4926_v0 = vadd.f32 %v8558_v53, %v4810_v34 }
 0x4ce   : > { %v2745_v63 = vpop.f32.mrf.mxu2 }
 0x4cf   : > { %v3718_v51 = vpop.f32.mrf.mxu3  ;;  %v2865_v4 = vadd.f32 %v2745_v63, %v1885_v17  ;;  %v5038_v33 = vmax.f32 %v4926_v0, 0.0 }
 0x4d0   : > { %v1887_v44 = vpop.f32.mrf.mxu1 }
 0x4d1   : > { %v1888_v6 = vadd.f32 %v1887_v44, %v8923_v61  ;;  %v3838_v41 = vadd.f32 %v3718_v51, %v2865_v4  ;;  %v4925_v61 = vadd.f32 %v8558_v53, %v4809_v58 }
 0x4d2   : > { %v4694_v25 = vpop.f32.mrf.mxu0 }
 0x4d3   : > { %v4811_v2 = vadd.f32 %v4691_v31, %v3838_v41  ;;  %v5037_v7 = vmax.f32 %v4925_v61, 0.0 }
 0x4d6   : > { %v2748_v40 = vpop.f32.mrf.mxu2 }
 0x4d7   : > { %v3721_v45 = vpop.f32.mrf.mxu3  ;;  %v2866_v26 = vadd.f32 %v2748_v40, %v1888_v6  ;;  %v4927_v6 = vadd.f32 %v8558_v53, %v4811_v2 }
 0x4d8   : > { %v1889_v48 = vpop.f32.mrf.mxu1 }
 0x4d9   : > { %v3839_v27 = vadd.f32 %v3721_v45, %v2866_v26  ;;  %v1890_v15 = vadd.f32 %v1889_v48, %v8926_v46  ;;  %v5039_v26 = vmax.f32 %v4927_v6, 0.0 }
 0x4da   : > { %v4696_v9 = vpop.f32.mrf.mxu0 }
 0x4db   : > { %v4812_v10 = vadd.f32 %v4694_v25, %v3839_v27 }
 0x4dd   : > { %v4928_v39 = vadd.f32 %v8558_v53, %v4812_v10 }
 0x4de   : > { %v2750_v30 = vpop.f32.mrf.mxu2 }
 0x4df   : > { %v3723_v1 = vpop.f32.mrf.mxu3  ;;  %v2867_v32 = vadd.f32 %v2750_v30, %v1890_v15  ;;  %v5040_v29 = vmax.f32 %v4928_v39, 0.0 }
 0x4e0   : > { %v1892_v18 = vpop.f32.mrf.mxu1 }
 0x4e1   : > { %v1893_v54 = vadd.f32 %v1892_v18, %v8929_v56  ;;  %v3840_v8 = vadd.f32 %v3723_v1, %v2867_v32  ;;  %v5096_v25 = vmax.f32 %v5036_v16, %v5040_v29 }
 0x4e2   : > { %v4699_v35 = vpop.f32.mrf.mxu0 }
 0x4e3   : > { %v4813_v22 = vadd.f32 %v4696_v9, %v3840_v8 }
 0x4e5   : > { %v4929_v40 = vadd.f32 %v8558_v53, %v4813_v22 }
 0x4e6   : > { %v2753_v28 = vpop.f32.mrf.mxu2 }
 0x4e7   : > { %v2868_v43 = vadd.f32 %v2753_v28, %v1893_v54  ;;  %v3726_v14 = vpop.f32.mrf.mxu3  ;;  %v5041_v62 = vmax.f32 %v4929_v40, 0.0 }
 0x4e8   : > { %v1894_v20 = vpop.f32.mrf.mxu1 }
 0x4e9   : > { %v3841_v60 = vadd.f32 %v3726_v14, %v2868_v43  ;;  %v1895_v21 = vadd.f32 %v1894_v20, %v8930_v47  ;;  %v5097_v9 = vmax.f32 %v5037_v7, %v5041_v62 }
 0x4ea   : > { %v4701_v48 = vpop.f32.mrf.mxu0 }
 0x4eb   : > { %v4814_v5 = vadd.f32 %v4699_v35, %v3841_v60 }
 0x4ed   : > { %v4930_v59 = vadd.f32 %v8558_v53, %v4814_v5 }
 0x4ee   : > { %v2755_v37 = vpop.f32.mrf.mxu2 }
 0x4ef   : > { %v5042_v63 = vmax.f32 %v4930_v59, 0.0  ;;  %v2869_v44 = vadd.f32 %v2755_v37, %v1895_v21  ;;  %v3728_v57 = vpop.f32.mrf.mxu3 }
 0x4f1   : > { %v5098_v51 = vmax.f32 %v5038_v33, %v5042_v63  ;;  %v3842_v45 = vadd.f32 %v3728_v57, %v2869_v44 }
 0x4f3   : > { %v5126_v23 = vmax.f32 %v5096_v25, %v5098_v51  ;;  %v4815_v36 = vadd.f32 %v4701_v48, %v3842_v45 }
 0x4f5   : > { %v5154_v13 = vpack.c.bf16 %v5126_v23, %v5126_v23  ;;  %v4931_v31 = vadd.f32 %v8558_v53, %v4815_v36 }
 0x4f7   : > { %5183 = vst.msk [vmem:[%s7966_s6 + $0x68] sm:$0xf] %vm5156_vm3, %v5154_v13  ;;  %v5043_v50 = vmax.f32 %v4931_v31, 0.0 }
 0x4f9   : > { %v5099_v30 = vmax.f32 %v5039_v26, %v5043_v50 }
 0x4fb   : > { %v5127_v19 = vmax.f32 %v5097_v9, %v5099_v30 }
 0x4fd   : > { %v5155_v1 = vpack.c.bf16 %v5127_v19, %v5127_v19 }
 0x4ff   : > { %5184 = vst.msk [vmem:[%s7966_s6 + $0x6c] sm:$0xf] %vm5156_vm3, %v5155_v1 }
 0x500 PF: > { %s13_s12 = sadd.s32 1, %s7434_s12  }
 0x501   : > { %p10_p4 = scmp.ge.s32.totalorder %s13_s12, 4  }
 0x503   :  { %12 = sbr.rel (!%p10_p4) target bundleno = 1 (0x1), region = 70 }

// kernel: cnn_forward.5
= control target key start
LH: loop header
LB: loop body
LE: loop exit
PB: predicated region body
PF: predicated region fallthrough
CT: control target
= control target key end

     0   :  { %vm855_vm0 = vcmask 261120   ;;  %vm1028_vm1 = vcmask 15360   ;;  %s1867_s1 = inlined_call_operand.vmem [shape: bf16[1568,2], index: 1, kind: input, shape index: {}]   ;;  %s1868_s2 = inlined_call_operand.vmem [shape: f32[1,2], index: 2, kind: input, shape index: {}]   ;;  %s1869_s0 = inlined_call_operand.vmem [shape: bf16[8,1568], index: 0, kind: input, shape index: {}]   ;;  %s1870_s3 = inlined_call_operand.vmem [shape: f32[8,2], index: 3, kind: output, shape index: {}]  }
   0x1   :  { %v1434_v0 = vld [vmem:[%s1867_s1 + $0x38] sm:$0xff]  ;;  %v1433_v4 = vld [vmem:[%s1867_s1 + $0x30] sm:$0xff]  ;;  %v1432_v8 = vld [vmem:[%s1867_s1 + $0x28] sm:$0xff] }
   0x2   :  { %v1450_v1 = vld [vmem:[%s1867_s1 + $0xb8] sm:$0xff]  ;;  %859 = vmatpush.bf16.msra.mxu0 %v1434_v0  ;;  %v1449_v5 = vld [vmem:[%s1867_s1 + $0xb0] sm:$0xff]  ;;  %v1448_v9 = vld [vmem:[%s1867_s1 + $0xa8] sm:$0xff] }
   0x3   :  { %v1442_v2 = vld [vmem:[%s1867_s1 + $0x78] sm:$0xff]  ;;  %885 = vmatpush.bf16.msra.mxu2 %v1450_v1  ;;  %v1441_v6 = vld [vmem:[%s1867_s1 + $0x70] sm:$0xff]  ;;  %v1440_v10 = vld [vmem:[%s1867_s1 + $0x68] sm:$0xff] }
   0x4   :  { %v1458_v3 = vld [vmem:[%s1867_s1 + $0xf8] sm:$0xff]  ;;  %872 = vmatpush.bf16.msra.mxu1 %v1442_v2  ;;  %v1457_v7 = vld [vmem:[%s1867_s1 + $0xf0] sm:$0xff]  ;;  %v1456_v11 = vld [vmem:[%s1867_s1 + $0xe8] sm:$0xff] }
   0x5   :  { %898 = vmatpush.bf16.msra.mxu3 %v1458_v3  ;;  %v1431_v12 = vld [vmem:[%s1867_s1 + $0x20] sm:$0xff]  ;;  %v1430_v16 = vld [vmem:[%s1867_s1 + $0x18] sm:$0xff]  ;;  %v1429_v20 = vld [vmem:[%s1867_s1 + $0x10] sm:$0xff] }
   0x6   :  { %860 = vmatpush.bf16.msra.mxu0 %v1433_v4  ;;  %v1447_v13 = vld [vmem:[%s1867_s1 + $0xa0] sm:$0xff]  ;;  %v1446_v17 = vld [vmem:[%s1867_s1 + $0x98] sm:$0xff]  ;;  %v1445_v21 = vld [vmem:[%s1867_s1 + $0x90] sm:$0xff] }
   0x7   :  { %886 = vmatpush.bf16.msra.mxu2 %v1449_v5  ;;  %v1439_v14 = vld [vmem:[%s1867_s1 + $0x60] sm:$0xff]  ;;  %v1438_v18 = vld [vmem:[%s1867_s1 + $0x58] sm:$0xff]  ;;  %v1437_v22 = vld [vmem:[%s1867_s1 + $0x50] sm:$0xff] }
   0x8   :  { %873 = vmatpush.bf16.msra.mxu1 %v1441_v6  ;;  %v1455_v15 = vld [vmem:[%s1867_s1 + $0xe0] sm:$0xff]  ;;  %v1454_v19 = vld [vmem:[%s1867_s1 + $0xd8] sm:$0xff]  ;;  %v1453_v23 = vld [vmem:[%s1867_s1 + $0xd0] sm:$0xff] }
   0x9   :  { %899 = vmatpush.bf16.msra.mxu3 %v1457_v7  ;;  %v1428_v24 = vld [vmem:[%s1867_s1 + $0x8] sm:$0xff]  ;;  %v15_v29 = vld [vmem:[%s1869_s0] sm:$0xff]  ;;  %v1466_v34 = vld [vmem:[%s1867_s1 + $0x138] sm:$0xff] }
   0xa   :  { %861 = vmatpush.bf16.msra.mxu0 %v1432_v8  ;;  %v1444_v25 = vld [vmem:[%s1867_s1 + $0x88] sm:$0xff]  ;;  %v1427_v30 = vld [vmem:[%s1867_s1] sm:$0xff]  ;;  %v229_v33 = vunpack.c.l.b16 %v15_v29  ;;  %v1482_v35 = vld [vmem:[%s1867_s1 + $0x1b8] sm:$0xff]  ;;  %v230_v39 = vunpack.c.h.b16 %v15_v29 }
   0xb   :  { %887 = vmatpush.bf16.msra.mxu2 %v1448_v9  ;;  %v1436_v26 = vld [vmem:[%s1867_s1 + $0x48] sm:$0xff]  ;;  %v1443_v31 = vld [vmem:[%s1867_s1 + $0x80] sm:$0xff]  ;;  %v1474_v40 = vld [vmem:[%s1867_s1 + $0x178] sm:$0xff] }
   0xc   :  { %874 = vmatpush.bf16.msra.mxu1 %v1440_v10  ;;  %v1452_v27 = vld [vmem:[%s1867_s1 + $0xc8] sm:$0xff]  ;;  %v1435_v36 = vld [vmem:[%s1867_s1 + $0x40] sm:$0xff]  ;;  %v1490_v41 = vld [vmem:[%s1867_s1 + $0x1f8] sm:$0xff]  ;;  %v242_v43 = vpack.c.b16 %v229_v33, %v229_v33  ;;  %v243_v47 = vpack.c.b16 %v230_v39, %v230_v39 }
   0xd   :  { %900 = vmatpush.bf16.msra.mxu3 %v1456_v11  ;;  %v16_v28 = vld [vmem:[%s1869_s0 + $0x8] sm:$0xff]  ;;  %v1451_v37 = vld [vmem:[%s1867_s1 + $0xc0] sm:$0xff]  ;;  %v1465_v44 = vld [vmem:[%s1867_s1 + $0x130] sm:$0xff] }
   0xe   :  { %862 = vmatpush.bf16.msra.mxu0 %v1431_v12  ;;  %v231_v32 = vunpack.c.l.b16 %v16_v28  ;;  %v232_v38 = vunpack.c.h.b16 %v16_v28  ;;  %v1481_v45 = vld [vmem:[%s1867_s1 + $0x1b0] sm:$0xff]  ;;  %v1464_v50 = vld [vmem:[%s1867_s1 + $0x128] sm:$0xff]  ;;  %v1463_v54 = vld [vmem:[%s1867_s1 + $0x120] sm:$0xff] }
   0xf   :  { %888 = vmatpush.bf16.msra.mxu2 %v1447_v13  ;;  %v1473_v48 = vld [vmem:[%s1867_s1 + $0x170] sm:$0xff]  ;;  %v1480_v51 = vld [vmem:[%s1867_s1 + $0x1a8] sm:$0xff]  ;;  %v1479_v55 = vld [vmem:[%s1867_s1 + $0x1a0] sm:$0xff] }
  0x10   :  { %875 = vmatpush.bf16.msra.mxu1 %v1439_v14  ;;  %v244_v42 = vpack.c.b16 %v231_v32, %v231_v32  ;;  %v245_v46 = vpack.c.b16 %v232_v38, %v232_v38  ;;  %v1489_v49 = vld [vmem:[%s1867_s1 + $0x1f0] sm:$0xff]  ;;  %v1472_v52 = vld [vmem:[%s1867_s1 + $0x168] sm:$0xff]  ;;  %v1471_v56 = vld [vmem:[%s1867_s1 + $0x160] sm:$0xff] }
  0x11   :  { %901 = vmatpush.bf16.msra.mxu3 %v1455_v15  ;;  %v1488_v53 = vld [vmem:[%s1867_s1 + $0x1e8] sm:$0xff]  ;;  %v1487_v57 = vld [vmem:[%s1867_s1 + $0x1e0] sm:$0xff]  ;;  %v1462_v58 = vld [vmem:[%s1867_s1 + $0x118] sm:$0xff] }
  0x12   :  { %863 = vmatpush.bf16.msra.mxu0 %v1430_v16  ;;  %v1478_v59 = vld [vmem:[%s1867_s1 + $0x198] sm:$0xff]  ;;  %v1461_v62 = vld [vmem:[%s1867_s1 + $0x110] sm:$0xff]  ;;  %v1460_v2 = vld [vmem:[%s1867_s1 + $0x108] sm:$0xff] }
  0x13   :  { %889 = vmatpush.bf16.msra.mxu2 %v1446_v17  ;;  %v1470_v60 = vld [vmem:[%s1867_s1 + $0x158] sm:$0xff]  ;;  %v1477_v63 = vld [vmem:[%s1867_s1 + $0x190] sm:$0xff]  ;;  %v1476_v3 = vld [vmem:[%s1867_s1 + $0x188] sm:$0xff] }
  0x14   :  { %876 = vmatpush.bf16.msra.mxu1 %v1438_v18  ;;  %v1486_v61 = vld [vmem:[%s1867_s1 + $0x1d8] sm:$0xff]  ;;  %v1469_v0 = vld [vmem:[%s1867_s1 + $0x150] sm:$0xff]  ;;  %v1468_v6 = vld [vmem:[%s1867_s1 + $0x148] sm:$0xff] }
  0x15   :  { %902 = vmatpush.bf16.msra.mxu3 %v1454_v19  ;;  %v1485_v1 = vld [vmem:[%s1867_s1 + $0x1d0] sm:$0xff]  ;;  %v18_v4 = vld [vmem:[%s1869_s0 + $0x18] sm:$0xff]  ;;  %v1484_v7 = vld [vmem:[%s1867_s1 + $0x1c8] sm:$0xff] }
  0x16   :  { %864 = vmatpush.bf16.msra.mxu0 %v1429_v20  ;;  %v17_v5 = vld [vmem:[%s1869_s0 + $0x10] sm:$0xff]  ;;  %v1459_v8 = vld [vmem:[%s1867_s1 + $0x100] sm:$0xff]  ;;  %v235_v10 = vunpack.c.l.b16 %v18_v4  ;;  %v1498_v12 = vld [vmem:[%s1867_s1 + $0x238] sm:$0xff]  ;;  %v236_v16 = vunpack.c.h.b16 %v18_v4 }
  0x17   :  { %890 = vmatpush.bf16.msra.mxu2 %v1445_v21  ;;  %v1475_v9 = vld [vmem:[%s1867_s1 + $0x180] sm:$0xff]  ;;  %v233_v11 = vunpack.c.l.b16 %v17_v5  ;;  %v1514_v13 = vld [vmem:[%s1867_s1 + $0x2b8] sm:$0xff]  ;;  %v234_v17 = vunpack.c.h.b16 %v17_v5  ;;  %v1496_v28 = vld [vmem:[%s1867_s1 + $0x228] sm:$0xff] }
  0x18   :  { %877 = vmatpush.bf16.msra.mxu1 %v1437_v22  ;;  %v1467_v14 = vld [vmem:[%s1867_s1 + $0x140] sm:$0xff]  ;;  %v1506_v18 = vld [vmem:[%s1867_s1 + $0x278] sm:$0xff]  ;;  %v248_v20 = vpack.c.b16 %v235_v10, %v235_v10  ;;  %v1497_v22 = vld [vmem:[%s1867_s1 + $0x230] sm:$0xff] }
  0x19   :  { %903 = vmatpush.bf16.msra.mxu3 %v1453_v23  ;;  %v1483_v15 = vld [vmem:[%s1867_s1 + $0x1c0] sm:$0xff]  ;;  %v1522_v19 = vld [vmem:[%s1867_s1 + $0x2f8] sm:$0xff]  ;;  %v246_v21 = vpack.c.b16 %v233_v11, %v233_v11  ;;  %v1513_v23 = vld [vmem:[%s1867_s1 + $0x2b0] sm:$0xff] }
  0x1a   :  { %865 = vmatpush.bf16.msra.mxu0 %v1428_v24  ;;  %v249_v24 = vpack.c.b16 %v236_v16, %v236_v16  ;;  %v1512_v29 = vld [vmem:[%s1867_s1 + $0x2a8] sm:$0xff]  ;;  %v1495_v32 = vld [vmem:[%s1867_s1 + $0x220] sm:$0xff]  ;;  %v1502_v38 = vld [vmem:[%s1867_s1 + $0x258] sm:$0xff] }
  0x1b   :  { %891 = vmatpush.bf16.msra.mxu2 %v1444_v25  ;;  %v247_v25 = vpack.c.b16 %v234_v17, %v234_v17  ;;  %v1511_v33 = vld [vmem:[%s1867_s1 + $0x2a0] sm:$0xff]  ;;  %v1518_v39 = vld [vmem:[%s1867_s1 + $0x2d8] sm:$0xff] }
  0x1c   :  { %878 = vmatpush.bf16.msra.mxu1 %v1436_v26  ;;  %v1505_v26 = vld [vmem:[%s1867_s1 + $0x270] sm:$0xff]  ;;  %v1525_v11 = vld [vmem:[%s1868_s2] ss:$0 sm:$0xff] }
  0x1d   :  { %904 = vmatpush.bf16.msra.mxu3 %v1452_v27  ;;  %v1521_v27 = vld [vmem:[%s1867_s1 + $0x2f0] sm:$0xff] }
  0x1e   :  { %866 = vmatpush.bf16.msra.mxu0 %v1427_v30  ;;  %v1504_v30 = vld [vmem:[%s1867_s1 + $0x268] sm:$0xff] }
  0x1f   :  { %892 = vmatpush.bf16.msra.mxu2 %v1443_v31  ;;  %v1520_v31 = vld [vmem:[%s1867_s1 + $0x2e8] sm:$0xff] }
  0x20   :  { %879 = vmatpush.bf16.msra.mxu1 %v1435_v36  ;;  %v1494_v36 = vld [vmem:[%s1867_s1 + $0x218] sm:$0xff] }
  0x21   :  { %905 = vmatpush.bf16.msra.mxu3 %v1451_v37  ;;  %867 = vmatmul.bf16.vlgmr.msra.gmra.mxu0 %v242_v43  ;;  %v1510_v37 = vld [vmem:[%s1867_s1 + $0x298] sm:$0xff]  ;;  %v1517_v43 = vld [vmem:[%s1867_s1 + $0x2d0] sm:$0xff] }
  0x22   :  { %911 = vmatpush.bf16.msrb.mxu0 %v1466_v34  ;;  %893 = vmatmul.bf16.vlgmr.msra.gmra.mxu2 %v244_v42  ;;  %v1503_v34 = vld [vmem:[%s1867_s1 + $0x260] sm:$0xff]  ;;  %v1501_v42 = vld [vmem:[%s1867_s1 + $0x250] sm:$0xff] }
  0x23   :  { %937 = vmatpush.bf16.msrb.mxu2 %v1482_v35  ;;  %880 = vmatmul.bf16.vlgmr.msra.gmra.mxu1 %v243_v47  ;;  %v1519_v35 = vld [vmem:[%s1867_s1 + $0x2e0] sm:$0xff]  ;;  %v20_v47 = vld [vmem:[%s1869_s0 + $0x28] sm:$0xff] }
  0x24   :  { %924 = vmatpush.bf16.msrb.mxu1 %v1474_v40  ;;  %906 = vmatmul.bf16.vlgmr.msra.gmra.mxu3 %v245_v46  ;;  %v1493_v40 = vld [vmem:[%s1867_s1 + $0x210] sm:$0xff]  ;;  %v19_v46 = vld [vmem:[%s1869_s0 + $0x20] sm:$0xff] }
  0x25   :  { %950 = vmatpush.bf16.msrb.mxu3 %v1490_v41  ;;  %v1509_v41 = vld [vmem:[%s1867_s1 + $0x290] sm:$0xff] }
  0x26   :  { %912 = vmatpush.bf16.msrb.mxu0 %v1465_v44  ;;  %v1492_v44 = vld [vmem:[%s1867_s1 + $0x208] sm:$0xff] }
  0x27   :  { %938 = vmatpush.bf16.msrb.mxu2 %v1481_v45  ;;  %v1508_v45 = vld [vmem:[%s1867_s1 + $0x288] sm:$0xff] }
  0x28   :  { %925 = vmatpush.bf16.msrb.mxu1 %v1473_v48  ;;  %v1500_v48 = vld [vmem:[%s1867_s1 + $0x248] sm:$0xff] }
  0x29   :  { %951 = vmatpush.bf16.msrb.mxu3 %v1489_v49  ;;  %v1516_v49 = vld [vmem:[%s1867_s1 + $0x2c8] sm:$0xff] }
  0x2a   :  { %913 = vmatpush.bf16.msrb.mxu0 %v1464_v50  ;;  %v237_v50 = vunpack.c.l.b16 %v19_v46 }
  0x2b   :  { %939 = vmatpush.bf16.msrb.mxu2 %v1480_v51  ;;  %v239_v51 = vunpack.c.l.b16 %v20_v47 }
  0x2c   :  { %926 = vmatpush.bf16.msrb.mxu1 %v1472_v52  ;;  %v1491_v52 = vld [vmem:[%s1867_s1 + $0x200] sm:$0xff] }
  0x2d   :  { %952 = vmatpush.bf16.msrb.mxu3 %v1488_v53  ;;  %v1507_v53 = vld [vmem:[%s1867_s1 + $0x280] sm:$0xff] }
  0x2e   :  { %914 = vmatpush.bf16.msrb.mxu0 %v1463_v54  ;;  %v1524_v54 = vld [vmem:[%s1867_s1 + $0x308] sm:$0xff] }
  0x2f   :  { %940 = vmatpush.bf16.msrb.mxu2 %v1479_v55  ;;  %v238_v55 = vunpack.c.h.b16 %v19_v46 }
  0x30   :  { %927 = vmatpush.bf16.msrb.mxu1 %v1471_v56  ;;  %v240_v56 = vunpack.c.h.b16 %v20_v47 }
  0x31   :  { %953 = vmatpush.bf16.msrb.mxu3 %v1487_v57  ;;  %v1499_v57 = vld [vmem:[%s1867_s1 + $0x240] sm:$0xff] }
  0x32   :  { %915 = vmatpush.bf16.msrb.mxu0 %v1462_v58  ;;  %v1515_v58 = vld [vmem:[%s1867_s1 + $0x2c0] sm:$0xff] }
  0x33   :  { %941 = vmatpush.bf16.msrb.mxu2 %v1478_v59  ;;  %v250_v59 = vpack.c.b16 %v237_v50, %v237_v50 }
  0x34   :  { %928 = vmatpush.bf16.msrb.mxu1 %v1470_v60  ;;  %v252_v60 = vpack.c.b16 %v239_v51, %v239_v51 }
  0x35   :  { %954 = vmatpush.bf16.msrb.mxu3 %v1486_v61  ;;  %v251_v61 = vpack.c.b16 %v238_v55, %v238_v55 }
  0x36   :  { %916 = vmatpush.bf16.msrb.mxu0 %v1461_v62  ;;  %v253_v62 = vpack.c.b16 %v240_v56, %v240_v56 }
  0x37   :  { %942 = vmatpush.bf16.msrb.mxu2 %v1477_v63  ;;  %v1523_v63 = vld [vmem:[%s1867_s1 + $0x300] sm:$0xff] }
  0x38   :  { %929 = vmatpush.bf16.msrb.mxu1 %v1469_v0  ;;  %v21_v0 = vld [vmem:[%s1869_s0 + $0x30] sm:$0xf] }
  0x39   :  { %955 = vmatpush.bf16.msrb.mxu3 %v1485_v1  ;;  %v241_v1 = vunpack.c.l.b16 %v21_v0 }
  0x3a   :  { %917 = vmatpush.bf16.msrb.mxu0 %v1460_v2 }
  0x3b   :  { %943 = vmatpush.bf16.msrb.mxu2 %v1476_v3  ;;  %v254_v2 = vpack.c.b16 %v241_v1, %v241_v1 }
  0x3c   :  { %930 = vmatpush.bf16.msrb.mxu1 %v1468_v6 }
  0x3d   :  { %956 = vmatpush.bf16.msrb.mxu3 %v1484_v7 }
  0x3e   :  { %918 = vmatpush.bf16.msrb.mxu0 %v1459_v8 }
  0x3f   :  { %944 = vmatpush.bf16.msrb.mxu2 %v1475_v9 }
  0x40   :  { %931 = vmatpush.bf16.msrb.mxu1 %v1467_v14 }
  0x41   :  { %957 = vmatpush.bf16.msrb.mxu3 %v1483_v15  ;;  %919 = vmatmul.bf16.vlgmr.msrb.gmra.mxu0 %v246_v21 }
  0x42   :  { %963 = vmatpush.bf16.msra.mxu0 %v1498_v12  ;;  %945 = vmatmul.bf16.vlgmr.msrb.gmra.mxu2 %v248_v20 }
  0x43   :  { %989 = vmatpush.bf16.msra.mxu2 %v1514_v13  ;;  %932 = vmatmul.bf16.vlgmr.msrb.gmra.mxu1 %v247_v25 }
  0x44   :  { %976 = vmatpush.bf16.msra.mxu1 %v1506_v18  ;;  %958 = vmatmul.bf16.vlgmr.msrb.gmra.mxu3 %v249_v24 }
  0x45   :  { %1002 = vmatpush.bf16.msra.mxu3 %v1522_v19 }
  0x46   :  { %964 = vmatpush.bf16.msra.mxu0 %v1497_v22 }
  0x47   :  { %990 = vmatpush.bf16.msra.mxu2 %v1513_v23 }
  0x48   :  { %977 = vmatpush.bf16.msra.mxu1 %v1505_v26 }
  0x49   :  { %1003 = vmatpush.bf16.msra.mxu3 %v1521_v27 }
  0x4a   :  { %965 = vmatpush.bf16.msra.mxu0 %v1496_v28 }
  0x4b   :  { %991 = vmatpush.bf16.msra.mxu2 %v1512_v29 }
  0x4c   :  { %978 = vmatpush.bf16.msra.mxu1 %v1504_v30 }
  0x4d   :  { %1004 = vmatpush.bf16.msra.mxu3 %v1520_v31 }
  0x4e   :  { %966 = vmatpush.bf16.msra.mxu0 %v1495_v32 }
  0x4f   :  { %992 = vmatpush.bf16.msra.mxu2 %v1511_v33 }
  0x50   :  { %979 = vmatpush.bf16.msra.mxu1 %v1503_v34 }
  0x51   :  { %1005 = vmatpush.bf16.msra.mxu3 %v1519_v35 }
  0x52   :  { %967 = vmatpush.bf16.msra.mxu0 %v1494_v36 }
  0x53   :  { %993 = vmatpush.bf16.msra.mxu2 %v1510_v37 }
  0x54   :  { %980 = vmatpush.bf16.msra.mxu1 %v1502_v38 }
  0x55   :  { %1006 = vmatpush.bf16.msra.mxu3 %v1518_v39 }
  0x56   :  { %968 = vmatpush.bf16.msra.mxu0 %v1493_v40 }
  0x57   :  { %994 = vmatpush.bf16.msra.mxu2 %v1509_v41 }
  0x58   :  { %981 = vmatpush.bf16.msra.mxu1 %v1501_v42 }
  0x59   :  { %1007 = vmatpush.bf16.msra.mxu3 %v1517_v43 }
  0x5a   :  { %969 = vmatpush.bf16.msra.mxu0 %v1492_v44 }
  0x5b   :  { %995 = vmatpush.bf16.msra.mxu2 %v1508_v45 }
  0x5c   :  { %982 = vmatpush.bf16.msra.mxu1 %v1500_v48 }
  0x5d   :  { %1008 = vmatpush.bf16.msra.mxu3 %v1516_v49 }
  0x5e   :  { %970 = vmatpush.bf16.msra.mxu0 %v1491_v52 }
  0x5f   :  { %996 = vmatpush.bf16.msra.mxu2 %v1507_v53 }
  0x60   :  { %983 = vmatpush.bf16.msra.mxu1 %v1499_v57 }
  0x61   :  { %1009 = vmatpush.bf16.msra.mxu3 %v1515_v58  ;;  %971 = vmatmul.bf16.vlgmr.msra.gmra.mxu0 %v250_v59 }
  0x62   :  { %1021 = vmatpush.bf16.msrb.mxu0 %v1524_v54  ;;  %997 = vmatmul.bf16.vlgmr.msra.gmra.mxu2 %v252_v60 }
  0x63   :  { %984 = vmatmul.bf16.vlgmr.msra.gmra.mxu1 %v251_v61 }
  0x64   :  { %1010 = vmatmul.bf16.vlgmr.msra.gmra.mxu3 %v253_v62 }
  0x66   :  { %1022 = vmatpush.bf16.msrb.mxu0 %v1523_v63 }
  0x71   :  { %1426 = vmatmul.msk.bf16.vlgmr.msrb.gmra.mxu0 %vm855_vm0, %v254_v2 }
  0x9e   :  { %v868_v3 = vpop.f32.mrf.mxu0 }
  0x9f   :  { %v869_v14 = vadd.f32 %v1525_v11, %v868_v3 }
  0xa0   :  { %v881_v4 = vpop.f32.mrf.mxu1 }
  0xa1   :  { %v882_v16 = vadd.f32 %v881_v4, %v869_v14 }
  0xa5   :  { %v894_v5 = vpop.f32.mrf.mxu2 }
  0xa6   :  { %v870_v7 = vpop.f32.mrf.mxu0  ;;  %v895_v20 = vadd.f32 %v894_v5, %v882_v16 }
  0xa7   :  { %v907_v6 = vpop.f32.mrf.mxu3 }
  0xa8   :  { %v883_v8 = vpop.f32.mrf.mxu1  ;;  %v908_v22 = vadd.f32 %v907_v6, %v895_v20 }
  0xad   :  { %v896_v9 = vpop.f32.mrf.mxu2 }
  0xaf   :  { %v909_v10 = vpop.f32.mrf.mxu3 }
  0xbe   :  { %v920_v12 = vpop.f32.mrf.mxu0 }
  0xbf   :  { %v921_v24 = vadd.f32 %v920_v12, %v908_v22 }
  0xc0   :  { %v933_v13 = vpop.f32.mrf.mxu1 }
  0xc1   :  { %v934_v25 = vadd.f32 %v933_v13, %v921_v24 }
  0xc5   :  { %v946_v15 = vpop.f32.mrf.mxu2 }
  0xc6   :  { %v922_v18 = vpop.f32.mrf.mxu0  ;;  %v947_v26 = vadd.f32 %v946_v15, %v934_v25 }
  0xc7   :  { %v959_v17 = vpop.f32.mrf.mxu3 }
  0xc8   :  { %v935_v19 = vpop.f32.mrf.mxu1  ;;  %v960_v29 = vadd.f32 %v959_v17, %v947_v26 }
  0xcd   :  { %v948_v21 = vpop.f32.mrf.mxu2 }
  0xcf   :  { %v961_v23 = vpop.f32.mrf.mxu3 }
  0xde   :  { %v972_v27 = vpop.f32.mrf.mxu0 }
  0xdf   :  { %v973_v30 = vadd.f32 %v972_v27, %v960_v29 }
  0xe0   :  { %v985_v28 = vpop.f32.mrf.mxu1 }
  0xe1   :  { %v986_v34 = vadd.f32 %v985_v28, %v973_v30 }
  0xe5   :  { %v998_v31 = vpop.f32.mrf.mxu2 }
  0xe6   :  { %v974_v32 = vpop.f32.mrf.mxu0  ;;  %v999_v36 = vadd.f32 %v998_v31, %v986_v34 }
  0xe7   :  { %v1011_v33 = vpop.f32.mrf.mxu3 }
  0xe8   :  { %v987_v35 = vpop.f32.mrf.mxu1  ;;  %v1012_v38 = vadd.f32 %v1011_v33, %v999_v36 }
  0xed   :  { %v1000_v37 = vpop.f32.mrf.mxu2 }
  0xee   :  { %v1024_v40 = vpop.f32.mrf.mxu0 }
  0xef   :  { %v1013_v39 = vpop.f32.mrf.mxu3  ;;  %v1025_v41 = vadd.f32 %v1024_v40, %v1012_v38 }
  0xf1   :  { %1029 = vst.msk [vmem:[%s1870_s3] sm:$0xff] %vm1028_vm1, %v1025_v41 }
  0xf6   :  { %v1026_v42 = vpop.f32.mrf.mxu0 }

// kernel: cnn_forward.4
= control target key start
LH: loop header
LB: loop body
LE: loop exit
PB: predicated region body
PF: predicated region fallthrough
CT: control target
= control target key end

     0   :  { %s2471_s12 = smov 0   ;;  %s2854_s0 = inlined_call_operand.vmem [shape: bf16[2,18,16,80], index: 0, kind: input, shape index: {}]   ;;  %s2855_s1 = inlined_call_operand.vmem [shape: bf16[5,80,32], index: 1, kind: input, shape index: {}]   ;;  %s2856_s2 = inlined_call_operand.vmem [shape: f32[1,32], index: 2, kind: input, shape index: {}]   ;;  %s2857_s3 = inlined_call_operand.vmem [shape: bf16[2,7,8,32], index: 3, kind: output, shape index: {}]  }
   0x1 LB: > { %s1711_s13 = sadd.s32 4294967295, %s2449_s12   ;;  %p1715_p0 = scmp.ge.s32.totalorder %s2449_s12, 1  ;;  %s2449_s12 = sphi %s2471_s12, %s13_s12  }
   0x2   : > { %p137_p1 = scmp.lt.s32.totalorder %s2449_s12, 3 }
   0x4   : > { %p138_p2 = pnand %p1715_p0, %p137_p1 }
   0x5   : > { %p161_p3 = scmp.lt.s32.totalorder (!%p138_p2), %s1711_s13, 1 }
   0x6   : > { %141 = sbr.rel (%p138_p2) target bundleno = 461 (0x1cd), region = 32 }
   0xb   : > { %v2359_v0 = vld [vmem:[%s2855_s1 + $0x48] sm:$0xff]  ;;  %v2358_v1 = vld [vmem:[%s2855_s1 + $0x40] sm:$0xff]  ;;  %v2357_v2 = vld [vmem:[%s2855_s1 + $0x38] sm:$0xff]  ;;  %s2859_s13 = smov (!%p161_p3, %s1711_s13), 1  ;;  %vm350_vm0 = vcmask 654336   ;;  %vm1648_vm1 = vcmask 257024  }
   0xc   : > { %396 = vmatpush.bf16.msra.mxu0 %v2359_v0  ;;  %2417 = vmatpush.bf16.msra.mxu1 %v2359_v0  ;;  %v2356_v3 = vld [vmem:[%s2855_s1 + $0x30] sm:$0xff]  ;;  %s2432_s22 = smul.u32 144, %s2859_s13  ;;  %v2355_v4 = vld [vmem:[%s2855_s1 + $0x28] sm:$0xff]  ;;  %v2340_v5 = vld [vmem:[%s2855_s1 + $0x20] sm:$0xff] }
   0xd   : > { %2419 = vmatpush.bf16.msra.mxu3 %v2359_v0  ;;  %2418 = vmatpush.bf16.msra.mxu2 %v2359_v0  ;;  %v2397_v6 = vld [vmem:[%s2855_s1 + $0x98] sm:$0xff]  ;;  %v2416_v7 = vld [vmem:[%s2855_s1 + $0xc0] sm:$0xff]  ;;  %v2378_v12 = vld [vmem:[%s2855_s1 + $0x70] sm:$0xff]  ;;  %s2433_s21 = smul.u32 28, %s2859_s13 }
   0xe   : > { %s2500_s27 = scalar_lea.vmem %s2854_s0, %s2432_s22  ;;  %v2339_v11 = vld [vmem:[%s2855_s1 + $0x18] sm:$0xff]  ;;  %v2396_v13 = vld [vmem:[%s2855_s1 + $0x90] sm:$0xff]  ;;  %v2377_v17 = vld [vmem:[%s2855_s1 + $0x68] sm:$0xff] }
   0xf   : > { %v2341_v8 = vld [vmem:[%s2500_s27 + $0x8] sm:$0xff]  ;;  %v2351_v10 = vld [vmem:[%s2500_s27 + $0x58] sm:$0xff]  ;;  %v2338_v16 = vld [vmem:[%s2855_s1 + $0x10] sm:$0xff]  ;;  %s2761_s24 = scalar_lea.vmem %s2857_s3, %s2433_s21 }
  0x10   : > { %397 = vmatpush.bf16.msra.mxu0 %v2358_v1  ;;  %2420 = vmatpush.bf16.msra.mxu1 %v2358_v1  ;;  %v2345_v9 = vld [vmem:[%s2500_s27 + $0x28] sm:$0xff]  ;;  %v2415_v14 = vld [vmem:[%s2855_s1 + $0xb8] sm:$0xff]  ;;  %v2414_v19 = vld [vmem:[%s2855_s1 + $0xb0] sm:$0xff] }
  0x11   : > { %2422 = vmatpush.bf16.msra.mxu3 %v2358_v1  ;;  %2421 = vmatpush.bf16.msra.mxu2 %v2358_v1  ;;  %v2349_v15 = vld [vmem:[%s2500_s27 + $0x48] sm:$0xff]  ;;  %v2376_v21 = vld [vmem:[%s2855_s1 + $0x60] sm:$0xff]  ;;  %v2375_v24 = vld [vmem:[%s2855_s1 + $0x58] sm:$0xff] }
  0x12   : > { %v2395_v18 = vld [vmem:[%s2855_s1 + $0x88] sm:$0xff]  ;;  %v2394_v22 = vld [vmem:[%s2855_s1 + $0x80] sm:$0xff]  ;;  %v2342_v25 = vld [vmem:[%s2500_s27 + $0x10] sm:$0xff] }
  0x13   : > { %v2337_v20 = vld [vmem:[%s2855_s1 + $0x8] sm:$0xff]  ;;  %v2346_v26 = vld [vmem:[%s2500_s27 + $0x30] sm:$0xff]  ;;  %v2352_v27 = vld [vmem:[%s2500_s27 + $0x60] sm:$0xff] }
  0x14   : > { %398 = vmatpush.bf16.msra.mxu0 %v2357_v2  ;;  %2423 = vmatpush.bf16.msra.mxu1 %v2357_v2  ;;  %v2413_v23 = vld [vmem:[%s2855_s1 + $0xa8] sm:$0xff]  ;;  %v2350_v28 = vld [vmem:[%s2500_s27 + $0x50] sm:$0xff]  ;;  %v2393_v30 = vld [vmem:[%s2855_s1 + $0x78] sm:$0xff] }
  0x15   : > { %2425 = vmatpush.bf16.msra.mxu3 %v2357_v2  ;;  %2424 = vmatpush.bf16.msra.mxu2 %v2357_v2  ;;  %v2374_v29 = vld [vmem:[%s2855_s1 + $0x50] sm:$0xff]  ;;  %v2336_v31 = vld [vmem:[%s2855_s1] sm:$0xff]  ;;  %v2343_v33 = vld [vmem:[%s2500_s27 + $0x18] sm:$0xff] }
  0x16   : > { %v2412_v32 = vld [vmem:[%s2855_s1 + $0xa0] sm:$0xff]  ;;  %v2347_v34 = vld [vmem:[%s2500_s27 + $0x38] sm:$0xff]  ;;  %v2353_v35 = vld [vmem:[%s2500_s27 + $0x68] sm:$0xff] }
  0x17   : > { %v2360_v36 = vld [vmem:[%s2500_s27 + $0x10] sm:$0xff]  ;;  %v2344_v37 = vld [vmem:[%s2500_s27 + $0x20] sm:$0xff]  ;;  %v2361_v40 = vld [vmem:[%s2500_s27 + $0x18] sm:$0xff] }
  0x18   : > { %399 = vmatpush.bf16.msra.mxu0 %v2356_v3  ;;  %2426 = vmatpush.bf16.msra.mxu1 %v2356_v3  ;;  %v2348_v38 = vld [vmem:[%s2500_s27 + $0x40] sm:$0xff]  ;;  %v2354_v39 = vld [vmem:[%s2500_s27 + $0x70] sm:$0xff]  ;;  %v2379_v43 = vld [vmem:[%s2500_s27 + $0x18] sm:$0xff] }
  0x19   : > { %2428 = vmatpush.bf16.msra.mxu3 %v2356_v3  ;;  %2427 = vmatpush.bf16.msra.mxu2 %v2356_v3  ;;  %v2322_v41 = vld [vmem:[%s2500_s27] sm:$0xff]  ;;  %v2323_v45 = vld [vmem:[%s2500_s27 + $0x8] sm:$0xff]  ;;  %v2324_v49 = vld [vmem:[%s2500_s27 + $0x10] sm:$0xff] }
  0x1a   : > { %v2398_v42 = vld [vmem:[%s2500_s27 + $0x20] sm:$0xff]  ;;  %v2399_v46 = vld [vmem:[%s2500_s27 + $0x28] sm:$0xff]  ;;  %v2400_v50 = vld [vmem:[%s2500_s27 + $0x30] sm:$0xff] }
  0x1b   : > { %v2362_v44 = vld [vmem:[%s2500_s27 + $0x20] sm:$0xff]  ;;  %v2363_v48 = vld [vmem:[%s2500_s27 + $0x28] sm:$0xff]  ;;  %v2364_v52 = vld [vmem:[%s2500_s27 + $0x30] sm:$0xff] }
  0x1c   : > { %400 = vmatpush.bf16.msra.mxu0 %v2355_v4  ;;  %2429 = vmatpush.bf16.msra.mxu1 %v2355_v4  ;;  %v2380_v47 = vld [vmem:[%s2500_s27 + $0x20] sm:$0xff]  ;;  %v2381_v51 = vld [vmem:[%s2500_s27 + $0x28] sm:$0xff]  ;;  %v2325_v53 = vld [vmem:[%s2500_s27 + $0x18] sm:$0xff] }
  0x1d   : > { %2431 = vmatpush.bf16.msra.mxu3 %v2355_v4  ;;  %2430 = vmatpush.bf16.msra.mxu2 %v2355_v4  ;;  %v2401_v54 = vld [vmem:[%s2500_s27 + $0x38] sm:$0xff]  ;;  %v2382_v55 = vld [vmem:[%s2500_s27 + $0x30] sm:$0xff]  ;;  %v2326_v57 = vld [vmem:[%s2500_s27 + $0x20] sm:$0xff] }
  0x1e   : > { %v2365_v56 = vld [vmem:[%s2500_s27 + $0x38] sm:$0xff]  ;;  %v2402_v58 = vld [vmem:[%s2500_s27 + $0x40] sm:$0xff]  ;;  %v2327_v4 = vld [vmem:[%s2500_s27 + $0x28] sm:$0xff] }
  0x1f   : > { %1832 = vmatmul.msk.bf16.vlgmr.msra.gmra.mxu0 %vm350_vm0, %v2341_v8  ;;  %1836 = vmatmul.msk.bf16.vlgmr.msra.gmra.mxu1 %vm350_vm0, %v2345_v9  ;;  %v2383_v61 = vld [vmem:[%s2500_s27 + $0x38] sm:$0xff]  ;;  %v2366_v62 = vld [vmem:[%s2500_s27 + $0x40] sm:$0xff] }
  0x20   : > { %617 = vmatpush.bf16.msrb.mxu1 %v2340_v5  ;;  %1456 = vmatpush.bf16.msrb.mxu0 %v2416_v7  ;;  %v2403_v5 = vld [vmem:[%s2500_s27 + $0x48] sm:$0xff]  ;;  %v2384_v8 = vld [vmem:[%s2500_s27 + $0x40] sm:$0xff] }
  0x21   : > { %1167 = vmatpush.bf16.msrb.mxu3 %v2397_v6  ;;  %878 = vmatpush.bf16.msrb.mxu2 %v2378_v12 }
  0x22   : > { %1842 = vmatmul.msk.bf16.vlgmr.msra.gmra.mxu3 %vm350_vm0, %v2351_v10  ;;  %1840 = vmatmul.msk.bf16.vlgmr.msra.gmra.mxu2 %vm350_vm0, %v2349_v15  ;;  %v2367_v10 = vld [vmem:[%s2500_s27 + $0x48] sm:$0xff] }
  0x24   : > { %618 = vmatpush.bf16.msrb.mxu1 %v2339_v11  ;;  %1457 = vmatpush.bf16.msrb.mxu0 %v2415_v14 }
  0x25   : > { %1168 = vmatpush.bf16.msrb.mxu3 %v2396_v13  ;;  %879 = vmatpush.bf16.msrb.mxu2 %v2377_v17  ;;  %v2404_v17 = vld [vmem:[%s2500_s27 + $0x50] sm:$0xff] }
  0x28   : > { %619 = vmatpush.bf16.msrb.mxu1 %v2338_v16  ;;  %1458 = vmatpush.bf16.msrb.mxu0 %v2414_v19  ;;  %v2328_v16 = vld [vmem:[%s2500_s27 + $0x30] sm:$0xff] }
  0x29   : > { %1169 = vmatpush.bf16.msrb.mxu3 %v2395_v18  ;;  %880 = vmatpush.bf16.msrb.mxu2 %v2376_v21 }
  0x2c   : > { %620 = vmatpush.bf16.msrb.mxu1 %v2337_v20  ;;  %1459 = vmatpush.bf16.msrb.mxu0 %v2413_v23  ;;  %v2385_v20 = vld [vmem:[%s2500_s27 + $0x48] sm:$0xff] }
  0x2d   : > { %1170 = vmatpush.bf16.msrb.mxu3 %v2394_v22  ;;  %881 = vmatpush.bf16.msrb.mxu2 %v2375_v24  ;;  %v2368_v22 = vld [vmem:[%s2500_s27 + $0x50] sm:$0xff] }
  0x2f   : > { %1833 = vmatmul.msk.bf16.gmra.mxu0 %vm350_vm0, %v2342_v25  ;;  %1837 = vmatmul.msk.bf16.gmra.mxu1 %vm350_vm0, %v2346_v26 }
  0x30   : > { %621 = vmatpush.bf16.msrb.mxu1 %v2336_v31  ;;  %1460 = vmatpush.bf16.msrb.mxu0 %v2412_v32  ;;  %v2386_v32 = vld [vmem:[%s2500_s27 + $0x50] sm:$0xff] }
  0x31   : > { %882 = vmatpush.bf16.msrb.mxu2 %v2374_v29  ;;  %1171 = vmatpush.bf16.msrb.mxu3 %v2393_v30  ;;  %v2405_v29 = vld [vmem:[%s2500_s27 + $0x58] sm:$0xff] }
  0x32   : > { %1843 = vmatmul.msk.bf16.gmra.mxu3 %vm350_vm0, %v2352_v27  ;;  %1841 = vmatmul.msk.bf16.gmra.mxu2 %vm350_vm0, %v2350_v28  ;;  %v2329_v28 = vld [vmem:[%s2500_s27 + $0x38] sm:$0xff] }
  0x3f   : > { %1834 = vmatmul.msk.bf16.gmra.mxu0 %vm350_vm0, %v2343_v33  ;;  %1838 = vmatmul.msk.bf16.gmra.mxu1 %vm350_vm0, %v2347_v34  ;;  %v2369_v34 = vld [vmem:[%s2500_s27 + $0x58] sm:$0xff] }
  0x42   : > { %1844 = vmatmul.msk.bf16.gmra.mxu3 %vm350_vm0, %v2353_v35  ;;  %2050 = vmatmul.msk.bf16.vlgmr.msrb.gmra.mxu2 %vm350_vm0, %v2360_v36 }
  0x4f   : > { %1835 = vmatmul.msk.bf16.gmra.mxu0 %vm350_vm0, %v2344_v37  ;;  %1839 = vmatmul.msk.bf16.gmra.mxu1 %vm350_vm0, %v2348_v38 }
  0x52   : > { %1845 = vmatmul.msk.bf16.gmra.mxu3 %vm350_vm0, %v2354_v39  ;;  %2051 = vmatmul.msk.bf16.gmra.mxu2 %vm350_vm0, %v2361_v40  ;;  %v2330_v40 = vld [vmem:[%s2500_s27 + $0x40] sm:$0xff] }
  0x5f   : > { %1922 = vmatmul.msk.bf16.vlgmr.msrb.gmra.mxu1 %vm350_vm0, %v2322_v41  ;;  %2306 = vmatmul.msk.bf16.vlgmr.msrb.gmra.mxu0 %vm350_vm0, %v2398_v42  ;;  %v2406_v41 = vld [vmem:[%s2500_s27 + $0x60] sm:$0xff] }
  0x62   : > { %2178 = vmatmul.msk.bf16.vlgmr.msrb.gmra.mxu3 %vm350_vm0, %v2379_v43  ;;  %2052 = vmatmul.msk.bf16.gmra.mxu2 %vm350_vm0, %v2362_v44  ;;  %v2387_v44 = vld [vmem:[%s2500_s27 + $0x58] sm:$0xff] }
  0x6f   : > { %1923 = vmatmul.msk.bf16.gmra.mxu1 %vm350_vm0, %v2323_v45  ;;  %2307 = vmatmul.msk.bf16.gmra.mxu0 %vm350_vm0, %v2399_v46  ;;  %v2370_v46 = vld [vmem:[%s2500_s27 + $0x60] sm:$0xff] }
  0x72   : > { %2179 = vmatmul.msk.bf16.gmra.mxu3 %vm350_vm0, %v2380_v47  ;;  %2053 = vmatmul.msk.bf16.gmra.mxu2 %vm350_vm0, %v2363_v48 }
  0x7f   : > { %1924 = vmatmul.msk.bf16.gmra.mxu1 %vm350_vm0, %v2324_v49  ;;  %2308 = vmatmul.msk.bf16.gmra.mxu0 %vm350_vm0, %v2400_v50 }
  0x82   : > { %2180 = vmatmul.msk.bf16.gmra.mxu3 %vm350_vm0, %v2381_v51  ;;  %2054 = vmatmul.msk.bf16.gmra.mxu2 %vm350_vm0, %v2364_v52 }
  0x8f   : > { %1925 = vmatmul.msk.bf16.gmra.mxu1 %vm350_vm0, %v2325_v53  ;;  %2309 = vmatmul.msk.bf16.gmra.mxu0 %vm350_vm0, %v2401_v54  ;;  %v2331_v53 = vld [vmem:[%s2500_s27 + $0x48] sm:$0xff] }
  0x90   : > { %v2407_v54 = vld [vmem:[%s2500_s27 + $0x68] sm:$0xff] }
  0x92   : > { %2181 = vmatmul.msk.bf16.gmra.mxu3 %vm350_vm0, %v2382_v55  ;;  %2055 = vmatmul.msk.bf16.gmra.mxu2 %vm350_vm0, %v2365_v56 }
  0x9c   : > { %v2628_v59 = vpop.f32.mrf.mxu0  ;;  %v2630_v60 = vpop.f32.mrf.mxu1 }
  0x9f   : > { %1926 = vmatmul.msk.bf16.gmra.mxu1 %vm350_vm0, %v2326_v57  ;;  %2310 = vmatmul.msk.bf16.gmra.mxu0 %vm350_vm0, %v2402_v58  ;;  %v2388_v58 = vld [vmem:[%s2500_s27 + $0x60] sm:$0xff] }
  0xa2   : > { %2182 = vmatmul.msk.bf16.gmra.mxu3 %vm350_vm0, %v2383_v61  ;;  %2056 = vmatmul.msk.bf16.gmra.mxu2 %vm350_vm0, %v2366_v62 }
  0xa4   : > { %v2640_v0 = vpop.f32.mrf.mxu0  ;;  %v2642_v1 = vpop.f32.mrf.mxu1 }
  0xa5   : > { %v2637_v63 = vpop.f32.mrf.mxu3  ;;  %v2644_v2 = vpop.f32.mrf.mxu2 }
  0xac   : > { %v2650_v6 = vpop.f32.mrf.mxu0  ;;  %v2652_v7 = vpop.f32.mrf.mxu1 }
  0xad   : > { %v2646_v3 = vpop.f32.mrf.mxu3  ;;  %v2655_v9 = vpop.f32.mrf.mxu2 }
  0xaf   : > { %1927 = vmatmul.msk.bf16.gmra.mxu1 %vm350_vm0, %v2327_v4  ;;  %2311 = vmatmul.msk.bf16.gmra.mxu0 %vm350_vm0, %v2403_v5  ;;  %v2371_v5 = vld [vmem:[%s2500_s27 + $0x68] sm:$0xff] }
  0xb2   : > { %2183 = vmatmul.msk.bf16.gmra.mxu3 %vm350_vm0, %v2384_v8  ;;  %2057 = vmatmul.msk.bf16.gmra.mxu2 %vm350_vm0, %v2367_v10  ;;  %v2739_v10 = vld [vmem:[%s2856_s2] ss:$0 sm:$0xff] }
  0xb4   : > { %v2664_v12 = vpop.f32.mrf.mxu0  ;;  %v2666_v13 = vpop.f32.mrf.mxu1 }
  0xb5   : > { %v2661_v11 = vpop.f32.mrf.mxu3  ;;  %v2668_v14 = vpop.f32.mrf.mxu2 }
  0xbc   : > { %v2674_v18 = vpop.f32.mrf.mxu0  ;;  %v2676_v19 = vpop.f32.mrf.mxu1 }
  0xbd   : > { %v2670_v15 = vpop.f32.mrf.mxu3  ;;  %v2679_v21 = vpop.f32.mrf.mxu2 }
  0xbf   : > { %1928 = vmatmul.msk.bf16.gmra.mxu1 %vm350_vm0, %v2328_v16  ;;  %2312 = vmatmul.msk.bf16.gmra.mxu0 %vm350_vm0, %v2404_v17 }
  0xc2   : > { %2184 = vmatmul.msk.bf16.gmra.mxu3 %vm350_vm0, %v2385_v20  ;;  %2058 = vmatmul.msk.bf16.gmra.mxu2 %vm350_vm0, %v2368_v22 }
  0xc4   : > { %v2688_v24 = vpop.f32.mrf.mxu0  ;;  %v2690_v25 = vpop.f32.mrf.mxu1 }
  0xc5   : > { %v2685_v23 = vpop.f32.mrf.mxu3  ;;  %v884_v26 = vpop.f32.mrf.mxu2 }
  0xcc   : > { %v2696_v30 = vpop.f32.mrf.mxu0  ;;  %v2698_v31 = vpop.f32.mrf.mxu1 }
  0xcd   : > { %v2692_v27 = vpop.f32.mrf.mxu3  ;;  %v886_v33 = vpop.f32.mrf.mxu2 }
  0xcf   : > { %1929 = vmatmul.msk.bf16.gmra.mxu1 %vm350_vm0, %v2329_v28  ;;  %2313 = vmatmul.msk.bf16.gmra.mxu0 %vm350_vm0, %v2405_v29 }
  0xd2   : > { %2185 = vmatmul.msk.bf16.gmra.mxu3 %vm350_vm0, %v2386_v32  ;;  %2059 = vmatmul.msk.bf16.gmra.mxu2 %vm350_vm0, %v2369_v34 }
  0xd4   : > { %v2708_v36 = vpop.f32.mrf.mxu0  ;;  %v2710_v37 = vpop.f32.mrf.mxu1 }
  0xd5   : > { %v2705_v35 = vpop.f32.mrf.mxu3  ;;  %v889_v38 = vpop.f32.mrf.mxu2 }
  0xdc   : > { %v623_v42 = vpop.f32.mrf.mxu1  ;;  %v1462_v43 = vpop.f32.mrf.mxu0 }
  0xdd   : > { %v2712_v39 = vpop.f32.mrf.mxu3  ;;  %v891_v45 = vpop.f32.mrf.mxu2  ;;  %v624_v51 = vadd.f32 %v623_v42, %v2628_v59 }
  0xdf   : > { %1930 = vmatmul.msk.bf16.gmra.mxu1 %vm350_vm0, %v2330_v40  ;;  %2314 = vmatmul.msk.bf16.gmra.mxu0 %vm350_vm0, %v2406_v41  ;;  %v954_v55 = vadd.f32 %v884_v26, %v624_v51 }
  0xe2   : > { %2186 = vmatmul.msk.bf16.gmra.mxu3 %vm350_vm0, %v2387_v44  ;;  %2060 = vmatmul.msk.bf16.gmra.mxu2 %vm350_vm0, %v2370_v46  ;;  %v2332_v44 = vld [vmem:[%s2500_s27 + $0x50] sm:$0xff] }
  0xe3   : > { %v2408_v46 = vld [vmem:[%s2500_s27 + $0x70] sm:$0xff] }
  0xe4   : > { %v625_v48 = vpop.f32.mrf.mxu1  ;;  %v1464_v49 = vpop.f32.mrf.mxu0 }
  0xe5   : > { %v1173_v47 = vpop.f32.mrf.mxu3  ;;  %v2722_v50 = vpop.f32.mrf.mxu2  ;;  %v626_v8 = vadd.f32 %v625_v48, %v2640_v0 }
  0xe6   : > { %v1243_v61 = vadd.f32 %v1173_v47, %v954_v55 }
  0xe8   : > { %v1532_v59 = vadd.f32 %v1462_v43, %v1243_v61 }
  0xea   : > { %v1564_v0 = vadd.f32 %v2739_v10, %v1532_v59 }
  0xec   : > { %v628_v56 = vpop.f32.mrf.mxu1  ;;  %v1467_v57 = vpop.f32.mrf.mxu0 }
  0xed   : > { %v1175_v52 = vpop.f32.mrf.mxu3  ;;  %v629_v62 = vadd.f32 %v628_v56, %v2650_v6  ;;  %v2729_v4 = vpop.f32.mrf.mxu2  ;;  %v955_v6 = vadd.f32 %v886_v33, %v626_v8 }
  0xef   : > { %1931 = vmatmul.msk.bf16.gmra.mxu1 %vm350_vm0, %v2331_v53  ;;  %2315 = vmatmul.msk.bf16.gmra.mxu0 %vm350_vm0, %v2407_v54  ;;  %v956_v16 = vadd.f32 %v889_v38, %v629_v62  ;;  %v1244_v28 = vadd.f32 %v1175_v52, %v955_v6  ;;  %v1592_v38 = vmax.f32 %v1564_v0, 0.0  ;;  %v2389_v53 = vld [vmem:[%s2500_s27 + $0x68] sm:$0xff] }
  0xf1   : > { %v1533_v41 = vadd.f32 %v1464_v49, %v1244_v28  ;;  %v2372_v49 = vld [vmem:[%s2500_s27 + $0x70] sm:$0xff] }
  0xf2   : > { %2187 = vmatmul.msk.bf16.gmra.mxu3 %vm350_vm0, %v2388_v58  ;;  %2061 = vmatmul.msk.bf16.gmra.mxu2 %vm350_vm0, %v2371_v5 }
  0xf3   : > { %v1565_v54 = vadd.f32 %v2739_v10, %v1533_v41 }
  0xf4   : > { %v630_v22 = vpop.f32.mrf.mxu1  ;;  %v1469_v26 = vpop.f32.mrf.mxu0 }
  0xf5   : > { %v1178_v17 = vpop.f32.mrf.mxu3  ;;  %v631_v32 = vadd.f32 %v630_v22, %v2664_v12  ;;  %v899_v34 = vpop.f32.mrf.mxu2  ;;  %v1593_v56 = vmax.f32 %v1565_v54, 0.0  ;;  %v2409_v22 = vld [vmem:[%s2500_s27 + $0x78] sm:$0xff] }
  0xf6   : > { %v1245_v20 = vadd.f32 %v1178_v17, %v956_v16 }
  0xf7   : > { %v957_v43 = vadd.f32 %v891_v45, %v631_v32 }
  0xf8   : > { %v1534_v29 = vadd.f32 %v1467_v57, %v1245_v20  ;;  %v2333_v20 = vld [vmem:[%s2500_s27 + $0x58] sm:$0xff] }
  0xfa   : > { %v1566_v40 = vadd.f32 %v2739_v10, %v1534_v29  ;;  %v2390_v29 = vld [vmem:[%s2500_s27 + $0x70] sm:$0xff] }
  0xfc   : > { %v1594_v42 = vmax.f32 %v1566_v40, 0.0  ;;  %v633_v51 = vpop.f32.mrf.mxu1  ;;  %v1472_v52 = vpop.f32.mrf.mxu0 }
  0xfd   : > { %v1180_v33 = vpop.f32.mrf.mxu3  ;;  %v901_v55 = vpop.f32.mrf.mxu2  ;;  %v634_v17 = vadd.f32 %v633_v51, %v2674_v18  ;;  %v2373_v18 = vld [vmem:[%s2500_s27 + $0x78] sm:$0xff] }
  0xfe   : > { %v1620_v47 = vmax.f32 %v1592_v38, %v1594_v42  ;;  %v1246_v48 = vadd.f32 %v1180_v33, %v957_v43 }
  0xff   : > { %1932 = vmatmul.msk.bf16.gmra.mxu1 %vm350_vm0, %v2332_v44  ;;  %2316 = vmatmul.msk.bf16.gmra.mxu0 %vm350_vm0, %v2408_v46 }
 0x100   : > { %v1535_v12 = vadd.f32 %v1469_v26, %v1246_v48  ;;  %v958_v26 = vadd.f32 %v2722_v50, %v634_v17 }
 0x102   : > { %v1567_v45 = vadd.f32 %v2739_v10, %v1535_v12  ;;  %2188 = vmatmul.msk.bf16.gmra.mxu3 %vm350_vm0, %v2389_v53  ;;  %2062 = vmatmul.msk.bf16.gmra.mxu2 %vm350_vm0, %v2372_v49 }
 0x104   : > { %v1595_v57 = vmax.f32 %v1567_v45, 0.0  ;;  %v635_v62 = vpop.f32.mrf.mxu1  ;;  %v1474_v5 = vpop.f32.mrf.mxu0 }
 0x105   : > { %v1183_v58 = vpop.f32.mrf.mxu3  ;;  %v2756_v59 = vpop.f32.mrf.mxu2  ;;  %v636_v41 = vadd.f32 %v635_v62, %v2688_v24 }
 0x106   : > { %v1621_v61 = vmax.f32 %v1593_v56, %v1595_v57  ;;  %v1247_v32 = vadd.f32 %v1183_v58, %v958_v26  ;;  %v2410_v56 = vld [vmem:[%s2500_s27 + $0x80] sm:$0xff] }
 0x107   : > { %v959_v33 = vadd.f32 %v2729_v4, %v636_v41  ;;  %v2334_v4 = vld [vmem:[%s2500_s27 + $0x60] sm:$0xff]  ;;  %v2411_v41 = vld [vmem:[%s2500_s27 + $0x88] sm:$0xff] }
 0x108   : > { %v1634_v8 = vmax.f32 %v1620_v47, %v1621_v61  ;;  %v1536_v42 = vadd.f32 %v1472_v52, %v1247_v32 }
 0x10a   : > { %v1641_v16 = vpack.c.bf16 %v1634_v8, %v1634_v8  ;;  %v1568_v47 = vadd.f32 %v2739_v10, %v1536_v42  ;;  %v2391_v8 = vld [vmem:[%s2500_s27 + $0x78] sm:$0xff] }
 0x10c   : > { %1649 = vst.msk [vmem:[%s2761_s24] sm:$0xf] %vm1648_vm1, %v1641_v16  ;;  %v638_v0 = vpop.f32.mrf.mxu1  ;;  %v1477_v28 = vpop.f32.mrf.mxu0  ;;  %v1596_v52 = vmax.f32 %v1568_v47, 0.0 }
 0x10d   : > { %v1185_v6 = vpop.f32.mrf.mxu3  ;;  %v639_v40 = vadd.f32 %v638_v0, %v2696_v30  ;;  %v2771_v38 = vpop.f32.mrf.mxu2 }
 0x10e   : > { %v1248_v48 = vadd.f32 %v1185_v6, %v959_v33 }
 0x10f   : > { %1933 = vmatmul.msk.bf16.gmra.mxu1 %vm350_vm0, %v2333_v20  ;;  %2317 = vmatmul.msk.bf16.gmra.mxu0 %vm350_vm0, %v2409_v22  ;;  %v960_v43 = vadd.f32 %v899_v34, %v639_v40 }
 0x110   : > { %v1537_v54 = vadd.f32 %v1474_v5, %v1248_v48 }
 0x112   : > { %2189 = vmatmul.msk.bf16.gmra.mxu3 %vm350_vm0, %v2390_v29  ;;  %2063 = vmatmul.msk.bf16.gmra.mxu2 %vm350_vm0, %v2373_v18  ;;  %v1569_v16 = vadd.f32 %v2739_v10, %v1537_v54  ;;  %v2335_v18 = vld [vmem:[%s2500_s27 + $0x68] sm:$0xff] }
 0x114   : > { %v640_v44 = vpop.f32.mrf.mxu1  ;;  %v1479_v46 = vpop.f32.mrf.mxu0  ;;  %v1597_v5 = vmax.f32 %v1569_v16, 0.0 }
 0x115   : > { %v1188_v50 = vpop.f32.mrf.mxu3  ;;  %v641_v24 = vadd.f32 %v640_v44, %v2708_v36  ;;  %v909_v53 = vpop.f32.mrf.mxu2 }
 0x116   : > { %v1249_v30 = vadd.f32 %v1188_v50, %v960_v43  ;;  %v2392_v50 = vld [vmem:[%s2500_s27 + $0x80] sm:$0xff] }
 0x117   : > { %v961_v49 = vadd.f32 %v901_v55, %v641_v24 }
 0x118   : > { %v1538_v51 = vadd.f32 %v1477_v28, %v1249_v30 }
 0x11a   : > { %v1570_v34 = vadd.f32 %v2739_v10, %v1538_v51 }
 0x11c   : > { %v1598_v12 = vmax.f32 %v1570_v34, 0.0  ;;  %v643_v61 = vpop.f32.mrf.mxu1  ;;  %v1482_v62 = vpop.f32.mrf.mxu0 }
 0x11d   : > { %v1190_v45 = vpop.f32.mrf.mxu3  ;;  %v911_v36 = vpop.f32.mrf.mxu2  ;;  %v644_v44 = vadd.f32 %v643_v61, %v2630_v60 }
 0x11e   : > { %v1622_v57 = vmax.f32 %v1596_v52, %v1598_v12  ;;  %v1250_v58 = vadd.f32 %v1190_v45, %v961_v49 }
 0x11f   : > { %1934 = vmatmul.msk.bf16.gmra.mxu1 %vm350_vm0, %v2334_v4  ;;  %2318 = vmatmul.msk.bf16.gmra.mxu0 %vm350_vm0, %v2410_v56  ;;  %v962_v51 = vadd.f32 %v2756_v59, %v644_v44 }
 0x120   : > { %v1539_v17 = vadd.f32 %v1479_v46, %v1250_v58 }
 0x122   : > { %v1571_v55 = vadd.f32 %v2739_v10, %v1539_v17  ;;  %2190 = vmatmul.msk.bf16.gmra.mxu3 %vm350_vm0, %v2391_v8 }
 0x124   : > { %v1599_v6 = vmax.f32 %v1571_v55, 0.0  ;;  %v645_v26 = vpop.f32.mrf.mxu1  ;;  %v1484_v0 = vpop.f32.mrf.mxu0 }
 0x125   : > { %v1193_v20 = vpop.f32.mrf.mxu3  ;;  %v914_v29 = vpop.f32.mrf.mxu2  ;;  %v646_v46 = vadd.f32 %v645_v26, %v2642_v1 }
 0x126   : > { %v1623_v22 = vmax.f32 %v1597_v5, %v1599_v6  ;;  %v1251_v54 = vadd.f32 %v1193_v20, %v962_v51 }
 0x127   : > { %v963_v24 = vadd.f32 %v2771_v38, %v646_v46 }
 0x128   : > { %v1635_v28 = vmax.f32 %v1622_v57, %v1623_v22  ;;  %v1540_v60 = vadd.f32 %v1482_v62, %v1251_v54 }
 0x12a   : > { %v1642_v32 = vpack.c.bf16 %v1635_v28, %v1635_v28  ;;  %v1572_v38 = vadd.f32 %v2739_v10, %v1540_v60 }
 0x12c   : > { %1650 = vst.msk [vmem:[%s2761_s24 + $0x4] sm:$0xf] %vm1648_vm1, %v1642_v32  ;;  %v648_v42 = vpop.f32.mrf.mxu1  ;;  %v1487_v43 = vpop.f32.mrf.mxu0  ;;  %v1600_v5 = vmax.f32 %v1572_v38, 0.0 }
 0x12d   : > { %v1195_v40 = vpop.f32.mrf.mxu3  ;;  %v649_v33 = vadd.f32 %v648_v42, %v2652_v7  ;;  %v916_v30 = vpop.f32.mrf.mxu2 }
 0x12e   : > { %v1252_v12 = vadd.f32 %v1195_v40, %v963_v24 }
 0x12f   : > { %1935 = vmatmul.msk.bf16.gmra.mxu1 %vm350_vm0, %v2335_v18  ;;  %2319 = vmatmul.msk.bf16.gmra.mxu0 %vm350_vm0, %v2411_v41  ;;  %v964_v47 = vadd.f32 %v909_v53, %v649_v33 }
 0x130   : > { %v1541_v56 = vadd.f32 %v1484_v0, %v1252_v12 }
 0x132   : > { %2191 = vmatmul.msk.bf16.gmra.mxu3 %vm350_vm0, %v2392_v50  ;;  %v1573_v8 = vadd.f32 %v2739_v10, %v1541_v56 }
 0x134   : > { %v650_v52 = vpop.f32.mrf.mxu1  ;;  %v1489_v7 = vpop.f32.mrf.mxu0  ;;  %v1601_v62 = vmax.f32 %v1573_v8, 0.0 }
 0x135   : > { %v1198_v48 = vpop.f32.mrf.mxu3  ;;  %v651_v49 = vadd.f32 %v650_v52, %v2666_v13  ;;  %v919_v45 = vpop.f32.mrf.mxu2 }
 0x136   : > { %v1253_v34 = vadd.f32 %v1198_v48, %v964_v47 }
 0x137   : > { %v965_v1 = vadd.f32 %v911_v36, %v651_v49 }
 0x138   : > { %v1542_v4 = vadd.f32 %v1487_v43, %v1253_v34 }
 0x13a   : > { %v1574_v53 = vadd.f32 %v2739_v10, %v1542_v4 }
 0x13c   : > { %v653_v61 = vpop.f32.mrf.mxu1  ;;  %v1492_v59 = vpop.f32.mrf.mxu0  ;;  %v1602_v17 = vmax.f32 %v1574_v53, 0.0 }
 0x13d   : > { %v1200_v57 = vpop.f32.mrf.mxu3  ;;  %v921_v55 = vpop.f32.mrf.mxu2  ;;  %v654_v50 = vadd.f32 %v653_v61, %v2676_v19 }
 0x13e   : > { %v1254_v58 = vadd.f32 %v1200_v57, %v965_v1  ;;  %v1624_v20 = vmax.f32 %v1600_v5, %v1602_v17 }
 0x13f   : > { %v966_v47 = vadd.f32 %v914_v29, %v654_v50 }
 0x140   : > { %v1543_v16 = vadd.f32 %v1489_v7, %v1254_v58 }
 0x142   : > { %v1575_v13 = vadd.f32 %v2739_v10, %v1543_v16 }
 0x144   : > { %v1603_v6 = vmax.f32 %v1575_v13, 0.0  ;;  %v655_v26 = vpop.f32.mrf.mxu1  ;;  %v1494_v0 = vpop.f32.mrf.mxu0 }
 0x145   : > { %v1203_v36 = vpop.f32.mrf.mxu3  ;;  %v924_v18 = vpop.f32.mrf.mxu2  ;;  %v656_v33 = vadd.f32 %v655_v26, %v2690_v25 }
 0x146   : > { %v1625_v22 = vmax.f32 %v1601_v62, %v1603_v6  ;;  %v1255_v7 = vadd.f32 %v1203_v36, %v966_v47 }
 0x147   : > { %v967_v48 = vadd.f32 %v916_v30, %v656_v33 }
 0x148   : > { %v1636_v28 = vmax.f32 %v1624_v20, %v1625_v22  ;;  %v1544_v4 = vadd.f32 %v1492_v59, %v1255_v7 }
 0x14a   : > { %v1643_v32 = vpack.c.bf16 %v1636_v28, %v1636_v28  ;;  %v1576_v29 = vadd.f32 %v2739_v10, %v1544_v4 }
 0x14c   : > { %1651 = vst.msk [vmem:[%s2761_s24 + $0x8] sm:$0xf] %vm1648_vm1, %v1643_v32  ;;  %v658_v41 = vpop.f32.mrf.mxu1  ;;  %v1497_v42 = vpop.f32.mrf.mxu0  ;;  %v1604_v61 = vmax.f32 %v1576_v29, 0.0 }
 0x14d   : > { %v1205_v40 = vpop.f32.mrf.mxu3  ;;  %v659_v43 = vadd.f32 %v658_v41, %v2698_v31  ;;  %v926_v52 = vpop.f32.mrf.mxu2 }
 0x14e   : > { %v1256_v54 = vadd.f32 %v1205_v40, %v967_v48 }
 0x14f   : > { %v968_v44 = vadd.f32 %v919_v45, %v659_v43 }
 0x150   : > { %v1545_v60 = vadd.f32 %v1494_v0, %v1256_v54 }
 0x152   : > { %v1577_v30 = vadd.f32 %v2739_v10, %v1545_v60 }
 0x154   : > { %v660_v24 = vpop.f32.mrf.mxu1  ;;  %v1499_v34 = vpop.f32.mrf.mxu0  ;;  %v1605_v59 = vmax.f32 %v1577_v30, 0.0 }
 0x155   : > { %v1208_v46 = vpop.f32.mrf.mxu3  ;;  %v661_v12 = vadd.f32 %v660_v24, %v2710_v37  ;;  %v929_v53 = vpop.f32.mrf.mxu2 }
 0x156   : > { %v1257_v51 = vadd.f32 %v1208_v46, %v968_v44 }
 0x157   : > { %v969_v31 = vadd.f32 %v921_v55, %v661_v12 }
 0x158   : > { %v1546_v49 = vadd.f32 %v1497_v42, %v1257_v51 }
 0x15a   : > { %v1578_v19 = vadd.f32 %v2739_v10, %v1546_v49 }
 0x15c   : > { %v663_v45 = vpop.f32.mrf.mxu1  ;;  %v1502_v1 = vpop.f32.mrf.mxu0  ;;  %v1606_v58 = vmax.f32 %v1578_v19, 0.0 }
 0x15d   : > { %v1210_v56 = vpop.f32.mrf.mxu3  ;;  %v931_v6 = vpop.f32.mrf.mxu2  ;;  %v664_v0 = vadd.f32 %v663_v45, %v2644_v2 }
 0x15e   : > { %v1258_v25 = vadd.f32 %v1210_v56, %v969_v31  ;;  %v1626_v16 = vmax.f32 %v1604_v61, %v1606_v58 }
 0x15f   : > { %v970_v42 = vadd.f32 %v924_v18, %v664_v0 }
 0x160   : > { %v1547_v57 = vadd.f32 %v1499_v34, %v1258_v25 }
 0x162   : > { %v1579_v37 = vadd.f32 %v2739_v10, %v1547_v57 }
 0x164   : > { %v1607_v38 = vmax.f32 %v1579_v37, 0.0  ;;  %v665_v13 = vpop.f32.mrf.mxu1  ;;  %v1504_v55 = vpop.f32.mrf.mxu0 }
 0x165   : > { %v1213_v8 = vpop.f32.mrf.mxu3  ;;  %v666_v28 = vadd.f32 %v665_v13, %v2655_v9  ;;  %v934_v41 = vpop.f32.mrf.mxu2 }
 0x166   : > { %v1627_v17 = vmax.f32 %v1605_v59, %v1607_v38  ;;  %v1259_v46 = vadd.f32 %v1213_v8, %v970_v42 }
 0x167   : > { %v971_v43 = vadd.f32 %v926_v52, %v666_v28 }
 0x168   : > { %v1637_v5 = vmax.f32 %v1626_v16, %v1627_v17  ;;  %v1548_v24 = vadd.f32 %v1502_v1, %v1259_v46 }
 0x16a   : > { %v1644_v62 = vpack.c.bf16 %v1637_v5, %v1637_v5  ;;  %v1580_v18 = vadd.f32 %v2739_v10, %v1548_v24 }
 0x16c   : > { %1652 = vst.msk [vmem:[%s2761_s24 + $0xc] sm:$0xf] %vm1648_vm1, %v1644_v62  ;;  %v668_v20 = vpop.f32.mrf.mxu1  ;;  %v1507_v22 = vpop.f32.mrf.mxu0  ;;  %v1608_v31 = vmax.f32 %v1580_v18, 0.0 }
 0x16d   : > { %v1215_v36 = vpop.f32.mrf.mxu3  ;;  %v669_v26 = vadd.f32 %v668_v20, %v2668_v14  ;;  %v936_v49 = vpop.f32.mrf.mxu2 }
 0x16e   : > { %v1260_v47 = vadd.f32 %v1215_v36, %v971_v43 }
 0x16f   : > { %v972_v32 = vadd.f32 %v929_v53, %v669_v26 }
 0x170   : > { %v1549_v34 = vadd.f32 %v1504_v55, %v1260_v47 }
 0x172   : > { %v1581_v52 = vadd.f32 %v2739_v10, %v1549_v34 }
 0x174   : > { %v670_v33 = vpop.f32.mrf.mxu1  ;;  %v1509_v44 = vpop.f32.mrf.mxu0  ;;  %v1609_v56 = vmax.f32 %v1581_v52, 0.0 }
 0x175   : > { %v1218_v40 = vpop.f32.mrf.mxu3  ;;  %v671_v48 = vadd.f32 %v670_v33, %v2679_v21  ;;  %v939_v53 = vpop.f32.mrf.mxu2 }
 0x176   : > { %v1261_v50 = vadd.f32 %v1218_v40, %v972_v32 }
 0x177   : > { %v973_v14 = vadd.f32 %v931_v6, %v671_v48 }
 0x178   : > { %v1550_v51 = vadd.f32 %v1507_v22, %v1261_v50 }
 0x17a   : > { %v1582_v2 = vadd.f32 %v2739_v10, %v1550_v51 }
 0x17c   : > { %v673_v54 = vpop.f32.mrf.mxu1  ;;  %v1512_v12 = vpop.f32.mrf.mxu0  ;;  %v1610_v60 = vmax.f32 %v1582_v2, 0.0 }
 0x17d   : > { %v1220_v7 = vpop.f32.mrf.mxu3  ;;  %v674_v8 = vadd.f32 %v673_v54, %v2637_v63  ;;  %v941_v17 = vpop.f32.mrf.mxu2 }
 0x17e   : > { %v1262_v9 = vadd.f32 %v1220_v7, %v973_v14  ;;  %v1628_v45 = vmax.f32 %v1608_v31, %v1610_v60 }
 0x17f   : > { %v974_v5 = vadd.f32 %v934_v41, %v674_v8 }
 0x180   : > { %v1551_v4 = vadd.f32 %v1509_v44, %v1262_v9 }
 0x182   : > { %v1583_v21 = vadd.f32 %v2739_v10, %v1551_v4 }
 0x184   : > { %v1611_v19 = vmax.f32 %v1583_v21, 0.0  ;;  %v675_v29 = vpop.f32.mrf.mxu1  ;;  %v1514_v30 = vpop.f32.mrf.mxu0 }
 0x185   : > { %v1223_v25 = vpop.f32.mrf.mxu3  ;;  %v676_v16 = vadd.f32 %v675_v29, %v2646_v3  ;;  %v944_v42 = vpop.f32.mrf.mxu2 }
 0x186   : > { %v1629_v1 = vmax.f32 %v1609_v56, %v1611_v19  ;;  %v1263_v22 = vadd.f32 %v1223_v25, %v974_v5 }
 0x187   : > { %v975_v62 = vadd.f32 %v936_v49, %v676_v16 }
 0x188   : > { %v1638_v57 = vmax.f32 %v1628_v45, %v1629_v1  ;;  %v1552_v32 = vadd.f32 %v1512_v12, %v1263_v22 }
 0x18a   : > { %v1645_v58 = vpack.c.bf16 %v1638_v57, %v1638_v57  ;;  %v1584_v41 = vadd.f32 %v2739_v10, %v1552_v32 }
 0x18c   : > { %1653 = vst.msk [vmem:[%s2761_s24 + $0x10] sm:$0xf] %vm1648_vm1, %v1645_v58  ;;  %v678_v61 = vpop.f32.mrf.mxu1  ;;  %v1517_v59 = vpop.f32.mrf.mxu0  ;;  %v1612_v48 = vmax.f32 %v1584_v41, 0.0 }
 0x18d   : > { %v1225_v37 = vpop.f32.mrf.mxu3  ;;  %v679_v38 = vadd.f32 %v678_v61, %v2661_v11  ;;  %v946_v9 = vpop.f32.mrf.mxu2 }
 0x18e   : > { %v1264_v26 = vadd.f32 %v1225_v37, %v975_v62 }
 0x18f   : > { %v976_v13 = vadd.f32 %v939_v53, %v679_v38 }
 0x190   : > { %v1553_v40 = vadd.f32 %v1514_v30, %v1264_v26 }
 0x192   : > { %v1585_v33 = vadd.f32 %v2739_v10, %v1553_v40 }
 0x194   : > { %v680_v36 = vpop.f32.mrf.mxu1  ;;  %v1519_v20 = vpop.f32.mrf.mxu0  ;;  %v1613_v51 = vmax.f32 %v1585_v33, 0.0 }
 0x195   : > { %v1228_v55 = vpop.f32.mrf.mxu3  ;;  %v681_v0 = vadd.f32 %v680_v36, %v2670_v15  ;;  %v949_v60 = vpop.f32.mrf.mxu2 }
 0x196   : > { %v1265_v6 = vadd.f32 %v1228_v55, %v976_v13 }
 0x197   : > { %v977_v11 = vadd.f32 %v941_v17, %v681_v0 }
 0x198   : > { %v1554_v28 = vadd.f32 %v1517_v59, %v1265_v6 }
 0x19a   : > { %v1586_v3 = vadd.f32 %v2739_v10, %v1554_v28 }
 0x19c   : > { %v683_v50 = vpop.f32.mrf.mxu1  ;;  %v1522_v46 = vpop.f32.mrf.mxu0  ;;  %v1614_v47 = vmax.f32 %v1586_v3, 0.0 }
 0x19d   : > { %v1230_v63 = vpop.f32.mrf.mxu3  ;;  %v684_v21 = vadd.f32 %v683_v50, %v2685_v23  ;;  %v951_v61 = vpop.f32.mrf.mxu2 }
 0x19e   : > { %v1266_v43 = vadd.f32 %v1230_v63, %v977_v11  ;;  %v1630_v14 = vmax.f32 %v1612_v48, %v1614_v47 }
 0x19f   : > { %v978_v45 = vadd.f32 %v944_v42, %v684_v21 }
 0x1a0   : > { %v1555_v44 = vadd.f32 %v1519_v20, %v1266_v43 }
 0x1a2   : > { %v1587_v15 = vadd.f32 %v2739_v10, %v1555_v44 }
 0x1a4   : > { %v1615_v24 = vmax.f32 %v1587_v15, 0.0  ;;  %v685_v2 = vpop.f32.mrf.mxu1  ;;  %v1524_v49 = vpop.f32.mrf.mxu0 }
 0x1a5   : > { %v1233_v34 = vpop.f32.mrf.mxu3  ;;  %v686_v31 = vadd.f32 %v685_v2, %v2692_v27 }
 0x1a6   : > { %v1631_v7 = vmax.f32 %v1613_v51, %v1615_v24  ;;  %v1267_v57 = vadd.f32 %v1233_v34, %v978_v45 }
 0x1a7   : > { %v979_v1 = vadd.f32 %v946_v9, %v686_v31 }
 0x1a8   : > { %v1639_v54 = vmax.f32 %v1630_v14, %v1631_v7  ;;  %v1556_v59 = vadd.f32 %v1522_v46, %v1267_v57 }
 0x1aa   : > { %v1646_v12 = vpack.c.bf16 %v1639_v54, %v1639_v54  ;;  %v1588_v17 = vadd.f32 %v2739_v10, %v1556_v59 }
 0x1ac   : > { %1654 = vst.msk [vmem:[%s2761_s24 + $0x14] sm:$0xf] %vm1648_vm1, %v1646_v12  ;;  %v688_v52 = vpop.f32.mrf.mxu1  ;;  %v1527_v19 = vpop.f32.mrf.mxu0 }
 0x1ad   : > { %v1235_v18 = vpop.f32.mrf.mxu3  ;;  %v689_v4 = vadd.f32 %v688_v52, %v2705_v35 }
 0x1ae   : > { %v1268_v53 = vadd.f32 %v1235_v18, %v979_v1 }
 0x1af   : > { %v980_v56 = vadd.f32 %v949_v60, %v689_v4 }
 0x1b0   : > { %v1557_v35 = vadd.f32 %v1524_v49, %v1268_v53 }
 0x1b2   : > { %v1589_v13 = vadd.f32 %v2739_v10, %v1557_v35 }
 0x1b4   : > { %v690_v30 = vpop.f32.mrf.mxu1  ;;  %v1529_v16 = vpop.f32.mrf.mxu0  ;;  %v1617_v6 = vmax.f32 %v1589_v13, 0.0 }
 0x1b5   : > { %v1238_v25 = vpop.f32.mrf.mxu3  ;;  %v691_v58 = vadd.f32 %v690_v30, %v2712_v39  ;;  %v1616_v39 = vmax.f32 %v1588_v17, 0.0 }
 0x1b6   : > { %v1269_v29 = vadd.f32 %v1238_v25, %v980_v56 }
 0x1b7   : > { %v981_v38 = vadd.f32 %v951_v61, %v691_v58 }
 0x1b8   : > { %v1558_v37 = vadd.f32 %v1527_v19, %v1269_v29 }
 0x1ba   : > { %v1590_v23 = vadd.f32 %v2739_v10, %v1558_v37 }
 0x1bc   : > { %v1618_v5 = vmax.f32 %v1590_v23, 0.0 }
 0x1bd   : > { %v1240_v8 = vpop.f32.mrf.mxu3 }
 0x1be   : > { %v1270_v27 = vadd.f32 %v1240_v8, %v981_v38  ;;  %v1632_v20 = vmax.f32 %v1616_v39, %v1618_v5 }
 0x1c0   : > { %v1559_v55 = vadd.f32 %v1529_v16, %v1270_v27 }
 0x1c2   : > { %v1591_v62 = vadd.f32 %v2739_v10, %v1559_v55 }
 0x1c4   : > { %v1619_v36 = vmax.f32 %v1591_v62, 0.0 }
 0x1c6   : > { %v1633_v22 = vmax.f32 %v1617_v6, %v1619_v36 }
 0x1c8   : > { %v1640_v26 = vmax.f32 %v1632_v20, %v1633_v22 }
 0x1ca   : > { %v1647_v0 = vpack.c.bf16 %v1640_v26, %v1640_v26 }
 0x1cc   : > { %1655 = vst.msk [vmem:[%s2761_s24 + $0x18] sm:$0xf] %vm1648_vm1, %v1647_v0 }
 0x1cd PF: > { %s13_s12 = sadd.s32 1, %s2449_s12  }
 0x1ce   : > { %p10_p4 = scmp.ge.s32.totalorder %s13_s12, 4  }
 0x1d0   :  { %12 = sbr.rel (!%p10_p4) target bundleno = 1 (0x1), region = 70 }

</bundles_post_ra>
